<compile_context>
chip_gen: v7x
topology: tpu7x:2x2x1
jax: 0.10.0
libtpu: 0.0.40
codegen_flags: <defaults>
</compile_context>

<pallas_src>
import jax
import jax.numpy as jnp
from jax.experimental import pallas as pl
from jax.experimental.pallas import tpu as pltpu

# ----------------------------- configuration --------------------------------
B = 16            # batch
B_TILE = 8        # images folded into one slab per grid step (2 steps total)
IMG = 16          # image spatial size (H = W = 16)
IN_CH = 3         # RGB
PATCH = 8         # patch size -> 2x2 = 4 patches
WIDTH = 32        # transformer width
HEADS = 4
HEAD_DIM = WIDTH // HEADS
LAYERS = 2
MLP_DIM = 4 * WIDTH
EMBED_DIM = 16    # CLIP image-embedding dim
EMBED_PAD = 128   # lane-dense padded output width
GRID_SIDE = IMG // PATCH
NUM_PATCHES = GRID_SIDE * GRID_SIDE
SEQ = NUM_PATCHES + 1
ROWS = B_TILE * SEQ               # 40 rows / grid step (multiple of 8 sublanes)
PATCH_DIM = IN_CH * PATCH * PATCH
LN_EPS = 1e-5
ATTN_SCALE = HEAD_DIM ** -0.5
NEG_INF = -1e30


# ------------------------------ in-kernel helpers ----------------------------
def _mm(a, w_bf16):
    """bf16 MXU matmul with f32 accumulation (weights stored bf16)."""
    return jnp.dot(a.astype(jnp.bfloat16), w_bf16,
                   preferred_element_type=jnp.float32)


def _layernorm(x, g=None, b=None):
    """f32 LayerNorm; affine only when not folded into the following matmul."""
    x = x.astype(jnp.float32)
    mu = jnp.mean(x, axis=-1, keepdims=True)
    xc = x - mu
    var = jnp.mean(xc * xc, axis=-1, keepdims=True)
    xn = xc * jax.lax.rsqrt(var + LN_EPS)
    if g is not None:
        xn = xn * g + b
    return xn


# ------------------------------- fused kernel --------------------------------
def _image_clip_kernel(
    patches_ref,                    # [ROWS, PATCH_DIM] f32 (CLS rows are zero)
    conv_w_ref,                     # [PATCH_DIM, W]    bf16
    pos_ref,                        # [ROWS, W]         f32 (cls folded in)
    ln_pre_g_ref, ln_pre_b_ref,     # [1, W]            f32
    q_w_ref, q_b_ref,               # [L, W, W] bf16 / [L, 1, W] f32 (ln1+scale folded)
    k_w_ref, k_b_ref,               # [L, W, W] bf16 / [L, 1, W] f32 (ln1 folded)
    v_w_ref, v_b_ref,               # [L, W, W] bf16 / [L, 1, W] f32 (ln1 folded)
    out_w_ref, out_b_ref,           # [L, W, W] bf16 / [L, 1, W] f32
    fc_w_ref, fc_b_ref,             # [L, W, MLP] bf16 / [L, 1, MLP] f32 (ln2 folded)
    cp_w_ref, cp_b_ref,             # [L, MLP, W] bf16 / [L, 1, W]  f32
    proj_ref, proj_b_ref,           # [W, EMBED_PAD] bf16 / [1, EMBED_PAD] f32 (ln_post folded)
    head_mask_ref,                  # [HEADS, 1, W]     f32 0/1 lane selector per head
    img_mask_ref,                   # [ROWS, ROWS]      f32 0 / -1e30 block-diagonal
    out_ref,                        # [B_TILE, EMBED_PAD] f32
):
    # ---- patch embedding (conv1 as matmul) + positional/class embed + ln_pre
    x = _mm(patches_ref[...], conv_w_ref[...]) + pos_ref[...]          # [ROWS, W]
    x = _layernorm(x, ln_pre_g_ref[...], ln_pre_b_ref[...])
    img_mask = img_mask_ref[...]

    # ---- transformer blocks (statically unrolled; weights VMEM-resident) ----
    for l in range(LAYERS):
        # --- multi-head self-attention (pre-LN; ln1 affine folded into q/k/v)
        h = _layernorm(x)
        q = _mm(h, q_w_ref[l]) + q_b_ref[l]           # [ROWS, W] (scale pre-folded)
        k = _mm(h, k_w_ref[l]) + k_b_ref[l]
        v = _mm(h, v_w_ref[l]) + v_b_ref[l]
        k_bf = k.astype(jnp.bfloat16)
        v_bf = v.astype(jnp.bfloat16)
        attn = jnp.zeros((ROWS, WIDTH), jnp.float32)
        for hh in range(HEADS):
            m = head_mask_ref[hh]                      # [1, W] constant lane mask
            # scores: zero out other heads' lanes before the contraction
            s = jax.lax.dot_general(
                (q * m).astype(jnp.bfloat16), k_bf,
                (((1,), (1,)), ((), ())),
                preferred_element_type=jnp.float32)    # [ROWS, ROWS]
            s = s + img_mask                           # keep attention per-image
            s = s - jnp.max(s, axis=-1, keepdims=True)
            p = jnp.exp(s)
            p = p / jnp.sum(p, axis=-1, keepdims=True)  # exact division
            o = jnp.dot(p.astype(jnp.bfloat16), v_bf,
                        preferred_element_type=jnp.float32)  # [ROWS, W]
            attn = attn + o * m                         # place this head's lanes
        x = x + _mm(attn, out_w_ref[l]) + out_b_ref[l]  # residual

        # --- MLP sublayer (QuickGELU; ln2 affine folded into c_fc) ---
        hm = _layernorm(x)
        hm = _mm(hm, fc_w_ref[l]) + fc_b_ref[l]
        hm = hm * jax.nn.sigmoid(1.702 * hm)            # QuickGELU (f32)
        x = x + _mm(hm, cp_w_ref[l]) + cp_b_ref[l]      # residual

    # ---- ln_post + projection on CLS rows (first B_TILE rows of the slab) ----
    cls = _layernorm(x[0:B_TILE, :])
    out_ref[...] = (_mm(cls, proj_ref[...]) + proj_b_ref[...]).astype(out_ref.dtype)


# --------------------------------- wrapper ------------------------------------
def _full_spec(shape):
    nd = len(shape)
    return pl.BlockSpec(tuple(shape), lambda *_: (0,) * nd)


def _build_patch_rows(image):
    """NCHW image -> token rows [B//B_TILE * ROWS, PATCH_DIM].
    Per-tile row layout: B_TILE zero rows (CLS slots) then B_TILE*NUM_PATCHES
    patch rows (image-major).  Pure input-layout glue; the conv-as-matmul runs
    inside the fused kernel."""
    b = image.shape[0]
    p = image.reshape(b, IN_CH, GRID_SIDE, PATCH, GRID_SIDE, PATCH)
    p = p.transpose(0, 2, 4, 1, 3, 5)                    # [B, gh, gw, C, P, P]
    p = p.reshape(b, NUM_PATCHES, PATCH_DIM)
    nt = b // B_TILE
    p = p.reshape(nt, B_TILE * NUM_PATCHES, PATCH_DIM)
    zeros = jnp.zeros((nt, B_TILE, PATCH_DIM), image.dtype)
    rows = jnp.concatenate([zeros, p], axis=1)           # [nt, ROWS, PATCH_DIM]
    return rows.reshape(nt * ROWS, PATCH_DIM)


def encode_image(params, image):
    """image: NCHW float32 [B, 3, IMG, IMG] -> image embeddings [B, EMBED_DIM]."""
    batch = image.shape[0]
    assert batch % B_TILE == 0
    n_tiles = batch // B_TILE
    patches = _build_patch_rows(image)

    weight_args = (
        params["conv_w"], params["pos"],
        params["ln_pre_g"], params["ln_pre_b"],
        params["q_w"], params["q_b"], params["k_w"], params["k_b"],
        params["v_w"], params["v_b"], params["out_w"], params["out_b"],
        params["fc_w"], params["fc_b"], params["cp_w"], params["cp_b"],
        params["proj"], params["proj_b"],
        params["head_mask"], params["img_mask"],
    )
    in_specs = [pl.BlockSpec((ROWS, PATCH_DIM), lambda g: (g, 0))]
    # Grid-invariant weights: full-array VMEM blocks; their block index never
    # changes so they are DMA'd once.  (pl.Buffered(1) would halve their VMEM
    # footprint at real CLIP sizes; irrelevant at this toy size.)
    in_specs += [_full_spec(w.shape) for w in weight_args]

    out = pl.pallas_call(
        _image_clip_kernel,
        out_shape=jax.ShapeDtypeStruct((batch, EMBED_PAD), jnp.float32),
        grid=(n_tiles,),
        in_specs=in_specs,
        out_specs=pl.BlockSpec((B_TILE, EMBED_PAD), lambda g: (g, 0)),
        compiler_params=pltpu.CompilerParams(
            dimension_semantics=("parallel",)),  # 2 steps -> v7x uses both TCs
    )(patches, *weight_args)
    return out[:, :EMBED_DIM]


@jax.jit
def image_clip_forward(params, image):
    # ImageCLIP.forward(image) := model.encode_image(image)
    return encode_image(params, image)


# --------------------------- parameter creation --------------------------------
def init_raw_params(key):
    """PyTorch-layout CLIP vision-tower weights (deterministic random)."""
    def normal(k, shape, scale=0.02):
        return scale * jax.random.normal(k, shape, dtype=jnp.float32)

    keys = iter(jax.random.split(key, 8 + 12 * LAYERS))
    raw = {
        "conv_w": normal(next(keys), (WIDTH, IN_CH, PATCH, PATCH)),
        "class_embedding": normal(next(keys), (WIDTH,)),
        "positional_embedding": normal(next(keys), (SEQ, WIDTH)),
        "ln_pre_g": 1.0 + normal(next(keys), (WIDTH,)),
        "ln_pre_b": normal(next(keys), (WIDTH,)),
        "ln_post_g": 1.0 + normal(next(keys), (WIDTH,)),
        "ln_post_b": normal(next(keys), (WIDTH,)),
        "proj": normal(next(keys), (WIDTH, EMBED_DIM)),
        "layers": [],
    }
    for _ in range(LAYERS):
        raw["layers"].append({
            "ln1_g": 1.0 + normal(next(keys), (WIDTH,)),
            "ln1_b": normal(next(keys), (WIDTH,)),
            "in_w": normal(next(keys), (3 * WIDTH, WIDTH)),   # [out, in]
            "in_b": normal(next(keys), (3 * WIDTH,)),
            "out_w": normal(next(keys), (WIDTH, WIDTH)),
            "out_b": normal(next(keys), (WIDTH,)),
            "ln2_g": 1.0 + normal(next(keys), (WIDTH,)),
            "ln2_b": normal(next(keys), (WIDTH,)),
            "fc_w": normal(next(keys), (MLP_DIM, WIDTH)),
            "fc_b": normal(next(keys), (MLP_DIM,)),
            "cp_w": normal(next(keys), (WIDTH, MLP_DIM)),
            "cp_b": normal(next(keys), (WIDTH,)),
        })
    return raw


def fold_params(raw):
    """PyTorch layout -> kernel-ready: [in,out] layouts, per-layer stacking,
    class token folded into the positional table, attention scale and the
    ln1/ln2/ln_post affines folded into the following matmuls, lane-padded
    projection, plus the constant head / image masks."""
    f32, bf16 = jnp.float32, jnp.bfloat16

    def fold_ln(w_pt, b_pt, g, beta, scale=1.0):
        # y = (xn*g + beta) @ w_pt.T + b_pt  ==  xn @ w' + b'
        w = (w_pt.T * g[:, None]) * scale
        b = (beta @ w_pt.T + b_pt) * scale
        return w, b

    qw, qb, kw, kb, vw, vb = [], [], [], [], [], []
    ow, ob, fw, fb, cw, cb = [], [], [], [], [], []
    for lyr in raw["layers"]:
        w_q, w_k, w_v = jnp.split(lyr["in_w"], 3, axis=0)
        b_q, b_k, b_v = jnp.split(lyr["in_b"], 3, axis=0)
        w, b = fold_ln(w_q, b_q, lyr["ln1_g"], lyr["ln1_b"], ATTN_SCALE)
        qw.append(w); qb.append(b)
        w, b = fold_ln(w_k, b_k, lyr["ln1_g"], lyr["ln1_b"])
        kw.append(w); kb.append(b)
        w, b = fold_ln(w_v, b_v, lyr["ln1_g"], lyr["ln1_b"])
        vw.append(w); vb.append(b)
        ow.append(lyr["out_w"].T); ob.append(lyr["out_b"])
        w, b = fold_ln(lyr["fc_w"], lyr["fc_b"], lyr["ln2_g"], lyr["ln2_b"])
        fw.append(w); fb.append(b)
        cw.append(lyr["cp_w"].T); cb.append(lyr["cp_b"])

    def stack_w(ws):
        return jnp.stack(ws).astype(bf16)              # [L, in, out]

    def stack_b(bs):
        return jnp.stack(bs)[:, None, :].astype(f32)   # [L, 1, out]

    # class token folded into positional row 0; rows ordered
    # [B_TILE CLS rows | B_TILE*NUM_PATCHES patch rows (image-major)].
    pos = raw["positional_embedding"]
    cls_row = pos[0] + raw["class_embedding"]
    pos_rows = jnp.concatenate(
        [jnp.tile(cls_row[None, :], (B_TILE, 1)),
         jnp.tile(pos[1:][None, :, :], (B_TILE, 1, 1)).reshape(
             B_TILE * NUM_PATCHES, WIDTH)], axis=0)

    # ln_post folded into the (zero-padded, lane-dense) projection
    proj = raw["proj"] * raw["ln_post_g"][:, None]
    proj_b = raw["ln_post_b"] @ raw["proj"]
    proj_pad = jnp.zeros((WIDTH, EMBED_PAD), f32).at[:, :EMBED_DIM].set(proj)
    proj_b_pad = jnp.zeros((1, EMBED_PAD), f32).at[0, :EMBED_DIM].set(proj_b)

    # constant masks: per-head 0/1 lane selector; per-image block-diagonal
    lane = jnp.arange(WIDTH)[None, None, :]
    head_mask = (lane // HEAD_DIM ==
                 jnp.arange(HEADS)[:, None, None]).astype(f32)
    img_id = jnp.concatenate(
        [jnp.arange(B_TILE), jnp.repeat(jnp.arange(B_TILE), NUM_PATCHES)])
    img_mask = jnp.where(img_id[:, None] == img_id[None, :],
                         0.0, NEG_INF).astype(f32)

    return {
        "conv_w": raw["conv_w"].reshape(WIDTH, PATCH_DIM).T.astype(bf16),
        "pos": pos_rows.astype(f32),
        "ln_pre_g": raw["ln_pre_g"].reshape(1, WIDTH),
        "ln_pre_b": raw["ln_pre_b"].reshape(1, WIDTH),
        "q_w": stack_w(qw), "q_b": stack_b(qb),
        "k_w": stack_w(kw), "k_b": stack_b(kb),
        "v_w": stack_w(vw), "v_b": stack_b(vb),
        "out_w": stack_w(ow), "out_b": stack_b(ob),
        "fc_w": stack_w(fw), "fc_b": stack_b(fb),
        "cp_w": stack_w(cw), "cp_b": stack_b(cb),
        "proj": proj_pad.astype(bf16), "proj_b": proj_b_pad,
        "head_mask": head_mask, "img_mask": img_mask,
    }


# --------------------------------- main ----------------------------------------
if __name__ == "__main__":
    key = jax.random.PRNGKey(0)
    pkey, xkey = jax.random.split(key)
    params = fold_params(init_raw_params(pkey))
    image = jax.random.normal(xkey, (B, IN_CH, IMG, IMG), dtype=jnp.float32)  # NCHW

    out = image_clip_forward(params, image)
    out = jax.block_until_ready(out)
    assert out.shape == (B, EMBED_DIM) and out.dtype == jnp.float32
    assert bool(jnp.all(jnp.isfinite(out)))
    print("KERNEL_OK")
</pallas_src>

<mosaic_0001>
module attributes {stable_mosaic.version = 11 : i64} {
  func.func @_image_clip_kernel(%arg0: i32, %arg1: memref<40x192xf32, #tpu.memory_space<vmem>>, %arg2: memref<192x32xbf16, #tpu.memory_space<vmem>>, %arg3: memref<40x32xf32, #tpu.memory_space<vmem>>, %arg4: memref<1x32xf32, #tpu.memory_space<vmem>>, %arg5: memref<1x32xf32, #tpu.memory_space<vmem>>, %arg6: memref<2x32x32xbf16, #tpu.memory_space<vmem>>, %arg7: memref<2x1x32xf32, #tpu.memory_space<vmem>>, %arg8: memref<2x32x32xbf16, #tpu.memory_space<vmem>>, %arg9: memref<2x1x32xf32, #tpu.memory_space<vmem>>, %arg10: memref<2x32x32xbf16, #tpu.memory_space<vmem>>, %arg11: memref<2x1x32xf32, #tpu.memory_space<vmem>>, %arg12: memref<2x32x32xbf16, #tpu.memory_space<vmem>>, %arg13: memref<2x1x32xf32, #tpu.memory_space<vmem>>, %arg14: memref<2x32x128xbf16, #tpu.memory_space<vmem>>, %arg15: memref<2x1x128xf32, #tpu.memory_space<vmem>>, %arg16: memref<2x128x32xbf16, #tpu.memory_space<vmem>>, %arg17: memref<2x1x32xf32, #tpu.memory_space<vmem>>, %arg18: memref<32x128xbf16, #tpu.memory_space<vmem>>, %arg19: memref<1x128xf32, #tpu.memory_space<vmem>>, %arg20: memref<4x1x32xf32, #tpu.memory_space<vmem>>, %arg21: memref<40x40xf32, #tpu.memory_space<vmem>>, %arg22: memref<8x128xf32, #tpu.memory_space<vmem>>) attributes {dimension_semantics = [#tpu.dimension_semantics<parallel>], iteration_bounds = array<i64: 2>, scalar_prefetch = 0 : i64, scratch_operands = 0 : i64, tpu.core_type = #tpu.core_type<tc>, window_params = [{transform_indices = @transform_0, window_bounds = array<i64: 40, 192>}, {pipeline_mode = #tpu.pipeline_mode<synchronous>, transform_indices = @transform_1, window_bounds = array<i64: 192, 32>}, {pipeline_mode = #tpu.pipeline_mode<synchronous>, transform_indices = @transform_2, window_bounds = array<i64: 40, 32>}, {pipeline_mode = #tpu.pipeline_mode<synchronous>, transform_indices = @transform_3, window_bounds = array<i64: 1, 32>}, {pipeline_mode = #tpu.pipeline_mode<synchronous>, transform_indices = @transform_4, window_bounds = array<i64: 1, 32>}, {pipeline_mode = #tpu.pipeline_mode<synchronous>, transform_indices = @transform_5, window_bounds = array<i64: 2, 32, 32>}, {pipeline_mode = #tpu.pipeline_mode<synchronous>, transform_indices = @transform_6, window_bounds = array<i64: 2, 1, 32>}, {pipeline_mode = #tpu.pipeline_mode<synchronous>, transform_indices = @transform_7, window_bounds = array<i64: 2, 32, 32>}, {pipeline_mode = #tpu.pipeline_mode<synchronous>, transform_indices = @transform_8, window_bounds = array<i64: 2, 1, 32>}, {pipeline_mode = #tpu.pipeline_mode<synchronous>, transform_indices = @transform_9, window_bounds = array<i64: 2, 32, 32>}, {pipeline_mode = #tpu.pipeline_mode<synchronous>, transform_indices = @transform_10, window_bounds = array<i64: 2, 1, 32>}, {pipeline_mode = #tpu.pipeline_mode<synchronous>, transform_indices = @transform_11, window_bounds = array<i64: 2, 32, 32>}, {pipeline_mode = #tpu.pipeline_mode<synchronous>, transform_indices = @transform_12, window_bounds = array<i64: 2, 1, 32>}, {pipeline_mode = #tpu.pipeline_mode<synchronous>, transform_indices = @transform_13, window_bounds = array<i64: 2, 32, 128>}, {pipeline_mode = #tpu.pipeline_mode<synchronous>, transform_indices = @transform_14, window_bounds = array<i64: 2, 1, 128>}, {pipeline_mode = #tpu.pipeline_mode<synchronous>, transform_indices = @transform_15, window_bounds = array<i64: 2, 128, 32>}, {pipeline_mode = #tpu.pipeline_mode<synchronous>, transform_indices = @transform_16, window_bounds = array<i64: 2, 1, 32>}, {pipeline_mode = #tpu.pipeline_mode<synchronous>, transform_indices = @transform_17, window_bounds = array<i64: 32, 128>}, {pipeline_mode = #tpu.pipeline_mode<synchronous>, transform_indices = @transform_18, window_bounds = array<i64: 1, 128>}, {pipeline_mode = #tpu.pipeline_mode<synchronous>, transform_indices = @transform_19, window_bounds = array<i64: 4, 1, 32>}, {pipeline_mode = #tpu.pipeline_mode<synchronous>, transform_indices = @transform_20, window_bounds = array<i64: 40, 40>}, {transform_indices = @transform_21, window_bounds = array<i64: 8, 128>}]} {
    %c0 = arith.constant 0 : index
    %c0_0 = arith.constant 0 : index
    %0 = vector.load %arg1[%c0, %c0_0] : memref<40x192xf32, #tpu.memory_space<vmem>>, vector<40x192xf32>
    %c0_1 = arith.constant 0 : index
    %c0_2 = arith.constant 0 : index
    %1 = vector.load %arg2[%c0_1, %c0_2] : memref<192x32xbf16, #tpu.memory_space<vmem>>, vector<192x32xbf16>
    %2 = arith.truncf %0 : vector<40x192xf32> to vector<40x192xbf16>
    %cst = arith.constant dense<0.000000e+00> : vector<40x32xf32>
    %3 = tpu.matmul %2, %1, %cst {dimension_numbers = #tpu.dot_dimension_numbers<[1], [0], [0], [1], [0, 0, 1, 1], [], []>} : vector<40x192xbf16>, vector<192x32xbf16>, vector<40x32xf32> -> vector<40x32xf32>
    %c0_3 = arith.constant 0 : index
    %c0_4 = arith.constant 0 : index
    %4 = vector.load %arg3[%c0_3, %c0_4] : memref<40x32xf32, #tpu.memory_space<vmem>>, vector<40x32xf32>
    %5 = arith.addf %3, %4 : vector<40x32xf32>
    %c0_5 = arith.constant 0 : index
    %c0_6 = arith.constant 0 : index
    %6 = vector.load %arg4[%c0_5, %c0_6] : memref<1x32xf32, #tpu.memory_space<vmem>>, vector<1x32xf32>
    %c0_7 = arith.constant 0 : index
    %c0_8 = arith.constant 0 : index
    %7 = vector.load %arg5[%c0_7, %c0_8] : memref<1x32xf32, #tpu.memory_space<vmem>>, vector<1x32xf32>
    %cst_9 = arith.constant dense<0.000000e+00> : vector<40xf32>
    %8 = vector.multi_reduction <add>, %5, %cst_9 [1] : vector<40x32xf32> to vector<40xf32>
    %9 = vector.shape_cast %8 : vector<40xf32> to vector<40x1xf32>
    %cst_10 = arith.constant 3.200000e+01 : f32
    %10 = vector.broadcast %cst_10 : f32 to vector<40x1xf32>
    %11 = arith.divf %9, %10 : vector<40x1xf32>
    %12 = vector.broadcast %11 : vector<40x1xf32> to vector<40x32xf32>
    %13 = arith.subf %5, %12 : vector<40x32xf32>
    %14 = arith.mulf %13, %13 : vector<40x32xf32>
    %cst_11 = arith.constant dense<0.000000e+00> : vector<40xf32>
    %15 = vector.multi_reduction <add>, %14, %cst_11 [1] : vector<40x32xf32> to vector<40xf32>
    %16 = vector.shape_cast %15 : vector<40xf32> to vector<40x1xf32>
    %cst_12 = arith.constant 3.200000e+01 : f32
    %17 = vector.broadcast %cst_12 : f32 to vector<40x1xf32>
    %18 = arith.divf %16, %17 : vector<40x1xf32>
    %cst_13 = arith.constant 9.99999974E-6 : f32
    %19 = vector.broadcast %cst_13 : f32 to vector<40x1xf32>
    %20 = arith.addf %18, %19 : vector<40x1xf32>
    %21 = math.rsqrt %20 : vector<40x1xf32>
    %22 = vector.broadcast %21 : vector<40x1xf32> to vector<40x32xf32>
    %23 = arith.mulf %13, %22 : vector<40x32xf32>
    %24 = vector.broadcast %6 : vector<1x32xf32> to vector<40x32xf32>
    %25 = arith.mulf %23, %24 : vector<40x32xf32>
    %26 = vector.broadcast %7 : vector<1x32xf32> to vector<40x32xf32>
    %27 = arith.addf %25, %26 : vector<40x32xf32>
    %c0_14 = arith.constant 0 : index
    %c0_15 = arith.constant 0 : index
    %28 = vector.load %arg21[%c0_14, %c0_15] : memref<40x40xf32, #tpu.memory_space<vmem>>, vector<40x40xf32>
    %cst_16 = arith.constant dense<0.000000e+00> : vector<40xf32>
    %29 = vector.multi_reduction <add>, %27, %cst_16 [1] : vector<40x32xf32> to vector<40xf32>
    %30 = vector.shape_cast %29 : vector<40xf32> to vector<40x1xf32>
    %cst_17 = arith.constant 3.200000e+01 : f32
    %31 = vector.broadcast %cst_17 : f32 to vector<40x1xf32>
    %32 = arith.divf %30, %31 : vector<40x1xf32>
    %33 = vector.broadcast %32 : vector<40x1xf32> to vector<40x32xf32>
    %34 = arith.subf %27, %33 : vector<40x32xf32>
    %35 = arith.mulf %34, %34 : vector<40x32xf32>
    %cst_18 = arith.constant dense<0.000000e+00> : vector<40xf32>
    %36 = vector.multi_reduction <add>, %35, %cst_18 [1] : vector<40x32xf32> to vector<40xf32>
    %37 = vector.shape_cast %36 : vector<40xf32> to vector<40x1xf32>
    %cst_19 = arith.constant 3.200000e+01 : f32
    %38 = vector.broadcast %cst_19 : f32 to vector<40x1xf32>
    %39 = arith.divf %37, %38 : vector<40x1xf32>
    %cst_20 = arith.constant 9.99999974E-6 : f32
    %40 = vector.broadcast %cst_20 : f32 to vector<40x1xf32>
    %41 = arith.addf %39, %40 : vector<40x1xf32>
    %42 = math.rsqrt %41 : vector<40x1xf32>
    %43 = vector.broadcast %42 : vector<40x1xf32> to vector<40x32xf32>
    %44 = arith.mulf %34, %43 : vector<40x32xf32>
    %c0_21 = arith.constant 0 : index
    %c0_22 = arith.constant 0 : index
    %c0_23 = arith.constant 0 : index
    %45 = vector.load %arg6[%c0_21, %c0_22, %c0_23] : memref<2x32x32xbf16, #tpu.memory_space<vmem>>, vector<1x32x32xbf16>
    %46 = vector.shape_cast %45 : vector<1x32x32xbf16> to vector<32x32xbf16>
    %47 = arith.truncf %44 : vector<40x32xf32> to vector<40x32xbf16>
    %cst_24 = arith.constant dense<0.000000e+00> : vector<40x32xf32>
    %48 = tpu.matmul %47, %46, %cst_24 {dimension_numbers = #tpu.dot_dimension_numbers<[1], [0], [0], [1], [0, 0, 1, 1], [], []>} : vector<40x32xbf16>, vector<32x32xbf16>, vector<40x32xf32> -> vector<40x32xf32>
    %c0_25 = arith.constant 0 : index
    %c0_26 = arith.constant 0 : index
    %c0_27 = arith.constant 0 : index
    %49 = vector.load %arg7[%c0_25, %c0_26, %c0_27] : memref<2x1x32xf32, #tpu.memory_space<vmem>>, vector<1x1x32xf32>
    %50 = vector.shape_cast %49 : vector<1x1x32xf32> to vector<1x32xf32>
    %51 = vector.broadcast %50 : vector<1x32xf32> to vector<40x32xf32>
    %52 = arith.addf %48, %51 : vector<40x32xf32>
    %c0_28 = arith.constant 0 : index
    %c0_29 = arith.constant 0 : index
    %c0_30 = arith.constant 0 : index
    %53 = vector.load %arg8[%c0_28, %c0_29, %c0_30] : memref<2x32x32xbf16, #tpu.memory_space<vmem>>, vector<1x32x32xbf16>
    %54 = vector.shape_cast %53 : vector<1x32x32xbf16> to vector<32x32xbf16>
    %55 = arith.truncf %44 : vector<40x32xf32> to vector<40x32xbf16>
    %cst_31 = arith.constant dense<0.000000e+00> : vector<40x32xf32>
    %56 = tpu.matmul %55, %54, %cst_31 {dimension_numbers = #tpu.dot_dimension_numbers<[1], [0], [0], [1], [0, 0, 1, 1], [], []>} : vector<40x32xbf16>, vector<32x32xbf16>, vector<40x32xf32> -> vector<40x32xf32>
    %c0_32 = arith.constant 0 : index
    %c0_33 = arith.constant 0 : index
    %c0_34 = arith.constant 0 : index
    %57 = vector.load %arg9[%c0_32, %c0_33, %c0_34] : memref<2x1x32xf32, #tpu.memory_space<vmem>>, vector<1x1x32xf32>
    %58 = vector.shape_cast %57 : vector<1x1x32xf32> to vector<1x32xf32>
    %59 = vector.broadcast %58 : vector<1x32xf32> to vector<40x32xf32>
    %60 = arith.addf %56, %59 : vector<40x32xf32>
    %c0_35 = arith.constant 0 : index
    %c0_36 = arith.constant 0 : index
    %c0_37 = arith.constant 0 : index
    %61 = vector.load %arg10[%c0_35, %c0_36, %c0_37] : memref<2x32x32xbf16, #tpu.memory_space<vmem>>, vector<1x32x32xbf16>
    %62 = vector.shape_cast %61 : vector<1x32x32xbf16> to vector<32x32xbf16>
    %63 = arith.truncf %44 : vector<40x32xf32> to vector<40x32xbf16>
    %cst_38 = arith.constant dense<0.000000e+00> : vector<40x32xf32>
    %64 = tpu.matmul %63, %62, %cst_38 {dimension_numbers = #tpu.dot_dimension_numbers<[1], [0], [0], [1], [0, 0, 1, 1], [], []>} : vector<40x32xbf16>, vector<32x32xbf16>, vector<40x32xf32> -> vector<40x32xf32>
    %c0_39 = arith.constant 0 : index
    %c0_40 = arith.constant 0 : index
    %c0_41 = arith.constant 0 : index
    %65 = vector.load %arg11[%c0_39, %c0_40, %c0_41] : memref<2x1x32xf32, #tpu.memory_space<vmem>>, vector<1x1x32xf32>
    %66 = vector.shape_cast %65 : vector<1x1x32xf32> to vector<1x32xf32>
    %67 = vector.broadcast %66 : vector<1x32xf32> to vector<40x32xf32>
    %68 = arith.addf %64, %67 : vector<40x32xf32>
    %69 = arith.truncf %60 : vector<40x32xf32> to vector<40x32xbf16>
    %70 = arith.truncf %68 : vector<40x32xf32> to vector<40x32xbf16>
    %cst_42 = arith.constant 0.000000e+00 : f32
    %71 = vector.broadcast %cst_42 : f32 to vector<40x32xf32>
    %c0_43 = arith.constant 0 : index
    %c0_44 = arith.constant 0 : index
    %c0_45 = arith.constant 0 : index
    %72 = vector.load %arg20[%c0_43, %c0_44, %c0_45] : memref<4x1x32xf32, #tpu.memory_space<vmem>>, vector<1x1x32xf32>
    %73 = vector.shape_cast %72 : vector<1x1x32xf32> to vector<1x32xf32>
    %74 = vector.broadcast %73 : vector<1x32xf32> to vector<40x32xf32>
    %75 = arith.mulf %52, %74 : vector<40x32xf32>
    %76 = arith.truncf %75 : vector<40x32xf32> to vector<40x32xbf16>
    %cst_46 = arith.constant dense<0.000000e+00> : vector<40x40xf32>
    %77 = tpu.matmul %76, %69, %cst_46 {dimension_numbers = #tpu.dot_dimension_numbers<[1], [1], [0], [0], [0, 0, 1, 0], [], []>} : vector<40x32xbf16>, vector<40x32xbf16>, vector<40x40xf32> -> vector<40x40xf32>
    %78 = arith.addf %77, %28 : vector<40x40xf32>
    %cst_47 = arith.constant dense<0xFF800000> : vector<40xf32>
    %79 = vector.multi_reduction <maximumf>, %78, %cst_47 [1] : vector<40x40xf32> to vector<40xf32>
    %80 = vector.shape_cast %79 : vector<40xf32> to vector<40x1xf32>
    %81 = vector.broadcast %80 : vector<40x1xf32> to vector<40x40xf32>
    %82 = arith.subf %78, %81 : vector<40x40xf32>
    %83 = math.exp %82 : vector<40x40xf32>
    %cst_48 = arith.constant dense<0.000000e+00> : vector<40xf32>
    %84 = vector.multi_reduction <add>, %83, %cst_48 [1] : vector<40x40xf32> to vector<40xf32>
    %85 = vector.shape_cast %84 : vector<40xf32> to vector<40x1xf32>
    %86 = vector.broadcast %85 : vector<40x1xf32> to vector<40x40xf32>
    %87 = arith.divf %83, %86 : vector<40x40xf32>
    %88 = arith.truncf %87 : vector<40x40xf32> to vector<40x40xbf16>
    %cst_49 = arith.constant dense<0.000000e+00> : vector<40x32xf32>
    %89 = tpu.matmul %88, %70, %cst_49 {dimension_numbers = #tpu.dot_dimension_numbers<[1], [0], [0], [1], [0, 0, 1, 1], [], []>} : vector<40x40xbf16>, vector<40x32xbf16>, vector<40x32xf32> -> vector<40x32xf32>
    %90 = vector.broadcast %73 : vector<1x32xf32> to vector<40x32xf32>
    %91 = arith.mulf %89, %90 : vector<40x32xf32>
    %92 = arith.addf %71, %91 : vector<40x32xf32>
    %c1 = arith.constant 1 : index
    %c0_50 = arith.constant 0 : index
    %c0_51 = arith.constant 0 : index
    %93 = vector.load %arg20[%c1, %c0_50, %c0_51] : memref<4x1x32xf32, #tpu.memory_space<vmem>>, vector<1x1x32xf32>
    %94 = vector.shape_cast %93 : vector<1x1x32xf32> to vector<1x32xf32>
    %95 = vector.broadcast %94 : vector<1x32xf32> to vector<40x32xf32>
    %96 = arith.mulf %52, %95 : vector<40x32xf32>
    %97 = arith.truncf %96 : vector<40x32xf32> to vector<40x32xbf16>
    %cst_52 = arith.constant dense<0.000000e+00> : vector<40x40xf32>
    %98 = tpu.matmul %97, %69, %cst_52 {dimension_numbers = #tpu.dot_dimension_numbers<[1], [1], [0], [0], [0, 0, 1, 0], [], []>} : vector<40x32xbf16>, vector<40x32xbf16>, vector<40x40xf32> -> vector<40x40xf32>
    %99 = arith.addf %98, %28 : vector<40x40xf32>
    %cst_53 = arith.constant dense<0xFF800000> : vector<40xf32>
    %100 = vector.multi_reduction <maximumf>, %99, %cst_53 [1] : vector<40x40xf32> to vector<40xf32>
    %101 = vector.shape_cast %100 : vector<40xf32> to vector<40x1xf32>
    %102 = vector.broadcast %101 : vector<40x1xf32> to vector<40x40xf32>
    %103 = arith.subf %99, %102 : vector<40x40xf32>
    %104 = math.exp %103 : vector<40x40xf32>
    %cst_54 = arith.constant dense<0.000000e+00> : vector<40xf32>
    %105 = vector.multi_reduction <add>, %104, %cst_54 [1] : vector<40x40xf32> to vector<40xf32>
    %106 = vector.shape_cast %105 : vector<40xf32> to vector<40x1xf32>
    %107 = vector.broadcast %106 : vector<40x1xf32> to vector<40x40xf32>
    %108 = arith.divf %104, %107 : vector<40x40xf32>
    %109 = arith.truncf %108 : vector<40x40xf32> to vector<40x40xbf16>
    %cst_55 = arith.constant dense<0.000000e+00> : vector<40x32xf32>
    %110 = tpu.matmul %109, %70, %cst_55 {dimension_numbers = #tpu.dot_dimension_numbers<[1], [0], [0], [1], [0, 0, 1, 1], [], []>} : vector<40x40xbf16>, vector<40x32xbf16>, vector<40x32xf32> -> vector<40x32xf32>
    %111 = vector.broadcast %94 : vector<1x32xf32> to vector<40x32xf32>
    %112 = arith.mulf %110, %111 : vector<40x32xf32>
    %113 = arith.addf %92, %112 : vector<40x32xf32>
    %c2 = arith.constant 2 : index
    %c0_56 = arith.constant 0 : index
    %c0_57 = arith.constant 0 : index
    %114 = vector.load %arg20[%c2, %c0_56, %c0_57] : memref<4x1x32xf32, #tpu.memory_space<vmem>>, vector<1x1x32xf32>
    %115 = vector.shape_cast %114 : vector<1x1x32xf32> to vector<1x32xf32>
    %116 = vector.broadcast %115 : vector<1x32xf32> to vector<40x32xf32>
    %117 = arith.mulf %52, %116 : vector<40x32xf32>
    %118 = arith.truncf %117 : vector<40x32xf32> to vector<40x32xbf16>
    %cst_58 = arith.constant dense<0.000000e+00> : vector<40x40xf32>
    %119 = tpu.matmul %118, %69, %cst_58 {dimension_numbers = #tpu.dot_dimension_numbers<[1], [1], [0], [0], [0, 0, 1, 0], [], []>} : vector<40x32xbf16>, vector<40x32xbf16>, vector<40x40xf32> -> vector<40x40xf32>
    %120 = arith.addf %119, %28 : vector<40x40xf32>
    %cst_59 = arith.constant dense<0xFF800000> : vector<40xf32>
    %121 = vector.multi_reduction <maximumf>, %120, %cst_59 [1] : vector<40x40xf32> to vector<40xf32>
    %122 = vector.shape_cast %121 : vector<40xf32> to vector<40x1xf32>
    %123 = vector.broadcast %122 : vector<40x1xf32> to vector<40x40xf32>
    %124 = arith.subf %120, %123 : vector<40x40xf32>
    %125 = math.exp %124 : vector<40x40xf32>
    %cst_60 = arith.constant dense<0.000000e+00> : vector<40xf32>
    %126 = vector.multi_reduction <add>, %125, %cst_60 [1] : vector<40x40xf32> to vector<40xf32>
    %127 = vector.shape_cast %126 : vector<40xf32> to vector<40x1xf32>
    %128 = vector.broadcast %127 : vector<40x1xf32> to vector<40x40xf32>
    %129 = arith.divf %125, %128 : vector<40x40xf32>
    %130 = arith.truncf %129 : vector<40x40xf32> to vector<40x40xbf16>
    %cst_61 = arith.constant dense<0.000000e+00> : vector<40x32xf32>
    %131 = tpu.matmul %130, %70, %cst_61 {dimension_numbers = #tpu.dot_dimension_numbers<[1], [0], [0], [1], [0, 0, 1, 1], [], []>} : vector<40x40xbf16>, vector<40x32xbf16>, vector<40x32xf32> -> vector<40x32xf32>
    %132 = vector.broadcast %115 : vector<1x32xf32> to vector<40x32xf32>
    %133 = arith.mulf %131, %132 : vector<40x32xf32>
    %134 = arith.addf %113, %133 : vector<40x32xf32>
    %c3 = arith.constant 3 : index
    %c0_62 = arith.constant 0 : index
    %c0_63 = arith.constant 0 : index
    %135 = vector.load %arg20[%c3, %c0_62, %c0_63] : memref<4x1x32xf32, #tpu.memory_space<vmem>>, vector<1x1x32xf32>
    %136 = vector.shape_cast %135 : vector<1x1x32xf32> to vector<1x32xf32>
    %137 = vector.broadcast %136 : vector<1x32xf32> to vector<40x32xf32>
    %138 = arith.mulf %52, %137 : vector<40x32xf32>
    %139 = arith.truncf %138 : vector<40x32xf32> to vector<40x32xbf16>
    %cst_64 = arith.constant dense<0.000000e+00> : vector<40x40xf32>
    %140 = tpu.matmul %139, %69, %cst_64 {dimension_numbers = #tpu.dot_dimension_numbers<[1], [1], [0], [0], [0, 0, 1, 0], [], []>} : vector<40x32xbf16>, vector<40x32xbf16>, vector<40x40xf32> -> vector<40x40xf32>
    %141 = arith.addf %140, %28 : vector<40x40xf32>
    %cst_65 = arith.constant dense<0xFF800000> : vector<40xf32>
    %142 = vector.multi_reduction <maximumf>, %141, %cst_65 [1] : vector<40x40xf32> to vector<40xf32>
    %143 = vector.shape_cast %142 : vector<40xf32> to vector<40x1xf32>
    %144 = vector.broadcast %143 : vector<40x1xf32> to vector<40x40xf32>
    %145 = arith.subf %141, %144 : vector<40x40xf32>
    %146 = math.exp %145 : vector<40x40xf32>
    %cst_66 = arith.constant dense<0.000000e+00> : vector<40xf32>
    %147 = vector.multi_reduction <add>, %146, %cst_66 [1] : vector<40x40xf32> to vector<40xf32>
    %148 = vector.shape_cast %147 : vector<40xf32> to vector<40x1xf32>
    %149 = vector.broadcast %148 : vector<40x1xf32> to vector<40x40xf32>
    %150 = arith.divf %146, %149 : vector<40x40xf32>
    %151 = arith.truncf %150 : vector<40x40xf32> to vector<40x40xbf16>
    %cst_67 = arith.constant dense<0.000000e+00> : vector<40x32xf32>
    %152 = tpu.matmul %151, %70, %cst_67 {dimension_numbers = #tpu.dot_dimension_numbers<[1], [0], [0], [1], [0, 0, 1, 1], [], []>} : vector<40x40xbf16>, vector<40x32xbf16>, vector<40x32xf32> -> vector<40x32xf32>
    %153 = vector.broadcast %136 : vector<1x32xf32> to vector<40x32xf32>
    %154 = arith.mulf %152, %153 : vector<40x32xf32>
    %155 = arith.addf %134, %154 : vector<40x32xf32>
    %c0_68 = arith.constant 0 : index
    %c0_69 = arith.constant 0 : index
    %c0_70 = arith.constant 0 : index
    %156 = vector.load %arg12[%c0_68, %c0_69, %c0_70] : memref<2x32x32xbf16, #tpu.memory_space<vmem>>, vector<1x32x32xbf16>
    %157 = vector.shape_cast %156 : vector<1x32x32xbf16> to vector<32x32xbf16>
    %158 = arith.truncf %155 : vector<40x32xf32> to vector<40x32xbf16>
    %cst_71 = arith.constant dense<0.000000e+00> : vector<40x32xf32>
    %159 = tpu.matmul %158, %157, %cst_71 {dimension_numbers = #tpu.dot_dimension_numbers<[1], [0], [0], [1], [0, 0, 1, 1], [], []>} : vector<40x32xbf16>, vector<32x32xbf16>, vector<40x32xf32> -> vector<40x32xf32>
    %160 = arith.addf %27, %159 : vector<40x32xf32>
    %c0_72 = arith.constant 0 : index
    %c0_73 = arith.constant 0 : index
    %c0_74 = arith.constant 0 : index
    %161 = vector.load %arg13[%c0_72, %c0_73, %c0_74] : memref<2x1x32xf32, #tpu.memory_space<vmem>>, vector<1x1x32xf32>
    %162 = vector.shape_cast %161 : vector<1x1x32xf32> to vector<1x32xf32>
    %163 = vector.broadcast %162 : vector<1x32xf32> to vector<40x32xf32>
    %164 = arith.addf %160, %163 : vector<40x32xf32>
    %cst_75 = arith.constant dense<0.000000e+00> : vector<40xf32>
    %165 = vector.multi_reduction <add>, %164, %cst_75 [1] : vector<40x32xf32> to vector<40xf32>
    %166 = vector.shape_cast %165 : vector<40xf32> to vector<40x1xf32>
    %cst_76 = arith.constant 3.200000e+01 : f32
    %167 = vector.broadcast %cst_76 : f32 to vector<40x1xf32>
    %168 = arith.divf %166, %167 : vector<40x1xf32>
    %169 = vector.broadcast %168 : vector<40x1xf32> to vector<40x32xf32>
    %170 = arith.subf %164, %169 : vector<40x32xf32>
    %171 = arith.mulf %170, %170 : vector<40x32xf32>
    %cst_77 = arith.constant dense<0.000000e+00> : vector<40xf32>
    %172 = vector.multi_reduction <add>, %171, %cst_77 [1] : vector<40x32xf32> to vector<40xf32>
    %173 = vector.shape_cast %172 : vector<40xf32> to vector<40x1xf32>
    %cst_78 = arith.constant 3.200000e+01 : f32
    %174 = vector.broadcast %cst_78 : f32 to vector<40x1xf32>
    %175 = arith.divf %173, %174 : vector<40x1xf32>
    %cst_79 = arith.constant 9.99999974E-6 : f32
    %176 = vector.broadcast %cst_79 : f32 to vector<40x1xf32>
    %177 = arith.addf %175, %176 : vector<40x1xf32>
    %178 = math.rsqrt %177 : vector<40x1xf32>
    %179 = vector.broadcast %178 : vector<40x1xf32> to vector<40x32xf32>
    %180 = arith.mulf %170, %179 : vector<40x32xf32>
    %c0_80 = arith.constant 0 : index
    %c0_81 = arith.constant 0 : index
    %c0_82 = arith.constant 0 : index
    %181 = vector.load %arg14[%c0_80, %c0_81, %c0_82] : memref<2x32x128xbf16, #tpu.memory_space<vmem>>, vector<1x32x128xbf16>
    %182 = vector.shape_cast %181 : vector<1x32x128xbf16> to vector<32x128xbf16>
    %183 = arith.truncf %180 : vector<40x32xf32> to vector<40x32xbf16>
    %cst_83 = arith.constant dense<0.000000e+00> : vector<40x128xf32>
    %184 = tpu.matmul %183, %182, %cst_83 {dimension_numbers = #tpu.dot_dimension_numbers<[1], [0], [0], [1], [0, 0, 1, 1], [], []>} : vector<40x32xbf16>, vector<32x128xbf16>, vector<40x128xf32> -> vector<40x128xf32>
    %c0_84 = arith.constant 0 : index
    %c0_85 = arith.constant 0 : index
    %c0_86 = arith.constant 0 : index
    %185 = vector.load %arg15[%c0_84, %c0_85, %c0_86] : memref<2x1x128xf32, #tpu.memory_space<vmem>>, vector<1x1x128xf32>
    %186 = vector.shape_cast %185 : vector<1x1x128xf32> to vector<1x128xf32>
    %187 = vector.broadcast %186 : vector<1x128xf32> to vector<40x128xf32>
    %188 = arith.addf %184, %187 : vector<40x128xf32>
    %cst_87 = arith.constant 1.702000e+00 : f32
    %189 = vector.broadcast %cst_87 : f32 to vector<40x128xf32>
    %190 = arith.mulf %189, %188 : vector<40x128xf32>
    %191 = arith.negf %190 : vector<40x128xf32>
    %192 = math.exp %191 : vector<40x128xf32>
    %cst_88 = arith.constant 1.000000e+00 : f32
    %193 = vector.broadcast %cst_88 : f32 to vector<40x128xf32>
    %194 = arith.addf %193, %192 : vector<40x128xf32>
    %195 = arith.divf %193, %194 : vector<40x128xf32>
    %196 = arith.mulf %188, %195 : vector<40x128xf32>
    %c0_89 = arith.constant 0 : index
    %c0_90 = arith.constant 0 : index
    %c0_91 = arith.constant 0 : index
    %197 = vector.load %arg16[%c0_89, %c0_90, %c0_91] : memref<2x128x32xbf16, #tpu.memory_space<vmem>>, vector<1x128x32xbf16>
    %198 = vector.shape_cast %197 : vector<1x128x32xbf16> to vector<128x32xbf16>
    %199 = arith.truncf %196 : vector<40x128xf32> to vector<40x128xbf16>
    %cst_92 = arith.constant dense<0.000000e+00> : vector<40x32xf32>
    %200 = tpu.matmul %199, %198, %cst_92 {dimension_numbers = #tpu.dot_dimension_numbers<[1], [0], [0], [1], [0, 0, 1, 1], [], []>} : vector<40x128xbf16>, vector<128x32xbf16>, vector<40x32xf32> -> vector<40x32xf32>
    %201 = arith.addf %164, %200 : vector<40x32xf32>
    %c0_93 = arith.constant 0 : index
    %c0_94 = arith.constant 0 : index
    %c0_95 = arith.constant 0 : index
    %202 = vector.load %arg17[%c0_93, %c0_94, %c0_95] : memref<2x1x32xf32, #tpu.memory_space<vmem>>, vector<1x1x32xf32>
    %203 = vector.shape_cast %202 : vector<1x1x32xf32> to vector<1x32xf32>
    %204 = vector.broadcast %203 : vector<1x32xf32> to vector<40x32xf32>
    %205 = arith.addf %201, %204 : vector<40x32xf32>
    %cst_96 = arith.constant dense<0.000000e+00> : vector<40xf32>
    %206 = vector.multi_reduction <add>, %205, %cst_96 [1] : vector<40x32xf32> to vector<40xf32>
    %207 = vector.shape_cast %206 : vector<40xf32> to vector<40x1xf32>
    %cst_97 = arith.constant 3.200000e+01 : f32
    %208 = vector.broadcast %cst_97 : f32 to vector<40x1xf32>
    %209 = arith.divf %207, %208 : vector<40x1xf32>
    %210 = vector.broadcast %209 : vector<40x1xf32> to vector<40x32xf32>
    %211 = arith.subf %205, %210 : vector<40x32xf32>
    %212 = arith.mulf %211, %211 : vector<40x32xf32>
    %cst_98 = arith.constant dense<0.000000e+00> : vector<40xf32>
    %213 = vector.multi_reduction <add>, %212, %cst_98 [1] : vector<40x32xf32> to vector<40xf32>
    %214 = vector.shape_cast %213 : vector<40xf32> to vector<40x1xf32>
    %cst_99 = arith.constant 3.200000e+01 : f32
    %215 = vector.broadcast %cst_99 : f32 to vector<40x1xf32>
    %216 = arith.divf %214, %215 : vector<40x1xf32>
    %cst_100 = arith.constant 9.99999974E-6 : f32
    %217 = vector.broadcast %cst_100 : f32 to vector<40x1xf32>
    %218 = arith.addf %216, %217 : vector<40x1xf32>
    %219 = math.rsqrt %218 : vector<40x1xf32>
    %220 = vector.broadcast %219 : vector<40x1xf32> to vector<40x32xf32>
    %221 = arith.mulf %211, %220 : vector<40x32xf32>
    %c1_101 = arith.constant 1 : index
    %c0_102 = arith.constant 0 : index
    %c0_103 = arith.constant 0 : index
    %222 = vector.load %arg6[%c1_101, %c0_102, %c0_103] : memref<2x32x32xbf16, #tpu.memory_space<vmem>>, vector<1x32x32xbf16>
    %223 = vector.shape_cast %222 : vector<1x32x32xbf16> to vector<32x32xbf16>
    %224 = arith.truncf %221 : vector<40x32xf32> to vector<40x32xbf16>
    %cst_104 = arith.constant dense<0.000000e+00> : vector<40x32xf32>
    %225 = tpu.matmul %224, %223, %cst_104 {dimension_numbers = #tpu.dot_dimension_numbers<[1], [0], [0], [1], [0, 0, 1, 1], [], []>} : vector<40x32xbf16>, vector<32x32xbf16>, vector<40x32xf32> -> vector<40x32xf32>
    %c1_105 = arith.constant 1 : index
    %c0_106 = arith.constant 0 : index
    %c0_107 = arith.constant 0 : index
    %226 = vector.load %arg7[%c1_105, %c0_106, %c0_107] : memref<2x1x32xf32, #tpu.memory_space<vmem>>, vector<1x1x32xf32>
    %227 = vector.shape_cast %226 : vector<1x1x32xf32> to vector<1x32xf32>
    %228 = vector.broadcast %227 : vector<1x32xf32> to vector<40x32xf32>
    %229 = arith.addf %225, %228 : vector<40x32xf32>
    %c1_108 = arith.constant 1 : index
    %c0_109 = arith.constant 0 : index
    %c0_110 = arith.constant 0 : index
    %230 = vector.load %arg8[%c1_108, %c0_109, %c0_110] : memref<2x32x32xbf16, #tpu.memory_space<vmem>>, vector<1x32x32xbf16>
    %231 = vector.shape_cast %230 : vector<1x32x32xbf16> to vector<32x32xbf16>
    %232 = arith.truncf %221 : vector<40x32xf32> to vector<40x32xbf16>
    %cst_111 = arith.constant dense<0.000000e+00> : vector<40x32xf32>
    %233 = tpu.matmul %232, %231, %cst_111 {dimension_numbers = #tpu.dot_dimension_numbers<[1], [0], [0], [1], [0, 0, 1, 1], [], []>} : vector<40x32xbf16>, vector<32x32xbf16>, vector<40x32xf32> -> vector<40x32xf32>
    %c1_112 = arith.constant 1 : index
    %c0_113 = arith.constant 0 : index
    %c0_114 = arith.constant 0 : index
    %234 = vector.load %arg9[%c1_112, %c0_113, %c0_114] : memref<2x1x32xf32, #tpu.memory_space<vmem>>, vector<1x1x32xf32>
    %235 = vector.shape_cast %234 : vector<1x1x32xf32> to vector<1x32xf32>
    %236 = vector.broadcast %235 : vector<1x32xf32> to vector<40x32xf32>
    %237 = arith.addf %233, %236 : vector<40x32xf32>
    %c1_115 = arith.constant 1 : index
    %c0_116 = arith.constant 0 : index
    %c0_117 = arith.constant 0 : index
    %238 = vector.load %arg10[%c1_115, %c0_116, %c0_117] : memref<2x32x32xbf16, #tpu.memory_space<vmem>>, vector<1x32x32xbf16>
    %239 = vector.shape_cast %238 : vector<1x32x32xbf16> to vector<32x32xbf16>
    %240 = arith.truncf %221 : vector<40x32xf32> to vector<40x32xbf16>
    %cst_118 = arith.constant dense<0.000000e+00> : vector<40x32xf32>
    %241 = tpu.matmul %240, %239, %cst_118 {dimension_numbers = #tpu.dot_dimension_numbers<[1], [0], [0], [1], [0, 0, 1, 1], [], []>} : vector<40x32xbf16>, vector<32x32xbf16>, vector<40x32xf32> -> vector<40x32xf32>
    %c1_119 = arith.constant 1 : index
    %c0_120 = arith.constant 0 : index
    %c0_121 = arith.constant 0 : index
    %242 = vector.load %arg11[%c1_119, %c0_120, %c0_121] : memref<2x1x32xf32, #tpu.memory_space<vmem>>, vector<1x1x32xf32>
    %243 = vector.shape_cast %242 : vector<1x1x32xf32> to vector<1x32xf32>
    %244 = vector.broadcast %243 : vector<1x32xf32> to vector<40x32xf32>
    %245 = arith.addf %241, %244 : vector<40x32xf32>
    %246 = arith.truncf %237 : vector<40x32xf32> to vector<40x32xbf16>
    %247 = arith.truncf %245 : vector<40x32xf32> to vector<40x32xbf16>
    %cst_122 = arith.constant 0.000000e+00 : f32
    %248 = vector.broadcast %cst_122 : f32 to vector<40x32xf32>
    %c0_123 = arith.constant 0 : index
    %c0_124 = arith.constant 0 : index
    %c0_125 = arith.constant 0 : index
    %249 = vector.load %arg20[%c0_123, %c0_124, %c0_125] : memref<4x1x32xf32, #tpu.memory_space<vmem>>, vector<1x1x32xf32>
    %250 = vector.shape_cast %249 : vector<1x1x32xf32> to vector<1x32xf32>
    %251 = vector.broadcast %250 : vector<1x32xf32> to vector<40x32xf32>
    %252 = arith.mulf %229, %251 : vector<40x32xf32>
    %253 = arith.truncf %252 : vector<40x32xf32> to vector<40x32xbf16>
    %cst_126 = arith.constant dense<0.000000e+00> : vector<40x40xf32>
    %254 = tpu.matmul %253, %246, %cst_126 {dimension_numbers = #tpu.dot_dimension_numbers<[1], [1], [0], [0], [0, 0, 1, 0], [], []>} : vector<40x32xbf16>, vector<40x32xbf16>, vector<40x40xf32> -> vector<40x40xf32>
    %255 = arith.addf %254, %28 : vector<40x40xf32>
    %cst_127 = arith.constant dense<0xFF800000> : vector<40xf32>
    %256 = vector.multi_reduction <maximumf>, %255, %cst_127 [1] : vector<40x40xf32> to vector<40xf32>
    %257 = vector.shape_cast %256 : vector<40xf32> to vector<40x1xf32>
    %258 = vector.broadcast %257 : vector<40x1xf32> to vector<40x40xf32>
    %259 = arith.subf %255, %258 : vector<40x40xf32>
    %260 = math.exp %259 : vector<40x40xf32>
    %cst_128 = arith.constant dense<0.000000e+00> : vector<40xf32>
    %261 = vector.multi_reduction <add>, %260, %cst_128 [1] : vector<40x40xf32> to vector<40xf32>
    %262 = vector.shape_cast %261 : vector<40xf32> to vector<40x1xf32>
    %263 = vector.broadcast %262 : vector<40x1xf32> to vector<40x40xf32>
    %264 = arith.divf %260, %263 : vector<40x40xf32>
    %265 = arith.truncf %264 : vector<40x40xf32> to vector<40x40xbf16>
    %cst_129 = arith.constant dense<0.000000e+00> : vector<40x32xf32>
    %266 = tpu.matmul %265, %247, %cst_129 {dimension_numbers = #tpu.dot_dimension_numbers<[1], [0], [0], [1], [0, 0, 1, 1], [], []>} : vector<40x40xbf16>, vector<40x32xbf16>, vector<40x32xf32> -> vector<40x32xf32>
    %267 = vector.broadcast %250 : vector<1x32xf32> to vector<40x32xf32>
    %268 = arith.mulf %266, %267 : vector<40x32xf32>
    %269 = arith.addf %248, %268 : vector<40x32xf32>
    %c1_130 = arith.constant 1 : index
    %c0_131 = arith.constant 0 : index
    %c0_132 = arith.constant 0 : index
    %270 = vector.load %arg20[%c1_130, %c0_131, %c0_132] : memref<4x1x32xf32, #tpu.memory_space<vmem>>, vector<1x1x32xf32>
    %271 = vector.shape_cast %270 : vector<1x1x32xf32> to vector<1x32xf32>
    %272 = vector.broadcast %271 : vector<1x32xf32> to vector<40x32xf32>
    %273 = arith.mulf %229, %272 : vector<40x32xf32>
    %274 = arith.truncf %273 : vector<40x32xf32> to vector<40x32xbf16>
    %cst_133 = arith.constant dense<0.000000e+00> : vector<40x40xf32>
    %275 = tpu.matmul %274, %246, %cst_133 {dimension_numbers = #tpu.dot_dimension_numbers<[1], [1], [0], [0], [0, 0, 1, 0], [], []>} : vector<40x32xbf16>, vector<40x32xbf16>, vector<40x40xf32> -> vector<40x40xf32>
    %276 = arith.addf %275, %28 : vector<40x40xf32>
    %cst_134 = arith.constant dense<0xFF800000> : vector<40xf32>
    %277 = vector.multi_reduction <maximumf>, %276, %cst_134 [1] : vector<40x40xf32> to vector<40xf32>
    %278 = vector.shape_cast %277 : vector<40xf32> to vector<40x1xf32>
    %279 = vector.broadcast %278 : vector<40x1xf32> to vector<40x40xf32>
    %280 = arith.subf %276, %279 : vector<40x40xf32>
    %281 = math.exp %280 : vector<40x40xf32>
    %cst_135 = arith.constant dense<0.000000e+00> : vector<40xf32>
    %282 = vector.multi_reduction <add>, %281, %cst_135 [1] : vector<40x40xf32> to vector<40xf32>
    %283 = vector.shape_cast %282 : vector<40xf32> to vector<40x1xf32>
    %284 = vector.broadcast %283 : vector<40x1xf32> to vector<40x40xf32>
    %285 = arith.divf %281, %284 : vector<40x40xf32>
    %286 = arith.truncf %285 : vector<40x40xf32> to vector<40x40xbf16>
    %cst_136 = arith.constant dense<0.000000e+00> : vector<40x32xf32>
    %287 = tpu.matmul %286, %247, %cst_136 {dimension_numbers = #tpu.dot_dimension_numbers<[1], [0], [0], [1], [0, 0, 1, 1], [], []>} : vector<40x40xbf16>, vector<40x32xbf16>, vector<40x32xf32> -> vector<40x32xf32>
    %288 = vector.broadcast %271 : vector<1x32xf32> to vector<40x32xf32>
    %289 = arith.mulf %287, %288 : vector<40x32xf32>
    %290 = arith.addf %269, %289 : vector<40x32xf32>
    %c2_137 = arith.constant 2 : index
    %c0_138 = arith.constant 0 : index
    %c0_139 = arith.constant 0 : index
    %291 = vector.load %arg20[%c2_137, %c0_138, %c0_139] : memref<4x1x32xf32, #tpu.memory_space<vmem>>, vector<1x1x32xf32>
    %292 = vector.shape_cast %291 : vector<1x1x32xf32> to vector<1x32xf32>
    %293 = vector.broadcast %292 : vector<1x32xf32> to vector<40x32xf32>
    %294 = arith.mulf %229, %293 : vector<40x32xf32>
    %295 = arith.truncf %294 : vector<40x32xf32> to vector<40x32xbf16>
    %cst_140 = arith.constant dense<0.000000e+00> : vector<40x40xf32>
    %296 = tpu.matmul %295, %246, %cst_140 {dimension_numbers = #tpu.dot_dimension_numbers<[1], [1], [0], [0], [0, 0, 1, 0], [], []>} : vector<40x32xbf16>, vector<40x32xbf16>, vector<40x40xf32> -> vector<40x40xf32>
    %297 = arith.addf %296, %28 : vector<40x40xf32>
    %cst_141 = arith.constant dense<0xFF800000> : vector<40xf32>
    %298 = vector.multi_reduction <maximumf>, %297, %cst_141 [1] : vector<40x40xf32> to vector<40xf32>
    %299 = vector.shape_cast %298 : vector<40xf32> to vector<40x1xf32>
    %300 = vector.broadcast %299 : vector<40x1xf32> to vector<40x40xf32>
    %301 = arith.subf %297, %300 : vector<40x40xf32>
    %302 = math.exp %301 : vector<40x40xf32>
    %cst_142 = arith.constant dense<0.000000e+00> : vector<40xf32>
    %303 = vector.multi_reduction <add>, %302, %cst_142 [1] : vector<40x40xf32> to vector<40xf32>
    %304 = vector.shape_cast %303 : vector<40xf32> to vector<40x1xf32>
    %305 = vector.broadcast %304 : vector<40x1xf32> to vector<40x40xf32>
    %306 = arith.divf %302, %305 : vector<40x40xf32>
    %307 = arith.truncf %306 : vector<40x40xf32> to vector<40x40xbf16>
    %cst_143 = arith.constant dense<0.000000e+00> : vector<40x32xf32>
    %308 = tpu.matmul %307, %247, %cst_143 {dimension_numbers = #tpu.dot_dimension_numbers<[1], [0], [0], [1], [0, 0, 1, 1], [], []>} : vector<40x40xbf16>, vector<40x32xbf16>, vector<40x32xf32> -> vector<40x32xf32>
    %309 = vector.broadcast %292 : vector<1x32xf32> to vector<40x32xf32>
    %310 = arith.mulf %308, %309 : vector<40x32xf32>
    %311 = arith.addf %290, %310 : vector<40x32xf32>
    %c3_144 = arith.constant 3 : index
    %c0_145 = arith.constant 0 : index
    %c0_146 = arith.constant 0 : index
    %312 = vector.load %arg20[%c3_144, %c0_145, %c0_146] : memref<4x1x32xf32, #tpu.memory_space<vmem>>, vector<1x1x32xf32>
    %313 = vector.shape_cast %312 : vector<1x1x32xf32> to vector<1x32xf32>
    %314 = vector.broadcast %313 : vector<1x32xf32> to vector<40x32xf32>
    %315 = arith.mulf %229, %314 : vector<40x32xf32>
    %316 = arith.truncf %315 : vector<40x32xf32> to vector<40x32xbf16>
    %cst_147 = arith.constant dense<0.000000e+00> : vector<40x40xf32>
    %317 = tpu.matmul %316, %246, %cst_147 {dimension_numbers = #tpu.dot_dimension_numbers<[1], [1], [0], [0], [0, 0, 1, 0], [], []>} : vector<40x32xbf16>, vector<40x32xbf16>, vector<40x40xf32> -> vector<40x40xf32>
    %318 = arith.addf %317, %28 : vector<40x40xf32>
    %cst_148 = arith.constant dense<0xFF800000> : vector<40xf32>
    %319 = vector.multi_reduction <maximumf>, %318, %cst_148 [1] : vector<40x40xf32> to vector<40xf32>
    %320 = vector.shape_cast %319 : vector<40xf32> to vector<40x1xf32>
    %321 = vector.broadcast %320 : vector<40x1xf32> to vector<40x40xf32>
    %322 = arith.subf %318, %321 : vector<40x40xf32>
    %323 = math.exp %322 : vector<40x40xf32>
    %cst_149 = arith.constant dense<0.000000e+00> : vector<40xf32>
    %324 = vector.multi_reduction <add>, %323, %cst_149 [1] : vector<40x40xf32> to vector<40xf32>
    %325 = vector.shape_cast %324 : vector<40xf32> to vector<40x1xf32>
    %326 = vector.broadcast %325 : vector<40x1xf32> to vector<40x40xf32>
    %327 = arith.divf %323, %326 : vector<40x40xf32>
    %328 = arith.truncf %327 : vector<40x40xf32> to vector<40x40xbf16>
    %cst_150 = arith.constant dense<0.000000e+00> : vector<40x32xf32>
    %329 = tpu.matmul %328, %247, %cst_150 {dimension_numbers = #tpu.dot_dimension_numbers<[1], [0], [0], [1], [0, 0, 1, 1], [], []>} : vector<40x40xbf16>, vector<40x32xbf16>, vector<40x32xf32> -> vector<40x32xf32>
    %330 = vector.broadcast %313 : vector<1x32xf32> to vector<40x32xf32>
    %331 = arith.mulf %329, %330 : vector<40x32xf32>
    %332 = arith.addf %311, %331 : vector<40x32xf32>
    %c1_151 = arith.constant 1 : index
    %c0_152 = arith.constant 0 : index
    %c0_153 = arith.constant 0 : index
    %333 = vector.load %arg12[%c1_151, %c0_152, %c0_153] : memref<2x32x32xbf16, #tpu.memory_space<vmem>>, vector<1x32x32xbf16>
    %334 = vector.shape_cast %333 : vector<1x32x32xbf16> to vector<32x32xbf16>
    %335 = arith.truncf %332 : vector<40x32xf32> to vector<40x32xbf16>
    %cst_154 = arith.constant dense<0.000000e+00> : vector<40x32xf32>
    %336 = tpu.matmul %335, %334, %cst_154 {dimension_numbers = #tpu.dot_dimension_numbers<[1], [0], [0], [1], [0, 0, 1, 1], [], []>} : vector<40x32xbf16>, vector<32x32xbf16>, vector<40x32xf32> -> vector<40x32xf32>
    %337 = arith.addf %205, %336 : vector<40x32xf32>
    %c1_155 = arith.constant 1 : index
    %c0_156 = arith.constant 0 : index
    %c0_157 = arith.constant 0 : index
    %338 = vector.load %arg13[%c1_155, %c0_156, %c0_157] : memref<2x1x32xf32, #tpu.memory_space<vmem>>, vector<1x1x32xf32>
    %339 = vector.shape_cast %338 : vector<1x1x32xf32> to vector<1x32xf32>
    %340 = vector.broadcast %339 : vector<1x32xf32> to vector<40x32xf32>
    %341 = arith.addf %337, %340 : vector<40x32xf32>
    %cst_158 = arith.constant dense<0.000000e+00> : vector<40xf32>
    %342 = vector.multi_reduction <add>, %341, %cst_158 [1] : vector<40x32xf32> to vector<40xf32>
    %343 = vector.shape_cast %342 : vector<40xf32> to vector<40x1xf32>
    %cst_159 = arith.constant 3.200000e+01 : f32
    %344 = vector.broadcast %cst_159 : f32 to vector<40x1xf32>
    %345 = arith.divf %343, %344 : vector<40x1xf32>
    %346 = vector.broadcast %345 : vector<40x1xf32> to vector<40x32xf32>
    %347 = arith.subf %341, %346 : vector<40x32xf32>
    %348 = arith.mulf %347, %347 : vector<40x32xf32>
    %cst_160 = arith.constant dense<0.000000e+00> : vector<40xf32>
    %349 = vector.multi_reduction <add>, %348, %cst_160 [1] : vector<40x32xf32> to vector<40xf32>
    %350 = vector.shape_cast %349 : vector<40xf32> to vector<40x1xf32>
    %cst_161 = arith.constant 3.200000e+01 : f32
    %351 = vector.broadcast %cst_161 : f32 to vector<40x1xf32>
    %352 = arith.divf %350, %351 : vector<40x1xf32>
    %cst_162 = arith.constant 9.99999974E-6 : f32
    %353 = vector.broadcast %cst_162 : f32 to vector<40x1xf32>
    %354 = arith.addf %352, %353 : vector<40x1xf32>
    %355 = math.rsqrt %354 : vector<40x1xf32>
    %356 = vector.broadcast %355 : vector<40x1xf32> to vector<40x32xf32>
    %357 = arith.mulf %347, %356 : vector<40x32xf32>
    %c1_163 = arith.constant 1 : index
    %c0_164 = arith.constant 0 : index
    %c0_165 = arith.constant 0 : index
    %358 = vector.load %arg14[%c1_163, %c0_164, %c0_165] : memref<2x32x128xbf16, #tpu.memory_space<vmem>>, vector<1x32x128xbf16>
    %359 = vector.shape_cast %358 : vector<1x32x128xbf16> to vector<32x128xbf16>
    %360 = arith.truncf %357 : vector<40x32xf32> to vector<40x32xbf16>
    %cst_166 = arith.constant dense<0.000000e+00> : vector<40x128xf32>
    %361 = tpu.matmul %360, %359, %cst_166 {dimension_numbers = #tpu.dot_dimension_numbers<[1], [0], [0], [1], [0, 0, 1, 1], [], []>} : vector<40x32xbf16>, vector<32x128xbf16>, vector<40x128xf32> -> vector<40x128xf32>
    %c1_167 = arith.constant 1 : index
    %c0_168 = arith.constant 0 : index
    %c0_169 = arith.constant 0 : index
    %362 = vector.load %arg15[%c1_167, %c0_168, %c0_169] : memref<2x1x128xf32, #tpu.memory_space<vmem>>, vector<1x1x128xf32>
    %363 = vector.shape_cast %362 : vector<1x1x128xf32> to vector<1x128xf32>
    %364 = vector.broadcast %363 : vector<1x128xf32> to vector<40x128xf32>
    %365 = arith.addf %361, %364 : vector<40x128xf32>
    %cst_170 = arith.constant 1.702000e+00 : f32
    %366 = vector.broadcast %cst_170 : f32 to vector<40x128xf32>
    %367 = arith.mulf %366, %365 : vector<40x128xf32>
    %368 = arith.negf %367 : vector<40x128xf32>
    %369 = math.exp %368 : vector<40x128xf32>
    %cst_171 = arith.constant 1.000000e+00 : f32
    %370 = vector.broadcast %cst_171 : f32 to vector<40x128xf32>
    %371 = arith.addf %370, %369 : vector<40x128xf32>
    %372 = arith.divf %370, %371 : vector<40x128xf32>
    %373 = arith.mulf %365, %372 : vector<40x128xf32>
    %c1_172 = arith.constant 1 : index
    %c0_173 = arith.constant 0 : index
    %c0_174 = arith.constant 0 : index
    %374 = vector.load %arg16[%c1_172, %c0_173, %c0_174] : memref<2x128x32xbf16, #tpu.memory_space<vmem>>, vector<1x128x32xbf16>
    %375 = vector.shape_cast %374 : vector<1x128x32xbf16> to vector<128x32xbf16>
    %376 = arith.truncf %373 : vector<40x128xf32> to vector<40x128xbf16>
    %cst_175 = arith.constant dense<0.000000e+00> : vector<40x32xf32>
    %377 = tpu.matmul %376, %375, %cst_175 {dimension_numbers = #tpu.dot_dimension_numbers<[1], [0], [0], [1], [0, 0, 1, 1], [], []>} : vector<40x128xbf16>, vector<128x32xbf16>, vector<40x32xf32> -> vector<40x32xf32>
    %378 = arith.addf %341, %377 : vector<40x32xf32>
    %c1_176 = arith.constant 1 : index
    %c0_177 = arith.constant 0 : index
    %c0_178 = arith.constant 0 : index
    %379 = vector.load %arg17[%c1_176, %c0_177, %c0_178] : memref<2x1x32xf32, #tpu.memory_space<vmem>>, vector<1x1x32xf32>
    %380 = vector.shape_cast %379 : vector<1x1x32xf32> to vector<1x32xf32>
    %381 = vector.broadcast %380 : vector<1x32xf32> to vector<40x32xf32>
    %382 = arith.addf %378, %381 : vector<40x32xf32>
    %383 = vector.extract_strided_slice %382 {offsets = [0, 0], sizes = [8, 32], strides = [1, 1]} : vector<40x32xf32> to vector<8x32xf32>
    %cst_179 = arith.constant dense<0.000000e+00> : vector<8xf32>
    %384 = vector.multi_reduction <add>, %383, %cst_179 [1] : vector<8x32xf32> to vector<8xf32>
    %385 = vector.shape_cast %384 : vector<8xf32> to vector<8x1xf32>
    %cst_180 = arith.constant 3.200000e+01 : f32
    %386 = vector.broadcast %cst_180 : f32 to vector<8x1xf32>
    %387 = arith.divf %385, %386 : vector<8x1xf32>
    %388 = vector.broadcast %387 : vector<8x1xf32> to vector<8x32xf32>
    %389 = arith.subf %383, %388 : vector<8x32xf32>
    %390 = arith.mulf %389, %389 : vector<8x32xf32>
    %cst_181 = arith.constant dense<0.000000e+00> : vector<8xf32>
    %391 = vector.multi_reduction <add>, %390, %cst_181 [1] : vector<8x32xf32> to vector<8xf32>
    %392 = vector.shape_cast %391 : vector<8xf32> to vector<8x1xf32>
    %cst_182 = arith.constant 3.200000e+01 : f32
    %393 = vector.broadcast %cst_182 : f32 to vector<8x1xf32>
    %394 = arith.divf %392, %393 : vector<8x1xf32>
    %cst_183 = arith.constant 9.99999974E-6 : f32
    %395 = vector.broadcast %cst_183 : f32 to vector<8x1xf32>
    %396 = arith.addf %394, %395 : vector<8x1xf32>
    %397 = math.rsqrt %396 : vector<8x1xf32>
    %398 = vector.broadcast %397 : vector<8x1xf32> to vector<8x32xf32>
    %399 = arith.mulf %389, %398 : vector<8x32xf32>
    %c0_184 = arith.constant 0 : index
    %c0_185 = arith.constant 0 : index
    %400 = vector.load %arg18[%c0_184, %c0_185] : memref<32x128xbf16, #tpu.memory_space<vmem>>, vector<32x128xbf16>
    %401 = arith.truncf %399 : vector<8x32xf32> to vector<8x32xbf16>
    %cst_186 = arith.constant dense<0.000000e+00> : vector<8x128xf32>
    %402 = tpu.matmul %401, %400, %cst_186 {dimension_numbers = #tpu.dot_dimension_numbers<[1], [0], [0], [1], [0, 0, 1, 1], [], []>} : vector<8x32xbf16>, vector<32x128xbf16>, vector<8x128xf32> -> vector<8x128xf32>
    %c0_187 = arith.constant 0 : index
    %c0_188 = arith.constant 0 : index
    %403 = vector.load %arg19[%c0_187, %c0_188] : memref<1x128xf32, #tpu.memory_space<vmem>>, vector<1x128xf32>
    %404 = vector.broadcast %403 : vector<1x128xf32> to vector<8x128xf32>
    %405 = arith.addf %402, %404 : vector<8x128xf32>
    %c0_189 = arith.constant 0 : index
    %c0_190 = arith.constant 0 : index
    %406 = vector.load %arg22[%c0_189, %c0_190] : memref<8x128xf32, #tpu.memory_space<vmem>>, vector<8x128xf32>
    tpu.vector_store %arg22[%c0_189, %c0_190], %405 {strides = array<i32>} : memref<8x128xf32, #tpu.memory_space<vmem>>, vector<8x128xf32>,
    return
  }
  func.func @transform_0(%arg0: i32) -> (i32, i32) {
    %c0_i32 = arith.constant 0 : i32
    %c0_i32_0 = arith.constant 0 : i32
    return %arg0, %c0_i32 : i32, i32
  }
  func.func @transform_1(%arg0: i32) -> (i32, i32) {
    %c0_i32 = arith.constant 0 : i32
    %c0_i32_0 = arith.constant 0 : i32
    %c0_i32_1 = arith.constant 0 : i32
    return %c0_i32, %c0_i32_0 : i32, i32
  }
  func.func @transform_2(%arg0: i32) -> (i32, i32) {
    %c0_i32 = arith.constant 0 : i32
    %c0_i32_0 = arith.constant 0 : i32
    %c0_i32_1 = arith.constant 0 : i32
    return %c0_i32, %c0_i32_0 : i32, i32
  }
  func.func @transform_3(%arg0: i32) -> (i32, i32) {
    %c0_i32 = arith.constant 0 : i32
    %c0_i32_0 = arith.constant 0 : i32
    %c0_i32_1 = arith.constant 0 : i32
    return %c0_i32, %c0_i32_0 : i32, i32
  }
  func.func @transform_4(%arg0: i32) -> (i32, i32) {
    %c0_i32 = arith.constant 0 : i32
    %c0_i32_0 = arith.constant 0 : i32
    %c0_i32_1 = arith.constant 0 : i32
    return %c0_i32, %c0_i32_0 : i32, i32
  }
  func.func @transform_5(%arg0: i32) -> (i32, i32, i32) {
    %c0_i32 = arith.constant 0 : i32
    %c0_i32_0 = arith.constant 0 : i32
    %c0_i32_1 = arith.constant 0 : i32
    %c0_i32_2 = arith.constant 0 : i32
    return %c0_i32, %c0_i32_0, %c0_i32_1 : i32, i32, i32
  }
  func.func @transform_6(%arg0: i32) -> (i32, i32, i32) {
    %c0_i32 = arith.constant 0 : i32
    %c0_i32_0 = arith.constant 0 : i32
    %c0_i32_1 = arith.constant 0 : i32
    %c0_i32_2 = arith.constant 0 : i32
    return %c0_i32, %c0_i32_0, %c0_i32_1 : i32, i32, i32
  }
  func.func @transform_7(%arg0: i32) -> (i32, i32, i32) {
    %c0_i32 = arith.constant 0 : i32
    %c0_i32_0 = arith.constant 0 : i32
    %c0_i32_1 = arith.constant 0 : i32
    %c0_i32_2 = arith.constant 0 : i32
    return %c0_i32, %c0_i32_0, %c0_i32_1 : i32, i32, i32
  }
  func.func @transform_8(%arg0: i32) -> (i32, i32, i32) {
    %c0_i32 = arith.constant 0 : i32
    %c0_i32_0 = arith.constant 0 : i32
    %c0_i32_1 = arith.constant 0 : i32
    %c0_i32_2 = arith.constant 0 : i32
    return %c0_i32, %c0_i32_0, %c0_i32_1 : i32, i32, i32
  }
  func.func @transform_9(%arg0: i32) -> (i32, i32, i32) {
    %c0_i32 = arith.constant 0 : i32
    %c0_i32_0 = arith.constant 0 : i32
    %c0_i32_1 = arith.constant 0 : i32
    %c0_i32_2 = arith.constant 0 : i32
    return %c0_i32, %c0_i32_0, %c0_i32_1 : i32, i32, i32
  }
  func.func @transform_10(%arg0: i32) -> (i32, i32, i32) {
    %c0_i32 = arith.constant 0 : i32
    %c0_i32_0 = arith.constant 0 : i32
    %c0_i32_1 = arith.constant 0 : i32
    %c0_i32_2 = arith.constant 0 : i32
    return %c0_i32, %c0_i32_0, %c0_i32_1 : i32, i32, i32
  }
  func.func @transform_11(%arg0: i32) -> (i32, i32, i32) {
    %c0_i32 = arith.constant 0 : i32
    %c0_i32_0 = arith.constant 0 : i32
    %c0_i32_1 = arith.constant 0 : i32
    %c0_i32_2 = arith.constant 0 : i32
    return %c0_i32, %c0_i32_0, %c0_i32_1 : i32, i32, i32
  }
  func.func @transform_12(%arg0: i32) -> (i32, i32, i32) {
    %c0_i32 = arith.constant 0 : i32
    %c0_i32_0 = arith.constant 0 : i32
    %c0_i32_1 = arith.constant 0 : i32
    %c0_i32_2 = arith.constant 0 : i32
    return %c0_i32, %c0_i32_0, %c0_i32_1 : i32, i32, i32
  }
  func.func @transform_13(%arg0: i32) -> (i32, i32, i32) {
    %c0_i32 = arith.constant 0 : i32
    %c0_i32_0 = arith.constant 0 : i32
    %c0_i32_1 = arith.constant 0 : i32
    %c0_i32_2 = arith.constant 0 : i32
    return %c0_i32, %c0_i32_0, %c0_i32_1 : i32, i32, i32
  }
  func.func @transform_14(%arg0: i32) -> (i32, i32, i32) {
    %c0_i32 = arith.constant 0 : i32
    %c0_i32_0 = arith.constant 0 : i32
    %c0_i32_1 = arith.constant 0 : i32
    %c0_i32_2 = arith.constant 0 : i32
    return %c0_i32, %c0_i32_0, %c0_i32_1 : i32, i32, i32
  }
  func.func @transform_15(%arg0: i32) -> (i32, i32, i32) {
    %c0_i32 = arith.constant 0 : i32
    %c0_i32_0 = arith.constant 0 : i32
    %c0_i32_1 = arith.constant 0 : i32
    %c0_i32_2 = arith.constant 0 : i32
    return %c0_i32, %c0_i32_0, %c0_i32_1 : i32, i32, i32
  }
  func.func @transform_16(%arg0: i32) -> (i32, i32, i32) {
    %c0_i32 = arith.constant 0 : i32
    %c0_i32_0 = arith.constant 0 : i32
    %c0_i32_1 = arith.constant 0 : i32
    %c0_i32_2 = arith.constant 0 : i32
    return %c0_i32, %c0_i32_0, %c0_i32_1 : i32, i32, i32
  }
  func.func @transform_17(%arg0: i32) -> (i32, i32) {
    %c0_i32 = arith.constant 0 : i32
    %c0_i32_0 = arith.constant 0 : i32
    %c0_i32_1 = arith.constant 0 : i32
    return %c0_i32, %c0_i32_0 : i32, i32
  }
  func.func @transform_18(%arg0: i32) -> (i32, i32) {
    %c0_i32 = arith.constant 0 : i32
    %c0_i32_0 = arith.constant 0 : i32
    %c0_i32_1 = arith.constant 0 : i32
    return %c0_i32, %c0_i32_0 : i32, i32
  }
  func.func @transform_19(%arg0: i32) -> (i32, i32, i32) {
    %c0_i32 = arith.constant 0 : i32
    %c0_i32_0 = arith.constant 0 : i32
    %c0_i32_1 = arith.constant 0 : i32
    %c0_i32_2 = arith.constant 0 : i32
    return %c0_i32, %c0_i32_0, %c0_i32_1 : i32, i32, i32
  }
  func.func @transform_20(%arg0: i32) -> (i32, i32) {
    %c0_i32 = arith.constant 0 : i32
    %c0_i32_0 = arith.constant 0 : i32
    %c0_i32_1 = arith.constant 0 : i32
    return %c0_i32, %c0_i32_0 : i32, i32
  }
  func.func @transform_21(%arg0: i32) -> (i32, i32) {
    %c0_i32 = arith.constant 0 : i32
    %c0_i32_0 = arith.constant 0 : i32
    return %arg0, %c0_i32 : i32, i32
  }
}

</mosaic_0001>

<bundles_post_ra>
// kernel: image_clip_forward.1
= control target key start
LH: loop header
LB: loop body
LE: loop exit
PB: predicated region body
PF: predicated region fallthrough
CT: control target
= control target key end

     0   :  { %s7391_s0 = inlined_call_operand.vmem [shape: f32[80,192], index: 0, kind: input, shape index: {}]   ;;  %s7392_s1 = inlined_call_operand.vmem [shape: bf16[192,32], index: 1, kind: input, shape index: {}]   ;;  %s7393_s2 = inlined_call_operand.vmem [shape: f32[40,32], index: 2, kind: input, shape index: {}]   ;;  %s7394_s3 = inlined_call_operand.vmem [shape: f32[1,32], index: 3, kind: input, shape index: {}]   ;;  %s7395_s4 = inlined_call_operand.vmem [shape: f32[1,32], index: 4, kind: input, shape index: {}]   ;;  %s7396_s5 = inlined_call_operand.vmem [shape: bf16[2,32,32], index: 5, kind: input, shape index: {}]   ;;  %s7397_s6 = inlined_call_operand.vmem [shape: f32[2,1,32], index: 6, kind: input, shape index: {}]   ;;  %s7398_s7 = inlined_call_operand.vmem [shape: bf16[2,32,32], index: 7, kind: input, shape index: {}]   ;;  %s7399_s8 = inlined_call_operand.vmem [shape: f32[2,1,32], index: 8, kind: input, shape index: {}]   ;;  %s7400_s9 = inlined_call_operand.vmem [shape: bf16[2,32,32], index: 9, kind: input, shape index: {}]   ;;  %s7401_s10 = inlined_call_operand.vmem [shape: f32[2,1,32], index: 10, kind: input, shape index: {}]   ;;  %s7402_s11 = inlined_call_operand.vmem [shape: bf16[2,32,32], index: 11, kind: input, shape index: {}]   ;;  %s7403_s12 = inlined_call_operand.vmem [shape: f32[2,1,32], index: 12, kind: input, shape index: {}]   ;;  %s7404_s13 = inlined_call_operand.vmem [shape: bf16[2,32,128], index: 13, kind: input, shape index: {}]   ;;  %s7405_s14 = inlined_call_operand.vmem [shape: f32[2,1,128], index: 14, kind: input, shape index: {}]   ;;  %s7406_s15 = inlined_call_operand.vmem [shape: bf16[2,128,32], index: 15, kind: input, shape index: {}]   ;;  %s7407_s16 = inlined_call_operand.vmem [shape: f32[2,1,32], index: 16, kind: input, shape index: {}]   ;;  %s7408_s17 = inlined_call_operand.vmem [shape: bf16[32,128], index: 17, kind: input, shape index: {}]   ;;  %s7409_s18 = inlined_call_operand.vmem [shape: f32[1,128], index: 18, kind: input, shape index: {}]   ;;  %s7410_s19 = inlined_call_operand.vmem [shape: f32[4,1,32], index: 19, kind: input, shape index: {}]   ;;  %s7411_s20 = inlined_call_operand.vmem [shape: f32[40,40], index: 20, kind: input, shape index: {}]   ;;  %s7412_s21 = inlined_call_operand.hbm [shape: f32[16,128], index: 21, kind: output, shape index: {}]  }
   0x1   :  { %7422 = sst [smem:[#allocation10_spill]] %s7391_s0 }
   0x2   :  { %7423 = sst [smem:[#allocation11_spill]] %s7392_s1 }
   0x3   :  { %7424 = sst [smem:[#allocation12_spill]] %s7393_s2 }
   0x4   :  { %7425 = sst [smem:[#allocation13_spill]] %s7394_s3 }
   0x5   :  { %7426 = sst [smem:[#allocation14_spill]] %s7395_s4 }
   0x6   :  { %7427 = sst [smem:[#allocation15_spill]] %s7396_s5 }
   0x7   :  { %7428 = sst [smem:[#allocation16_spill]] %s7397_s6 }
   0x8   :  { %26 = vsyncpa [#allocation3], 0 }
   0x9   :  { %28 = vsyncpa [#allocation3 + $0x1], 0  ;;  %s5755_s2 = smov 0   ;;  %s5757_s25 = smov 0  }
   0xa   :  { %s5759_s26 = smov 0   ;;  %s5761_s27 = smov 0  }
   0xb LB: > { %7429 = sst [smem:[#allocation5_spill]] %s5627_s2  ;;  %s5776_s3 = sadd.s32 4294967295, %s5639_s27   ;;  %s5639_s27 = sphi %s5761_s27, %s7446_s27   ;;  %s5635_s26 = sphi %s5759_s26, %s7448_s26   ;;  %s5631_s25 = sphi %s5757_s25, %s7450_s25   ;;  %s5627_s2 = sphi %s5755_s2, %s7449_s2  }
   0xc   : > { %7430 = sst [smem:[#allocation6_spill]] %s5635_s26  ;;  %s4313_s28 = sadd.s32 4294967294, %s5639_s27  }
   0xd   : > { %s5780_s29 = sadd.s32 1, %s5639_s27   ;;  %s487_s0 = sadd.s32 1, %s5635_s26 }
   0xe   : > { %7431 = sst [smem:[#allocation7_spill]] %s5780_s29  ;;  %s484_s4 = ssub.s32 %s5639_s27, %s5780_s29 }
   0xf   : > { %p497_p0 = scmp.ne.s32.totalorder %s5635_s26, %s5631_s25  ;;  %p485_p1 = scmp.eq.s32.totalorder %s484_s4, 0 }
  0x10   : > { %p498_p2 = scmp.eq.s32.totalorder %s5776_s3, 1  ;;  %p503_p3 = scmp.ne.s32.totalorder %s5631_s25, %s5627_s2 }
  0x11   : > { %p504_p4 = scmp.eq.s32.totalorder %s4313_s28, 1  ;;  %p4316_p7 = scmp.ge.s32.totalorder %s5639_s27, 1 }
  0x12   : > { %s5791_s30 = scalar_select %p485_p1, %s5635_s26, %s487_s0  }
  0x13   : > { %p5793_p5 = por %p498_p2, %p497_p0  ;;  %p5797_p6 = por %p504_p4, %p503_p3 }
  0x14   : > { %7432 = sst [smem:[#allocation8_spill]] %s5791_s30  ;;  %p592_p8 = scmp.lt.s32.totalorder %s5639_s27, 3 }
  0x15   : > { %s7434_s22 = scalar_select %p5797_p6, 1, 0 }
  0x16   : > { %p593_p9 = pnand %p4316_p7, %p592_p8 }
  0x17   : > { %7435 = sst [smem:[#allocation9_spill]] %s7434_s22  ;;  %s7436_s24 = sld [smem:[#allocation11_spill]] (!%p593_p9)  ;;  %v5641_v1 = vmov (!%p593_p9), 0   ;;  %vm778_vm0 = vcmask (!%p593_p9), 523264   ;;  %vm846_vm1 = vcmask (!%p593_p9), 261120   ;;  %vm5643_vm2 = vmmov (!%p593_p9), 0  }
  0x18   : > { %596 = sbr.rel (%p593_p9) target bundleno = 6438 (0x1926), region = 104  ;;  %788 = vmatprep.subr.bf16.mxu0 (!%p593_p9), %v5641_v1  ;;  %s7437_s22 = sld [smem:[#allocation10_spill]] (!%p593_p9)  ;;  %vm1417_vm3 = vcmask (!%p593_p9), 1043456   ;;  %vm1349_vm4 = vcmask (!%p593_p9), 326656  }
  0x19   : > { %s653_s28 = smul.u32 (!%p593_p9), 5, %s5776_s3  ;;  %s7438_s26 = sld [smem:[#allocation12_spill]] (!%p593_p9) }
  0x1a   : > { %s7442_s4 = sld [smem:[#allocation15_spill]] (!%p593_p9)  ;;  %s7443_s6 = sld [smem:[#allocation16_spill]] (!%p593_p9) }
  0x1b   : > { %p654_p10 = scmp.lt.s32.totalorder (!%p593_p9), %s653_s28, 9  ;;  %s650_s1 = sand.u32 (!%p593_p9), 1, %s5631_s25  }
  0x1c   : > { %s4317_s0 = sshll.u32 (!%p593_p9), %s650_s1, 3 }
  0x1d   : > { %v5262_v0 = vld [vmem:[%s7436_s24] sm:$0xff] (!%p593_p9)   ;;  %v5263_v2 = vld [vmem:[%s7436_s24 + $0x8] sm:$0xff] (!%p593_p9)   ;;  %v5264_v3 = vld [vmem:[%s7436_s24 + $0x10] sm:$0xff] (!%p593_p9)  }
  0x1e   : > { %789 = vmatpush1.bf16.msra.mxu0 (!%p593_p9), %v5262_v0  ;;  %v5265_v4 = vld [vmem:[%s7436_s24 + $0x18] sm:$0xff] (!%p593_p9)   ;;  %v5266_v8 = vld [vmem:[%s7436_s24 + $0x20] sm:$0xff] (!%p593_p9)   ;;  %v5267_v9 = vld [vmem:[%s7436_s24 + $0x28] sm:$0xff] (!%p593_p9)  }
  0x1f   : > { %790 = vmatprep.subr.bf16.mxu0 %v5641_v1  ;;  %s7452_s28 = smov (!%p654_p10, %s653_s28), 9  ;;  %v5268_v10 = vld [vmem:[%s7436_s24 + $0x30] sm:$0xff]   ;;  %v5269_v11 = vld [vmem:[%s7436_s24 + $0x38] sm:$0xff]   ;;  %v5270_v12 = vld [vmem:[%s7436_s24 + $0x40] sm:$0xff]   ;;  %s7439_s30 = smov %s7438_s26 }
  0x20   : > { %s4530_s23 = sshll.u32 %s7452_s28, 4  ;;  %v5271_v13 = vld [vmem:[%s7436_s24 + $0x48] sm:$0xff]   ;;  %v5272_v14 = vld [vmem:[%s7436_s24 + $0x50] sm:$0xff]   ;;  %v5273_v15 = vld [vmem:[%s7436_s24 + $0x58] sm:$0xff]  }
  0x21   : > { %s5816_s2 = scalar_lea.vmem %s7437_s22, %s4530_s23  ;;  %v701_v29 = vld [vmem:[%s7438_s26] sm:$0xff]  ;;  %v702_v31 = vld [vmem:[%s7439_s30 + $0x8] sm:$0xff]  ;;  %v703_v38 = vld [vmem:[%s7439_s30 + $0x10] sm:$0xff]  ;;  %s7440_s22 = sld [smem:[#allocation13_spill]] }
  0x22   : > { %791 = vmatpush1.bf16.msra.mxu0 %v5263_v2  ;;  %v662_v5 = vld [vmem:[%s5816_s2 + $0x8] sm:$0xff]  ;;  %v664_v6 = vld [vmem:[%s5816_s2 + $0x18] sm:$0xff]  ;;  %v661_v16 = vld [vmem:[%s5816_s2] sm:$0xff]  ;;  %s7441_s23 = sld [smem:[#allocation14_spill]]  ;;  %s4241_s26 = scalar_lea.sflag [#allocation3], %s650_s1 }
  0x23   : > { %792 = vmatprep.subr.bf16.mxu0 %v5641_v1  ;;  %v696_v7 = vpack.c.bf16 %v664_v6, %v662_v5  ;;  %v663_v17 = vld [vmem:[%s5816_s2 + $0x10] sm:$0xff]  ;;  %v666_v18 = vld [vmem:[%s5816_s2 + $0x28] sm:$0xff]  ;;  %v668_v19 = vld [vmem:[%s5816_s2 + $0x38] sm:$0xff] }
  0x24   : > { %v695_v20 = vpack.c.bf16 %v663_v17, %v661_v16  ;;  %v698_v21 = vpack.c.bf16 %v668_v19, %v666_v18  ;;  %v665_v22 = vld [vmem:[%s5816_s2 + $0x20] sm:$0xff]  ;;  %v667_v23 = vld [vmem:[%s5816_s2 + $0x30] sm:$0xff]  ;;  %v670_v24 = vld [vmem:[%s5816_s2 + $0x48] sm:$0xff] }
  0x25   : > { %4332 = vmatprep.mubr.msk.bf16.mxu0 %vm778_vm0, %v696_v7  ;;  %v697_v25 = vpack.c.bf16 %v667_v23, %v665_v22  ;;  %v700_v26 = vpack.c.bf16 %v670_v24, %v670_v24  ;;  %v669_v27 = vld [vmem:[%s5816_s2 + $0x40] sm:$0xff]  ;;  %v704_v41 = vld [vmem:[%s7439_s30 + $0x18] sm:$0xff]  ;;  %s652_s2 = scalar_lea.vmem [#allocation2], %s4317_s0  ;;  %s5644_s0 = smov [#allocation2]  }
  0x26   : > { %793 = vmatpush1.bf16.msra.mxu0 %v5264_v3  ;;  %v699_v28 = vpack.c.bf16 %v669_v27, %v669_v27  ;;  %v705_v48 = vld [vmem:[%s7439_s30 + $0x20] sm:$0xff]  ;;  %s4254_s28 = sshll.u32 %s652_s2, 4  ;;  %s5581_s29 = sshll.u32 %s5644_s0, 4  ;;  %s7351_s28 = int_to_ptr.vmem [resolvable:$true] %s4254_s28  ;;  %s5582_s29 = int_to_ptr.vmem [resolvable:$false] %s5581_s29 }
  0x27   : > { %794 = vmatprep.subr.bf16.mxu0 %v5641_v1  ;;  %p5584_p0 = scmp.lt.s32.totalorder %s7351_s28, %s5582_s29 }
  0x2a   : > { %795 = vmatpush1.bf16.msra.mxu0 %v5265_v4 }
  0x2b   : > { %796 = vmatprep.subr.bf16.mxu0 %v5641_v1 }
  0x2e   : > { %797 = vmatpush1.bf16.msra.mxu0 %v5266_v8 }
  0x2f   : > { %798 = vmatprep.subr.bf16.mxu0 %v5641_v1 }
  0x32   : > { %799 = vmatpush1.bf16.msra.mxu0 %v5267_v9 }
  0x33   : > { %800 = vmatprep.subr.bf16.mxu0 %v5641_v1 }
  0x36   : > { %801 = vmatpush1.bf16.msra.mxu0 %v5268_v10 }
  0x37   : > { %802 = vmatprep.subr.bf16.mxu0 %v5641_v1 }
  0x3a   : > { %803 = vmatpush1.bf16.msra.mxu0 %v5269_v11 }
  0x3b   : > { %804 = vmatprep.subr.bf16.mxu0 %v5641_v1 }
  0x3e   : > { %805 = vmatpush1.bf16.msra.mxu0 %v5270_v12 }
  0x3f   : > { %806 = vmatprep.subr.bf16.mxu0 %v5641_v1 }
  0x42   : > { %807 = vmatpush1.bf16.msra.mxu0 %v5271_v13 }
  0x43   : > { %808 = vmatprep.subr.bf16.mxu0 %v5641_v1 }
  0x46   : > { %809 = vmatpush1.bf16.msra.mxu0 %v5272_v14 }
  0x47   : > { %810 = vmatprep.subr.bf16.mxu0 %v5641_v1 }
  0x4a   : > { %811 = vmatpush1.bf16.msra.mxu0 %v5273_v15 }
  0x4d   : > { %821 = vmatmul.mubr.bf16.vlgmr.msra.gmra.mrb[0].mxu0 %v695_v20 }
  0x4e   : > { %4333 = vmatprep.mubr.msk.bf16.mxu0 %vm778_vm0, %v698_v21 }
  0x55   : > { %829 = vmatmul.mubr.bf16.gmra.mrb[4].mxu0 %v697_v25 }
  0x56   : > { %4334 = vmatprep.mubr.msk.bf16.mxu0 %vm778_vm0, %v700_v26 }
  0x5d   : > { %837 = vmatmul.mubr.bf16.gmra.mrb[8].mxu0 %v699_v28 }
 0x120   : > { %v822_v30 = vpop.f32.mrb[0].mxu0 }
 0x121   : > { %v823_v32 = vadd.f32 %v822_v30, %v701_v29  ;;  %v824_v33 = vpop.f32.mrb[1].mxu0  ;;  %v4335_v30 = vld [vmem:[%s7440_s22] ss:$0 sm:$0xff]  ;;  %s4527_s22 = sshll.u32 %s5776_s3, 7  ;;  %s5577_s3 = scalar_lea.vmem %s7351_s28, 128 }
 0x122   : > { %v825_v34 = vpop.f32.mrb[2].mxu0  ;;  %p5578_p11 = scmp.ne.s32.totalorder %s7351_s28, %s5577_s3 }
 0x123   : > { %v826_v35 = vadd.f32 %v825_v34, %v702_v31  ;;  %v827_v36 = vpop.f32.mrb[3].mxu0  ;;  %v847_v37 = vsel %vm846_vm1, %v823_v32, 0.0  ;;  %v4336_v34 = vld [vmem:[%s7441_s23] ss:$0 sm:$0xff] }
 0x124   : > { %848 = vadd.xlane.f32.xlu0 %v847_v37  ;;  %p5579_p12 = pnand %p5578_p11, %p5793_p5 }
 0x125   : > { %v850_v39 = vsel %vm846_vm1, %v826_v35, 0.0 }
 0x126   : > { %p5580_p13 = pneg %p5579_p12 }
 0x128   : > { %v830_v40 = vpop.f32.mrb[4].mxu0  ;;  %851 = vadd.xlane.f32.xlu0 %v850_v39 }
 0x129   : > { %v831_v42 = vadd.f32 %v830_v40, %v703_v38  ;;  %v832_v43 = vpop.f32.mrb[5].mxu0 }
 0x12a   : > { %v833_v44 = vpop.f32.mrb[6].mxu0 }
 0x12b   : > { %v834_v45 = vadd.f32 %v833_v44, %v704_v41  ;;  %v835_v46 = vpop.f32.mrb[7].mxu0  ;;  %v853_v47 = vsel %vm846_vm1, %v831_v42, 0.0 }
 0x12c   : > { %854 = vadd.xlane.f32.xlu1 %v853_v47 }
 0x12d   : > { %v856_v49 = vsel %vm846_vm1, %v834_v45, 0.0 }
 0x130   : > { %v838_v50 = vpop.f32.mrb[8].mxu0  ;;  %857 = vadd.xlane.f32.xlu1 %v856_v49 }
 0x131   : > { %v839_v51 = vadd.f32 %v838_v50, %v705_v48  ;;  %v840_v52 = vpop.f32.mrb[9].mxu0 }
 0x132   : > { %v841_v53 = vpop.f32.mrb[10].mxu0 }
 0x133   : > { %v842_v54 = vpop.f32.mrb[11].mxu0  ;;  %v859_v55 = vsel %vm846_vm1, %v839_v51, 0.0 }
 0x134   : > { %860 = vadd.xlane.f32.xlu0 %v859_v55 }
 0x1b1   : > { %v849_v56 = vpop.xlane.xlu0 %848 }
 0x1b2   : > { %v863_v57 = vmul.f32 0.03125, %v849_v56 }
 0x1b4   : > { %v868_v58 = vsub.f32 %v823_v32, %v863_v57 }
 0x1b5   : > { %v852_v59 = vpop.xlane.xlu0 %851 }
 0x1b6   : > { %v864_v60 = vmul.f32 0.03125, %v852_v59  ;;  %v873_v61 = vmul.f32 %v868_v58, %v868_v58 }
 0x1b8   : > { %v869_v62 = vsub.f32 %v826_v35, %v864_v60  ;;  %v878_v63 = vsel %vm846_vm1, %v873_v61, 0.0 }
 0x1b9   : > { %v855_v0 = vpop.xlane.xlu1 %854  ;;  %879 = vadd.xlane.f32.xlu1 %v878_v63 }
 0x1ba   : > { %v865_v1 = vmul.f32 0.03125, %v855_v0  ;;  %v874_v2 = vmul.f32 %v869_v62, %v869_v62 }
 0x1bc   : > { %v870_v3 = vsub.f32 %v831_v42, %v865_v1  ;;  %v881_v4 = vsel %vm846_vm1, %v874_v2, 0.0 }
 0x1bd   : > { %v858_v5 = vpop.xlane.xlu1 %857  ;;  %882 = vadd.xlane.f32.xlu0 %v881_v4 }
 0x1be   : > { %v866_v6 = vmul.f32 0.03125, %v858_v5  ;;  %v875_v7 = vmul.f32 %v870_v3, %v870_v3 }
 0x1c0   : > { %v871_v8 = vsub.f32 %v834_v45, %v866_v6  ;;  %v884_v9 = vsel %vm846_vm1, %v875_v7, 0.0 }
 0x1c1   : > { %885 = vadd.xlane.f32.xlu1 %v884_v9  ;;  %v861_v10 = vpop.xlane.xlu0 %860 }
 0x1c2   : > { %v867_v11 = vmul.f32 0.03125, %v861_v10  ;;  %v876_v12 = vmul.f32 %v871_v8, %v871_v8 }
 0x1c4   : > { %v872_v13 = vsub.f32 %v839_v51, %v867_v11  ;;  %v887_v14 = vsel %vm846_vm1, %v876_v12, 0.0 }
 0x1c5   : > { %888 = vadd.xlane.f32.xlu0 %v887_v14 }
 0x1c6   : > { %v877_v15 = vmul.f32 %v872_v13, %v872_v13 }
 0x1c8   : > { %v890_v16 = vsel %vm846_vm1, %v877_v15, 0.0 }
 0x1c9   : > { %891 = vadd.xlane.f32.xlu1 %v890_v16 }
 0x246   : > { %v880_v17 = vpop.xlane.xlu1 %879 }
 0x247   : > { %v893_v18 = vmul.f32 0.03125, %v880_v17 }
 0x249   : > { %v898_v19 = vadd.f32 1e-05, %v893_v18 }
 0x24a   : > { %v883_v20 = vpop.xlane.xlu0 %882 }
 0x24b   : > { %5312 = vrsqrt.f32 %v898_v19  ;;  %v894_v21 = vmul.f32 0.03125, %v883_v20  ;;  %v5274_v20 = vld [vmem:[%s7442_s4] sm:$0xff]  }
 0x24d   : > { %v899_v22 = vadd.f32 1e-05, %v894_v21  ;;  %v5642_v21 = vmov 0.0  }
 0x24e   : > { %v886_v23 = vpop.xlane.xlu1 %885  ;;  %4702 = vmatprep.subr.bf16.mxu1 %v5642_v21  ;;  %4750 = vmatprep.subr.bf16.mxu0 %v5642_v21 }
 0x24f   : > { %5314 = vrsqrt.f32 %v899_v22  ;;  %v895_v24 = vmul.f32 0.03125, %v886_v23  ;;  %4703 = vmatpush3.bf16.msra.mxu1 %v5274_v20  ;;  %v5275_v22 = vld [vmem:[%s7442_s4 + $0x8] sm:$0xff]   ;;  %4706 = vmatprep.mubr.msk.bf16.mxu1 %vm5643_vm2, %v5642_v21 }
 0x250   : > { %4704 = vmatprep.subr.bf16.mxu1 %v5642_v21  ;;  %4756 = vmatprep.mubr.msk.bf16.mxu0 %vm5643_vm2, %v5642_v21 }
 0x251   : > { %v900_v25 = vadd.f32 1e-05, %v895_v24 }
 0x252   : > { %v889_v26 = vpop.xlane.xlu0 %888 }
 0x253   : > { %5316 = vrsqrt.f32 %v900_v25  ;;  %v896_v27 = vmul.f32 0.03125, %v889_v26  ;;  %4705 = vmatpush3.bf16.msra.mxu1 %v5275_v22 }
 0x254   : > { %4718 = vmatprep.subr.bf16.mxu1 %v5642_v21 }
 0x255   : > { %v5313_v28 = vpop.eup %5312  ;;  %v901_v29 = vadd.f32 1e-05, %v896_v27 }
 0x256   : > { %v892_v31 = vpop.xlane.xlu1 %891  ;;  %v908_v32 = vmul.f32 %v5313_v28, %v868_v58 }
 0x257   : > { %5318 = vrsqrt.f32 %v901_v29  ;;  %v897_v33 = vmul.f32 0.03125, %v892_v31 }
 0x258   : > { %v919_v35 = vmul.f32 %v4335_v30, %v908_v32 }
 0x259   : > { %v5315_v36 = vpop.eup %5314  ;;  %v902_v37 = vadd.f32 1e-05, %v897_v33 }
 0x25a   : > { %v5889_v38 = vadd.f32 %v4336_v34, %v919_v35  ;;  %v909_v39 = vmul.f32 %v5315_v36, %v869_v62 }
 0x25b   : > { %5320 = vrsqrt.f32 %v902_v37 }
 0x25c   : > { %v940_v40 = vsel %vm846_vm1, %v5889_v38, 0.0  ;;  %v920_v41 = vmul.f32 %v4335_v30, %v909_v39 }
 0x25d   : > { %v5317_v42 = vpop.eup %5316  ;;  %941 = vadd.xlane.f32.xlu0 %v940_v40 }
 0x25e   : > { %v5893_v43 = vadd.f32 %v4336_v34, %v920_v41  ;;  %v910_v44 = vmul.f32 %v5317_v42, %v870_v3 }
 0x260   : > { %v943_v45 = vsel %vm846_vm1, %v5893_v43, 0.0  ;;  %v921_v46 = vmul.f32 %v4335_v30, %v910_v44  ;;  %v5276_v44 = vld [vmem:[%s7398_s7] sm:$0xff]  }
 0x261   : > { %v5319_v47 = vpop.eup %5318  ;;  %944 = vadd.xlane.f32.xlu1 %v943_v45 }
 0x262   : > { %v5897_v48 = vadd.f32 %v4336_v34, %v921_v46  ;;  %v911_v49 = vmul.f32 %v5319_v47, %v871_v8  ;;  %v5277_v47 = vld [vmem:[%s7398_s7 + $0x8] sm:$0xff]  }
 0x264   : > { %v946_v50 = vsel %vm846_vm1, %v5897_v48, 0.0  ;;  %v922_v51 = vmul.f32 %v4335_v30, %v911_v49 }
 0x265   : > { %v5321_v52 = vpop.eup %5320  ;;  %947 = vadd.xlane.f32.xlu0 %v946_v50 }
 0x266   : > { %v5901_v53 = vadd.f32 %v4336_v34, %v922_v51  ;;  %v912_v54 = vmul.f32 %v5321_v52, %v872_v13 }
 0x268   : > { %v949_v55 = vsel %vm846_vm1, %v5901_v53, 0.0  ;;  %v923_v56 = vmul.f32 %v4335_v30, %v912_v54 }
 0x269   : > { %950 = vadd.xlane.f32.xlu1 %v949_v55 }
 0x26a   : > { %v5905_v57 = vadd.f32 %v4336_v34, %v923_v56 }
 0x26c   : > { %v952_v58 = vsel %vm846_vm1, %v5905_v57, 0.0 }
 0x26d   : > { %953 = vadd.xlane.f32.xlu0 %v952_v58  ;;  %v5278_v58 = vld [vmem:[%s7400_s9] sm:$0xff]  }
 0x2ea   : > { %v942_v59 = vpop.xlane.xlu0 %941 }
 0x2eb   : > { %v955_v60 = vmul.f32 0.03125, %v942_v59  ;;  %v5279_v59 = vld [vmem:[%s7400_s9 + $0x8] sm:$0xff]  }
 0x2ed   : > { %v960_v61 = vsub.f32 %v5889_v38, %v955_v60  ;;  %v5984_v60 = vld [vmem:[%s7443_s6] ss:$0 sm:$0xff] }
 0x2ee   : > { %v945_v62 = vpop.xlane.xlu1 %944 }
 0x2ef   : > { %v956_v63 = vmul.f32 0.03125, %v945_v62  ;;  %v965_v0 = vmul.f32 %v960_v61, %v960_v61 }
 0x2f1   : > { %v961_v1 = vsub.f32 %v5893_v43, %v956_v63  ;;  %v970_v2 = vsel %vm846_vm1, %v965_v0, 0.0  ;;  %v5990_v63 = vld [vmem:[%s7410_s19] ss:$0 sm:$0xff]  ;;  %v5995_v0 = vld [vmem:[%s7410_s19 + $0x1] ss:$0 sm:$0xff] }
 0x2f2   : > { %971 = vadd.xlane.f32.xlu1 %v970_v2  ;;  %v948_v3 = vpop.xlane.xlu0 %947  ;;  %v6000_v2 = vld [vmem:[%s7410_s19 + $0x2] ss:$0 sm:$0xff] }
 0x2f3   : > { %v957_v4 = vmul.f32 0.03125, %v948_v3  ;;  %v966_v5 = vmul.f32 %v961_v1, %v961_v1  ;;  %v6005_v3 = vld [vmem:[%s7410_s19 + $0x3] ss:$0 sm:$0xff] }
 0x2f5   : > { %v5913_v6 = vsub.f32 %v5897_v48, %v957_v4  ;;  %v973_v7 = vsel %vm846_vm1, %v966_v5, 0.0 }
 0x2f6   : > { %974 = vadd.xlane.f32.xlu0 %v973_v7  ;;  %v951_v8 = vpop.xlane.xlu1 %950 }
 0x2f7   : > { %v958_v9 = vmul.f32 0.03125, %v951_v8  ;;  %v967_v10 = vmul.f32 %v5913_v6, %v5913_v6 }
 0x2f9   : > { %v963_v11 = vsub.f32 %v5901_v53, %v958_v9  ;;  %v976_v12 = vsel %vm846_vm1, %v967_v10, 0.0 }
 0x2fa   : > { %977 = vadd.xlane.f32.xlu1 %v976_v12  ;;  %v954_v13 = vpop.xlane.xlu0 %953 }
 0x2fb   : > { %v959_v14 = vmul.f32 0.03125, %v954_v13  ;;  %v968_v15 = vmul.f32 %v963_v11, %v963_v11 }
 0x2fd   : > { %v964_v16 = vsub.f32 %v5905_v57, %v959_v14  ;;  %v979_v17 = vsel %vm846_vm1, %v968_v15, 0.0 }
 0x2fe   : > { %980 = vadd.xlane.f32.xlu0 %v979_v17 }
 0x2ff   : > { %v969_v18 = vmul.f32 %v964_v16, %v964_v16 }
 0x301   : > { %v982_v19 = vsel %vm846_vm1, %v969_v18, 0.0 }
 0x302   : > { %983 = vadd.xlane.f32.xlu1 %v982_v19 }
 0x37f   : > { %v972_v23 = vpop.xlane.xlu1 %971 }
 0x380   : > { %v985_v24 = vmul.f32 0.03125, %v972_v23 }
 0x382   : > { %v990_v25 = vadd.f32 1e-05, %v985_v24 }
 0x383   : > { %v975_v26 = vpop.xlane.xlu0 %974 }
 0x384   : > { %v986_v27 = vmul.f32 0.03125, %v975_v26  ;;  %5322 = vrsqrt.f32 %v990_v25 }
 0x386   : > { %v991_v28 = vadd.f32 1e-05, %v986_v27 }
 0x387   : > { %v978_v29 = vpop.xlane.xlu1 %977 }
 0x388   : > { %5324 = vrsqrt.f32 %v991_v28  ;;  %v987_v30 = vmul.f32 0.03125, %v978_v29 }
 0x38a   : > { %v992_v31 = vadd.f32 1e-05, %v987_v30 }
 0x38b   : > { %v981_v32 = vpop.xlane.xlu0 %980 }
 0x38c   : > { %v988_v33 = vmul.f32 0.03125, %v981_v32  ;;  %5326 = vrsqrt.f32 %v992_v31 }
 0x38e   : > { %v993_v34 = vadd.f32 1e-05, %v988_v33  ;;  %v5323_v36 = vpop.eup %5322 }
 0x38f   : > { %v984_v35 = vpop.xlane.xlu1 %983  ;;  %v1000_v41 = vmul.f32 %v5323_v36, %v960_v61 }
 0x390   : > { %5328 = vrsqrt.f32 %v993_v34  ;;  %v989_v37 = vmul.f32 0.03125, %v984_v35 }
 0x392   : > { %v5325_v39 = vpop.eup %5324  ;;  %v994_v40 = vadd.f32 1e-05, %v989_v37 }
 0x393   : > { %v1001_v42 = vmul.f32 %v5325_v39, %v961_v1 }
 0x394   : > { %5330 = vrsqrt.f32 %v994_v40 }
 0x395   : > { %v1009_v45 = vpack.c.bf16 %v1001_v42, %v1000_v41 }
 0x396   : > { %v5327_v46 = vpop.eup %5326 }
 0x397   : > { %4707 = vmatmul.mubr.msk.bf16.vlgmr.msra.gmra.mrb[0].mxu1 %vm846_vm1, %v1009_v45  ;;  %v1002_v50 = vmul.f32 %v5327_v46, %v5913_v6 }
 0x398   : > { %4719 = vmatpush3.bf16.msra.mxu1 %v5276_v44  ;;  %4710 = vmatprep.mubr.msk.bf16.mxu1 %vm5643_vm2, %v5642_v21  ;;  %v4343_v44 = vld [vmem:[%s7399_s8] ss:$0 sm:$0xff] }
 0x399   : > { %4720 = vmatprep.subr.bf16.mxu1 %v5642_v21 }
 0x39a   : > { %v5329_v49 = vpop.eup %5328 }
 0x39b   : > { %v1003_v51 = vmul.f32 %v5329_v49, %v963_v11 }
 0x39c   : > { %4721 = vmatpush3.bf16.msra.mxu1 %v5277_v47 }
 0x39d   : > { %v1010_v52 = vpack.c.bf16 %v1003_v51, %v1002_v50  ;;  %4734 = vmatprep.subr.bf16.mxu1 %v5642_v21 }
 0x39e   : > { %v5331_v54 = vpop.eup %5330 }
 0x39f   : > { %4711 = vmatmul.mubr.msk.bf16.gmra.mrb[4].mxu1 %vm846_vm1, %v1010_v52  ;;  %v1004_v55 = vmul.f32 %v5331_v54, %v964_v16 }
 0x3a0   : > { %4714 = vmatprep.mubr.msk.bf16.mxu1 %vm5643_vm2, %v5642_v21 }
 0x3a1   : > { %v1011_v56 = vpack.c.bf16 %v1004_v55, %v1004_v55 }
 0x3a7   : > { %4715 = vmatmul.mubr.msk.bf16.gmra.mrb[8].mxu1 %vm846_vm1, %v1011_v56 }
 0x3a8   : > { %4722 = vmatprep.mubr.msk.bf16.mxu1 %vm5643_vm2, %v5642_v21 }
 0x3af   : > { %4723 = vmatmul.mubr.msk.bf16.vlgmr.msra.gmra.mrb[12].mxu1 %vm846_vm1, %v1009_v45 }
 0x3b0   : > { %4726 = vmatprep.mubr.msk.bf16.mxu1 %vm5643_vm2, %v5642_v21  ;;  %4735 = vmatpush3.bf16.msra.mxu1 %v5278_v58 }
 0x3b1   : > { %4736 = vmatprep.subr.bf16.mxu1 %v5642_v21 }
 0x3b4   : > { %4737 = vmatpush3.bf16.msra.mxu1 %v5279_v59 }
 0x3b5   : > { %4768 = vmatprep.subr.bf16.mxu1 %v5642_v21 }
 0x3b7   : > { %4727 = vmatmul.mubr.msk.bf16.gmra.mrb[16].mxu1 %vm846_vm1, %v1010_v52 }
 0x3b8   : > { %4730 = vmatprep.mubr.msk.bf16.mxu1 %vm5643_vm2, %v5642_v21 }
 0x3bf   : > { %4731 = vmatmul.mubr.msk.bf16.gmra.mrb[20].mxu1 %vm846_vm1, %v1011_v56 }
 0x3c0   : > { %4738 = vmatprep.mubr.msk.bf16.mxu1 %vm5643_vm2, %v5642_v21 }
 0x3c7   : > { %4739 = vmatmul.mubr.msk.bf16.vlgmr.msra.gmra.mrb[24].mxu1 %vm846_vm1, %v1009_v45 }
 0x3c8   : > { %4742 = vmatprep.mubr.msk.bf16.mxu1 %vm5643_vm2, %v5642_v21 }
 0x3cf   : > { %4743 = vmatmul.mubr.msk.bf16.gmra.mrb[28].mxu1 %vm846_vm1, %v1010_v52 }
 0x3d0   : > { %4746 = vmatprep.mubr.msk.bf16.mxu1 %vm5643_vm2, %v5642_v21 }
 0x3d7   : > { %4747 = vmatmul.mubr.msk.bf16.gmra.mrb[32].mxu1 %vm846_vm1, %v1011_v56 }
 0x3d8   : > { %4774 = vmatprep.mubr.msk.bf16.mxu1 %vm5643_vm2, %v5642_v21 }
 0x46a   : > { %v1074_v61 = vpop.f32.mrb[0].mxu1 }
 0x46b   : > { %v1075_v62 = vadd.f32 %v5984_v60, %v1074_v61  ;;  %v4708_v1 = vpop.f32.mrb[1].mxu1 }
 0x46c   : > { %v1077_v4 = vpop.f32.mrb[2].mxu1 }
 0x46d   : > { %v4709_v5 = vpop.f32.mrb[3].mxu1  ;;  %v1078_v6 = vadd.f32 %v5984_v60, %v1077_v4  ;;  %v6009_v7 = vmul.f32 %v5990_v63, %v1075_v62  ;;  %v6012_v8 = vmul.f32 %v5995_v0, %v1075_v62  ;;  %v6015_v9 = vmul.f32 %v6000_v2, %v1075_v62 }
 0x46e   : > { %v6018_v10 = vmul.f32 %v6005_v3, %v1075_v62 }
 0x46f   : > { %v6021_v11 = vmul.f32 %v5990_v63, %v1078_v6  ;;  %v6024_v12 = vmul.f32 %v5995_v0, %v1078_v6  ;;  %v6027_v13 = vmul.f32 %v6000_v2, %v1078_v6  ;;  %v6030_v14 = vmul.f32 %v6005_v3, %v1078_v6 }
 0x471   : > { %v1272_v15 = vpack.c.bf16 %v6021_v11, %v6009_v7  ;;  %v1500_v16 = vpack.c.bf16 %v6024_v12, %v6012_v8  ;;  %v1714_v17 = vpack.c.bf16 %v6027_v13, %v6015_v9  ;;  %v1928_v18 = vpack.c.bf16 %v6030_v14, %v6018_v10 }
 0x472   : > { %v1082_v19 = vpop.f32.mrb[4].mxu1 }
 0x473   : > { %v1083_v20 = vadd.f32 %v5984_v60, %v1082_v19  ;;  %v4712_v22 = vpop.f32.mrb[5].mxu1 }
 0x474   : > { %v1085_v23 = vpop.f32.mrb[6].mxu1 }
 0x475   : > { %v4713_v24 = vpop.f32.mrb[7].mxu1  ;;  %v1086_v25 = vadd.f32 %v5984_v60, %v1085_v23  ;;  %v6043_v26 = vmul.f32 %v5990_v63, %v1083_v20  ;;  %v6046_v27 = vmul.f32 %v5995_v0, %v1083_v20  ;;  %v6049_v28 = vmul.f32 %v6000_v2, %v1083_v20 }
 0x476   : > { %v6052_v29 = vmul.f32 %v6005_v3, %v1083_v20 }
 0x477   : > { %v6055_v30 = vmul.f32 %v5990_v63, %v1086_v25  ;;  %v6058_v31 = vmul.f32 %v5995_v0, %v1086_v25  ;;  %v6061_v32 = vmul.f32 %v6000_v2, %v1086_v25  ;;  %v6064_v33 = vmul.f32 %v6005_v3, %v1086_v25  ;;  %v4349_v25 = vld [vmem:[%s7401_s10] ss:$0 sm:$0xff] }
 0x479   : > { %v1929_v34 = vpack.c.bf16 %v6064_v33, %v6052_v29  ;;  %v1273_v36 = vpack.c.bf16 %v6055_v30, %v6043_v26  ;;  %v1501_v37 = vpack.c.bf16 %v6058_v31, %v6046_v27  ;;  %v1715_v39 = vpack.c.bf16 %v6061_v32, %v6049_v28  ;;  %v6191_v27 = vld [vmem:[%s7411_s20 + $0x8] sm:$0xff] }
 0x47a   : > { %v1090_v35 = vpop.f32.mrb[8].mxu1 }
 0x47b   : > { %v4716_v40 = vpop.f32.mrb[9].mxu1  ;;  %v6108_v7 = vadd.f32 %v5984_v60, %v1090_v35 }
 0x47c   : > { %v1093_v41 = vpop.f32.mrb[10].mxu1 }
 0x47d   : > { %v4717_v42 = vpop.f32.mrb[11].mxu1  ;;  %v1271_v60 = vmul.f32 %v5990_v63, %v6108_v7  ;;  %v1499_v8 = vmul.f32 %v5995_v0, %v6108_v7  ;;  %v1713_v9 = vmul.f32 %v6000_v2, %v6108_v7 }
 0x47f   : > { %v1502_v12 = vpack.c.bf16 %v1499_v8, %v1499_v8  ;;  %v1716_v13 = vpack.c.bf16 %v1713_v9, %v1713_v9 }
 0x482   : > { %v1153_v45 = vpop.f32.mrb[12].mxu1 }
 0x483   : > { %v4724_v46 = vpop.f32.mrb[13].mxu1  ;;  %v1154_v49 = vadd.f32 %v4343_v44, %v1153_v45 }
 0x484   : > { %v1156_v47 = vpop.f32.mrb[14].mxu1 }
 0x485   : > { %v1157_v50 = vadd.f32 %v4343_v44, %v1156_v47  ;;  %v4725_v51 = vpop.f32.mrb[15].mxu1 }
 0x487   : > { %v1254_v52 = vpack.c.bf16 %v1157_v50, %v1154_v49 }
 0x489   : > { %v6078_v54 = vsel %vm846_vm1, %v1254_v52, 0 }
 0x48a   : > { %v1161_v55 = vpop.f32.mrb[16].mxu1  ;;  %4751 = vmatpush3.bf16.xpose.msra.mxu0 %v6078_v54 }
 0x48b   : > { %v4728_v56 = vpop.f32.mrb[17].mxu1  ;;  %4752 = vmatprep.subr.bf16.mxu0 %v5642_v21  ;;  %v1162_v59 = vadd.f32 %v4343_v44, %v1161_v55 }
 0x48c   : > { %v1164_v58 = vpop.f32.mrb[18].mxu1 }
 0x48d   : > { %v1165_v61 = vadd.f32 %v4343_v44, %v1164_v58  ;;  %v4729_v62 = vpop.f32.mrb[19].mxu1 }
 0x48f   : > { %v1255_v1 = vpack.c.bf16 %v1165_v61, %v1162_v59  ;;  %v1274_v61 = vpack.c.bf16 %v1271_v60, %v1271_v60 }
 0x491   : > { %v6083_v4 = vsel %vm846_vm1, %v1255_v1, 0  ;;  %v6211_v1 = vld [vmem:[%s7411_s20 + $0x18] sm:$0xff] }
 0x492   : > { %v1169_v5 = vpop.f32.mrb[20].mxu1  ;;  %4753 = vmatpush3.bf16.xpose.msra.mxu0 %v6083_v4 }
 0x493   : > { %v1170_v6 = vadd.f32 %v4343_v44, %v1169_v5  ;;  %v4732_v19 = vpop.f32.mrb[21].mxu1  ;;  %4754 = vmatprep.subr.bf16.mxu0 %v5642_v21 }
 0x494   : > { %v1172_v20 = vpop.f32.mrb[22].mxu1 }
 0x495   : > { %v1256_v22 = vpack.c.bf16 %v1170_v6, %v1170_v6  ;;  %v4733_v23 = vpop.f32.mrb[23].mxu1 }
 0x497   : > { %v6088_v24 = vsel %vm846_vm1, %v1256_v22, 0 }
 0x49a   : > { %v1232_v26 = vpop.f32.mrb[24].mxu1  ;;  %4755 = vmatpush3.bf16.xpose.msra.mxu0 %v6088_v24 }
 0x49b   : > { %v4740_v30 = vpop.f32.mrb[25].mxu1  ;;  %4786 = vmatprep.subr.bf16.mxu0 %v5642_v21  ;;  %v1233_v41 = vadd.f32 %v4349_v25, %v1232_v26  ;;  %v6226_v26 = vld [vmem:[%s7411_s20 + $0x20] sm:$0xff] }
 0x49c   : > { %v1235_v40 = vpop.f32.mrb[26].mxu1 }
 0x49d   : > { %v1236_v42 = vadd.f32 %v4349_v25, %v1235_v40  ;;  %v4741_v44 = vpop.f32.mrb[27].mxu1 }
 0x49f   : > { %v6095_v45 = vpack.c.bf16 %v1236_v42, %v1233_v41 }
 0x4a1   : > { %4757 = vmatmul.mubr.msk.bf16.vlgmr.msra.gmra.mrb[12].mxu0 %vm846_vm1, %v1272_v15  ;;  %4769 = vmatpush3.bf16.msra.mxu1 %v6095_v45 }
 0x4a2   : > { %v1240_v46 = vpop.f32.mrb[28].mxu1  ;;  %4787 = vmatpush3.bf16.xpose.msra.mxu0 %v6078_v54  ;;  %4760 = vmatprep.mubr.msk.bf16.mxu0 %vm5643_vm2, %v5642_v21 }
 0x4a3   : > { %v4744_v47 = vpop.f32.mrb[29].mxu1  ;;  %4770 = vmatprep.subr.bf16.mxu1 %v5642_v21  ;;  %4788 = vmatprep.subr.bf16.mxu0 %v5642_v21  ;;  %v1241_v50 = vadd.f32 %v4349_v25, %v1240_v46 }
 0x4a4   : > { %v1243_v49 = vpop.f32.mrb[30].mxu1 }
 0x4a5   : > { %v1244_v51 = vadd.f32 %v4349_v25, %v1243_v49  ;;  %v4745_v52 = vpop.f32.mrb[31].mxu1 }
 0x4a7   : > { %v6110_v11 = vpack.c.bf16 %v1244_v51, %v1241_v50 }
 0x4a9   : > { %4761 = vmatmul.mubr.msk.bf16.gmra.mrb[16].mxu0 %vm846_vm1, %v1273_v36  ;;  %4771 = vmatpush3.bf16.msra.mxu1 %v6110_v11 }
 0x4aa   : > { %v1248_v15 = vpop.f32.mrb[32].mxu1  ;;  %4789 = vmatpush3.bf16.xpose.msra.mxu0 %v6083_v4  ;;  %4772 = vmatprep.subr.bf16.mxu1 %v5642_v21 }
 0x4ab   : > { %v1249_v55 = vadd.f32 %v4349_v25, %v1248_v15  ;;  %v4748_v56 = vpop.f32.mrb[33].mxu1  ;;  %4764 = vmatprep.mubr.msk.bf16.mxu0 %vm5643_vm2, %v5642_v21  ;;  %4790 = vmatprep.subr.bf16.mxu0 %v5642_v21 }
 0x4ac   : > { %v1251_v35 = vpop.f32.mrb[34].mxu1 }
 0x4ad   : > { %v1259_v36 = vpack.c.bf16 %v1249_v55, %v1249_v55  ;;  %v4749_v58 = vpop.f32.mrb[35].mxu1 }
 0x4af   : > { %v6122_v59 = vsel %vm1417_vm3, %v1259_v36, 0 }
 0x4b0   : > { %4773 = vmatpush3.bf16.msra.mxu1 %v6122_v59 }
 0x4b1   : > { %4765 = vmatmul.mubr.msk.bf16.gmra.mrb[20].mxu0 %vm846_vm1, %v1274_v61  ;;  %4804 = vmatprep.subr.bf16.mxu1 %v5642_v21 }
 0x4b2   : > { %4791 = vmatpush3.bf16.xpose.msra.mxu0 %v6088_v24  ;;  %4792 = vmatprep.mubr.msk.bf16.mxu0 %vm5643_vm2, %v5642_v21 }
 0x4b3   : > { %4822 = vmatprep.subr.bf16.mxu0 %v5642_v21 }
 0x4b9   : > { %4793 = vmatmul.mubr.msk.bf16.vlgmr.msra.gmra.mrb[24].mxu0 %vm846_vm1, %v1500_v16  ;;  %v6186_v16 = vld [vmem:[%s7411_s20] sm:$0xff] }
 0x4ba   : > { %4823 = vmatpush3.bf16.xpose.msra.mxu0 %v6078_v54  ;;  %4796 = vmatprep.mubr.msk.bf16.mxu0 %vm5643_vm2, %v5642_v21 }
 0x4bb   : > { %4824 = vmatprep.subr.bf16.mxu0 %v5642_v21 }
 0x4c1   : > { %4797 = vmatmul.mubr.msk.bf16.gmra.mrb[28].mxu0 %vm846_vm1, %v1501_v37 }
 0x4c2   : > { %4825 = vmatpush3.bf16.xpose.msra.mxu0 %v6083_v4  ;;  %4800 = vmatprep.mubr.msk.bf16.mxu0 %vm5643_vm2, %v5642_v21 }
 0x4c3   : > { %4826 = vmatprep.subr.bf16.mxu0 %v5642_v21 }
 0x4c9   : > { %4801 = vmatmul.mubr.msk.bf16.gmra.mrb[32].mxu0 %vm846_vm1, %v1502_v12 }
 0x4ca   : > { %4827 = vmatpush3.bf16.xpose.msra.mxu0 %v6088_v24  ;;  %4828 = vmatprep.mubr.msk.bf16.mxu0 %vm5643_vm2, %v5642_v21 }
 0x4cb   : > { %4858 = vmatprep.subr.bf16.mxu0 %v5642_v21 }
 0x4d1   : > { %4829 = vmatmul.mubr.msk.bf16.vlgmr.msra.gmra.mrb[36].mxu0 %vm846_vm1, %v1714_v17 }
 0x4d2   : > { %4859 = vmatpush3.bf16.xpose.msra.mxu0 %v6078_v54  ;;  %4832 = vmatprep.mubr.msk.bf16.mxu0 %vm5643_vm2, %v5642_v21 }
 0x4d3   : > { %4860 = vmatprep.subr.bf16.mxu0 %v5642_v21 }
 0x4d9   : > { %4833 = vmatmul.mubr.msk.bf16.gmra.mrb[40].mxu0 %vm846_vm1, %v1715_v39  ;;  %v6206_v39 = vld [vmem:[%s7411_s20 + $0x10] sm:$0xff] }
 0x4da   : > { %4861 = vmatpush3.bf16.xpose.msra.mxu0 %v6083_v4  ;;  %4836 = vmatprep.mubr.msk.bf16.mxu0 %vm5643_vm2, %v5642_v21 }
 0x4db   : > { %4862 = vmatprep.subr.bf16.mxu0 %v5642_v21 }
 0x4e1   : > { %4837 = vmatmul.mubr.msk.bf16.gmra.mrb[44].mxu0 %vm846_vm1, %v1716_v13 }
 0x4e2   : > { %4863 = vmatpush3.bf16.xpose.msra.mxu0 %v6088_v24  ;;  %4864 = vmatprep.mubr.msk.bf16.mxu0 %vm5643_vm2, %v5642_v21 }
 0x4e3   : > { %4894 = vmatprep.subr.bf16.mxu0 %v5642_v21 }
 0x4e9   : > { %4865 = vmatmul.mubr.msk.bf16.vlgmr.msra.gmra.mrb[48].mxu0 %vm846_vm1, %v1928_v18 }
 0x4ea   : > { %4898 = vmatprep.mubr.msk.bf16.mxu0 %vm5643_vm2, %v5642_v21 }
 0x574   : > { %v1327_v17 = vpop.f32.mrb[12].mxu0 }
 0x575   : > { %v6194_v28 = vadd.f32 %v1327_v17, %v6186_v16  ;;  %v4758_v10 = vpop.f32.mrb[13].mxu0 }
 0x576   : > { %v1330_v14 = vpop.f32.mrb[14].mxu0 }
 0x577   : > { %v6197_v18 = vadd.f32 %v1330_v14, %v6191_v27  ;;  %v4759_v31 = vpop.f32.mrb[15].mxu0  ;;  %v1350_v32 = vsel %vm1349_vm4, %v6194_v28, -inf }
 0x578   : > { %1351 = vmax.xlane.f32.xlu0 %v1350_v32 }
 0x579   : > { %v1353_v37 = vsel %vm1349_vm4, %v6197_v18, -inf }
 0x57a   : > { %1354 = vmax.xlane.f32.xlu1 %v1353_v37 }
 0x57c   : > { %v1335_v62 = vpop.f32.mrb[16].mxu0 }
 0x57d   : > { %v6214_v5 = vadd.f32 %v1335_v62, %v6206_v39  ;;  %v4762_v6 = vpop.f32.mrb[17].mxu0 }
 0x57e   : > { %v1338_v19 = vpop.f32.mrb[18].mxu0 }
 0x57f   : > { %v6217_v20 = vadd.f32 %v1338_v19, %v6211_v1  ;;  %v4763_v22 = vpop.f32.mrb[19].mxu0  ;;  %v1356_v23 = vsel %vm1349_vm4, %v6214_v5, -inf }
 0x580   : > { %1357 = vmax.xlane.f32.xlu0 %v1356_v23 }
 0x581   : > { %v1359_v25 = vsel %vm1349_vm4, %v6217_v20, -inf }
 0x582   : > { %1360 = vmax.xlane.f32.xlu1 %v1359_v25 }
 0x584   : > { %v1343_v30 = vpop.f32.mrb[20].mxu0 }
 0x585   : > { %v6229_v40 = vadd.f32 %v1343_v30, %v6226_v26  ;;  %v4766_v41 = vpop.f32.mrb[21].mxu0 }
 0x586   : > { %v1346_v42 = vpop.f32.mrb[22].mxu0 }
 0x587   : > { %v4767_v44 = vpop.f32.mrb[23].mxu0  ;;  %v1362_v46 = vsel %vm1349_vm4, %v6229_v40, -inf }
 0x588   : > { %1363 = vmax.xlane.f32.xlu0 %v1362_v46 }
 0x58c   : > { %v1546_v47 = vpop.f32.mrb[24].mxu0 }
 0x58d   : > { %v6234_v49 = vadd.f32 %v1546_v47, %v6186_v16  ;;  %v4794_v50 = vpop.f32.mrb[25].mxu0 }
 0x58e   : > { %v1549_v51 = vpop.f32.mrb[26].mxu0 }
 0x58f   : > { %v6237_v52 = vadd.f32 %v1549_v51, %v6191_v27  ;;  %v4795_v15 = vpop.f32.mrb[27].mxu0  ;;  %v1568_v55 = vsel %vm1349_vm4, %v6234_v49, -inf }
 0x590   : > { %1569 = vmax.xlane.f32.xlu1 %v1568_v55 }
 0x591   : > { %v1571_v56 = vsel %vm1349_vm4, %v6237_v52, -inf }
 0x592   : > { %1572 = vmax.xlane.f32.xlu0 %v1571_v56 }
 0x594   : > { %v1554_v60 = vpop.f32.mrb[28].mxu0 }
 0x595   : > { %v6244_v35 = vadd.f32 %v1554_v60, %v6206_v39  ;;  %v4798_v36 = vpop.f32.mrb[29].mxu0 }
 0x596   : > { %v1557_v58 = vpop.f32.mrb[30].mxu0 }
 0x597   : > { %v6247_v61 = vadd.f32 %v1557_v58, %v6211_v1  ;;  %v4799_v8 = vpop.f32.mrb[31].mxu0  ;;  %v1574_v12 = vsel %vm1349_vm4, %v6244_v35, -inf }
 0x598   : > { %1575 = vmax.xlane.f32.xlu1 %v1574_v12 }
 0x599   : > { %v1577_v9 = vsel %vm1349_vm4, %v6247_v61, -inf }
 0x59a   : > { %1578 = vmax.xlane.f32.xlu0 %v1577_v9 }
 0x59c   : > { %v1562_v13 = vpop.f32.mrb[32].mxu0 }
 0x59d   : > { %v6254_v17 = vadd.f32 %v1562_v13, %v6226_v26  ;;  %v4802_v10 = vpop.f32.mrb[33].mxu0 }
 0x59e   : > { %v1565_v14 = vpop.f32.mrb[34].mxu0 }
 0x59f   : > { %v4803_v31 = vpop.f32.mrb[35].mxu0  ;;  %v1580_v32 = vsel %vm1349_vm4, %v6254_v17, -inf }
 0x5a0   : > { %1581 = vmax.xlane.f32.xlu1 %v1580_v32 }
 0x5a4   : > { %v1760_v37 = vpop.f32.mrb[36].mxu0 }
 0x5a5   : > { %v6259_v62 = vadd.f32 %v1760_v37, %v6186_v16  ;;  %v4830_v6 = vpop.f32.mrb[37].mxu0 }
 0x5a6   : > { %v1763_v19 = vpop.f32.mrb[38].mxu0 }
 0x5a7   : > { %v6262_v22 = vadd.f32 %v1763_v19, %v6191_v27  ;;  %v4831_v23 = vpop.f32.mrb[39].mxu0  ;;  %v1782_v25 = vsel %vm1349_vm4, %v6259_v62, -inf }
 0x5a8   : > { %1783 = vmax.xlane.f32.xlu0 %v1782_v25 }
 0x5a9   : > { %v1785_v30 = vsel %vm1349_vm4, %v6262_v22, -inf }
 0x5aa   : > { %1786 = vmax.xlane.f32.xlu1 %v1785_v30 }
 0x5ac   : > { %v1768_v41 = vpop.f32.mrb[40].mxu0 }
 0x5ad   : > { %v6269_v42 = vadd.f32 %v1768_v41, %v6206_v39  ;;  %v4834_v44 = vpop.f32.mrb[41].mxu0 }
 0x5ae   : > { %v1771_v46 = vpop.f32.mrb[42].mxu0 }
 0x5af   : > { %v6272_v47 = vadd.f32 %v1771_v46, %v6211_v1  ;;  %v4835_v50 = vpop.f32.mrb[43].mxu0  ;;  %v1788_v51 = vsel %vm1349_vm4, %v6269_v42, -inf }
 0x5b0   : > { %1789 = vmax.xlane.f32.xlu0 %v1788_v51 }
 0x5b1   : > { %v1791_v15 = vsel %vm1349_vm4, %v6272_v47, -inf }
 0x5b2   : > { %1792 = vmax.xlane.f32.xlu1 %v1791_v15 }
 0x5b4   : > { %v1776_v55 = vpop.f32.mrb[44].mxu0 }
 0x5b5   : > { %v6279_v56 = vadd.f32 %v1776_v55, %v6226_v26  ;;  %v4838_v60 = vpop.f32.mrb[45].mxu0 }
 0x5b6   : > { %v1779_v36 = vpop.f32.mrb[46].mxu0 }
 0x5b7   : > { %v4839_v58 = vpop.f32.mrb[47].mxu0  ;;  %v1794_v8 = vsel %vm1349_vm4, %v6279_v56, -inf }
 0x5b8   : > { %1795 = vmax.xlane.f32.xlu0 %v1794_v8 }
 0x5bc   : > { %v6283_v12 = vpop.f32.mrb[48].mxu0 }
 0x5bd   : > { %v4866_v9 = vpop.f32.mrb[49].mxu0 }
 0x5be   : > { %v6285_v13 = vpop.f32.mrb[50].mxu0 }
 0x5bf   : > { %v4867_v10 = vpop.f32.mrb[51].mxu0 }
 0x605   : > { %v1352_v14 = vpop.xlane.xlu0 %1351 }
 0x606   : > { %v1365_v31 = vsub.f32 %v6194_v28, %v1352_v14 }
 0x607   : > { %v1355_v32 = vpop.xlane.xlu1 %1354 }
 0x608   : > { %v1370_v37 = vmul.f32 1.442695, %v1365_v31  ;;  %v1366_v6 = vsub.f32 %v6197_v18, %v1355_v32 }
 0x60a   : > { %5332 = vpow2.f32 %v1370_v37  ;;  %v1372_v19 = vmul.f32 1.442695, %v1366_v6 }
 0x60c   : > { %5334 = vpow2.f32 %v1372_v19 }
 0x60d   : > { %v1358_v23 = vpop.xlane.xlu0 %1357 }
 0x60e   : > { %v1367_v25 = vsub.f32 %v6214_v5, %v1358_v23 }
 0x60f   : > { %v1361_v30 = vpop.xlane.xlu1 %1360 }
 0x610   : > { %v1374_v41 = vmul.f32 1.442695, %v1367_v25  ;;  %v1368_v44 = vsub.f32 %v6217_v20, %v1361_v30 }
 0x612   : > { %5336 = vpow2.f32 %v1374_v41  ;;  %v1376_v46 = vmul.f32 1.442695, %v1368_v44 }
 0x614   : > { %v6291_v50 = vpop.eup %5332  ;;  %5338 = vpow2.f32 %v1376_v46 }
 0x615   : > { %v1364_v28 = vpop.xlane.xlu0 %1363  ;;  %v1380_v51 = vsel %vm1349_vm4, %v6291_v50, 0.0 }
 0x616   : > { %v6295_v18 = vpop.eup %5334  ;;  %v1369_v15 = vsub.f32 %v6229_v40, %v1364_v28  ;;  %1381 = vadd.xlane.f32.xlu1 %v1380_v51 }
 0x617   : > { %v1383_v5 = vsel %vm1349_vm4, %v6295_v18, 0.0 }
 0x618   : > { %v1378_v55 = vmul.f32 1.442695, %v1369_v15  ;;  %1384 = vadd.xlane.f32.xlu0 %v1383_v5 }
 0x61a   : > { %5340 = vpow2.f32 %v1378_v55 }
 0x61c   : > { %v6300_v20 = vpop.eup %5336 }
 0x61d   : > { %v1570_v60 = vpop.xlane.xlu1 %1569  ;;  %v1386_v36 = vsel %vm1349_vm4, %v6300_v20, 0.0 }
 0x61e   : > { %v6304_v58 = vpop.eup %5338  ;;  %v1583_v8 = vsub.f32 %v6234_v49, %v1570_v60  ;;  %1387 = vadd.xlane.f32.xlu1 %v1386_v36 }
 0x61f   : > { %v1573_v9 = vpop.xlane.xlu0 %1572  ;;  %v1389_v40 = vsel %vm1349_vm4, %v6304_v58, 0.0 }
 0x620   : > { %v1588_v10 = vmul.f32 1.442695, %v1583_v8  ;;  %v1584_v14 = vsub.f32 %v6237_v52, %v1573_v9  ;;  %1390 = vadd.xlane.f32.xlu0 %v1389_v40 }
 0x622   : > { %5342 = vpow2.f32 %v1588_v10  ;;  %v1590_v31 = vmul.f32 1.442695, %v1584_v14 }
 0x624   : > { %v6310_v32 = vpop.eup %5340  ;;  %5344 = vpow2.f32 %v1590_v31 }
 0x625   : > { %v1576_v37 = vpop.xlane.xlu1 %1575  ;;  %v1392_v6 = vsel %vm1349_vm4, %v6310_v32, 0.0 }
 0x626   : > { %v1585_v49 = vsub.f32 %v6244_v35, %v1576_v37  ;;  %1393 = vadd.xlane.f32.xlu1 %v1392_v6 }
 0x627   : > { %v1579_v19 = vpop.xlane.xlu0 %1578 }
 0x628   : > { %v1592_v23 = vmul.f32 1.442695, %v1585_v49  ;;  %v1586_v25 = vsub.f32 %v6247_v61, %v1579_v19 }
 0x62a   : > { %5346 = vpow2.f32 %v1592_v23  ;;  %v1594_v30 = vmul.f32 1.442695, %v1586_v25 }
 0x62c   : > { %v6316_v52 = vpop.eup %5342  ;;  %5348 = vpow2.f32 %v1594_v30 }
 0x62d   : > { %v1582_v41 = vpop.xlane.xlu1 %1581  ;;  %v1598_v44 = vsel %vm1349_vm4, %v6316_v52, 0.0 }
 0x62e   : > { %v6320_v46 = vpop.eup %5344  ;;  %v1587_v28 = vsub.f32 %v6254_v17, %v1582_v41  ;;  %1599 = vadd.xlane.f32.xlu0 %v1598_v44 }
 0x62f   : > { %v1601_v35 = vsel %vm1349_vm4, %v6320_v46, 0.0 }
 0x630   : > { %v1596_v51 = vmul.f32 1.442695, %v1587_v28  ;;  %1602 = vadd.xlane.f32.xlu1 %v1601_v35 }
 0x632   : > { %5350 = vpow2.f32 %v1596_v51  ;;  %v6358_v51 = vadd.f32 %v6283_v12, %v6186_v16 }
 0x634   : > { %v6325_v61 = vpop.eup %5346 }
 0x635   : > { %v1784_v15 = vpop.xlane.xlu0 %1783  ;;  %v1604_v5 = vsel %vm1349_vm4, %v6325_v61, 0.0 }
 0x636   : > { %v6329_v55 = vpop.eup %5348  ;;  %v1797_v60 = vsub.f32 %v6259_v62, %v1784_v15  ;;  %1605 = vadd.xlane.f32.xlu0 %v1604_v5  ;;  %v1996_v15 = vsel %vm1349_vm4, %v6358_v51, -inf }
 0x637   : > { %v1787_v36 = vpop.xlane.xlu1 %1786  ;;  %v1607_v17 = vsel %vm1349_vm4, %v6329_v55, 0.0 }
 0x638   : > { %v1802_v8 = vmul.f32 1.442695, %v1797_v60  ;;  %v1798_v9 = vsub.f32 %v6262_v22, %v1787_v36  ;;  %1608 = vadd.xlane.f32.xlu1 %v1607_v17  ;;  %v6368_v60 = vadd.f32 %v6285_v13, %v6191_v27 }
 0x63a   : > { %5352 = vpow2.f32 %v1802_v8  ;;  %v1804_v40 = vmul.f32 1.442695, %v1798_v9  ;;  %v1999_v16 = vsel %vm1349_vm4, %v6368_v60, -inf }
 0x63c   : > { %v6335_v10 = vpop.eup %5350  ;;  %5354 = vpow2.f32 %v1804_v40 }
 0x63d   : > { %v1790_v14 = vpop.xlane.xlu0 %1789  ;;  %v1610_v31 = vsel %vm1349_vm4, %v6335_v10, 0.0 }
 0x63e   : > { %v1799_v62 = vsub.f32 %v6269_v42, %v1790_v14  ;;  %1611 = vadd.xlane.f32.xlu0 %v1610_v31 }
 0x63f   : > { %v1793_v37 = vpop.xlane.xlu1 %1792 }
 0x640   : > { %v1806_v6 = vmul.f32 1.442695, %v1799_v62  ;;  %v1800_v49 = vsub.f32 %v6272_v47, %v1793_v37 }
 0x642   : > { %5356 = vpow2.f32 %v1806_v6  ;;  %v1808_v19 = vmul.f32 1.442695, %v1800_v49 }
 0x644   : > { %v6341_v22 = vpop.eup %5352  ;;  %5358 = vpow2.f32 %v1808_v19 }
 0x645   : > { %v1796_v23 = vpop.xlane.xlu0 %1795  ;;  %v1812_v25 = vsel %vm1349_vm4, %v6341_v22, 0.0 }
 0x646   : > { %v6345_v30 = vpop.eup %5354  ;;  %v1801_v41 = vsub.f32 %v6279_v56, %v1796_v23  ;;  %1813 = vadd.xlane.f32.xlu1 %v1812_v25 }
 0x647   : > { %v1815_v42 = vsel %vm1349_vm4, %v6345_v30, 0.0 }
 0x648   : > { %v1810_v44 = vmul.f32 1.442695, %v1801_v41  ;;  %1816 = vadd.xlane.f32.xlu0 %v1815_v42 }
 0x64a   : > { %5360 = vpow2.f32 %v1810_v44 }
 0x64c   : > { %v6350_v47 = vpop.eup %5356 }
 0x64d   : > { %v1818_v28 = vsel %vm1349_vm4, %v6350_v47, 0.0 }
 0x64e   : > { %v6354_v35 = vpop.eup %5358  ;;  %1819 = vadd.xlane.f32.xlu1 %v1818_v28 }
 0x64f   : > { %v1821_v56 = vsel %vm1349_vm4, %v6354_v35, 0.0 }
 0x650   : > { %1822 = vadd.xlane.f32.xlu0 %v1821_v56 }
 0x654   : > { %v6364_v5 = vpop.eup %5360  ;;  %1997 = vmax.xlane.f32.xlu0 %v1996_v15 }
 0x655   : > { %v1824_v36 = vsel %vm1349_vm4, %v6364_v5, 0.0 }
 0x656   : > { %1825 = vadd.xlane.f32.xlu1 %v1824_v36 }
 0x65a   : > { %2000 = vmax.xlane.f32.xlu1 %v1999_v16 }
 0x6a3   : > { %v1382_v12 = vpop.xlane.xlu1 %1381 }
 0x6a4   : > { %5362 = vrcp.f32 %v1382_v12 }
 0x6a5   : > { %v1385_v17 = vpop.xlane.xlu0 %1384 }
 0x6a6   : > { %5364 = vrcp.f32 %v1385_v17 }
 0x6ab   : > { %v1388_v8 = vpop.xlane.xlu1 %1387 }
 0x6ac   : > { %5366 = vrcp.f32 %v1388_v8 }
 0x6ad   : > { %v1391_v9 = vpop.xlane.xlu0 %1390 }
 0x6ae   : > { %v5363_v40 = vpop.eup %5362  ;;  %5368 = vrcp.f32 %v1391_v9 }
 0x6af   : > { %v1396_v27 = vmul.f32 %v5363_v40, %v6291_v50 }
 0x6b0   : > { %v5365_v14 = vpop.eup %5364 }
 0x6b1   : > { %v1398_v13 = vmul.f32 %v5365_v14, %v6295_v18 }
 0x6b3   : > { %v1405_v31 = vpack.c.bf16 %v1398_v13, %v1396_v27  ;;  %v1394_v62 = vpop.xlane.xlu1 %1393 }
 0x6b4   : > { %5370 = vrcp.f32 %v1394_v62 }
 0x6b5   : > { %4775 = vmatmul.mubr.msk.bf16.vlgmr.msra.gmra.mrb[36].mxu1 %vm1349_vm4, %v1405_v31 }
 0x6b6   : > { %v5367_v37 = vpop.eup %5366  ;;  %4805 = vmatpush3.bf16.msra.mxu1 %v6095_v45  ;;  %4778 = vmatprep.mubr.msk.bf16.mxu1 %vm5643_vm2, %v5642_v21 }
 0x6b7   : > { %4806 = vmatprep.subr.bf16.mxu1 %v5642_v21  ;;  %v1400_v49 = vmul.f32 %v5367_v37, %v6300_v20 }
 0x6b8   : > { %v5369_v6 = vpop.eup %5368 }
 0x6b9   : > { %v1402_v50 = vmul.f32 %v5369_v6, %v6304_v58 }
 0x6ba   : > { %4807 = vmatpush3.bf16.msra.mxu1 %v6110_v11 }
 0x6bb   : > { %v1600_v18 = vpop.xlane.xlu0 %1599  ;;  %4808 = vmatprep.subr.bf16.mxu1 %v5642_v21  ;;  %v1406_v19 = vpack.c.bf16 %v1402_v50, %v1400_v49 }
 0x6bc   : > { %5372 = vrcp.f32 %v1600_v18 }
 0x6bd   : > { %v1603_v23 = vpop.xlane.xlu1 %1602  ;;  %4779 = vmatmul.mubr.msk.bf16.gmra.mrb[40].mxu1 %vm1349_vm4, %v1406_v19 }
 0x6be   : > { %v5371_v25 = vpop.eup %5370  ;;  %5374 = vrcp.f32 %v1603_v23  ;;  %4809 = vmatpush3.bf16.msra.mxu1 %v6122_v59  ;;  %4782 = vmatprep.mubr.msk.bf16.mxu1 %vm5643_vm2, %v5642_v21 }
 0x6bf   : > { %v1404_v20 = vmul.f32 %v5371_v25, %v6310_v32  ;;  %4840 = vmatprep.subr.bf16.mxu1 %v5642_v21 }
 0x6c1   : > { %v1407_v41 = vpack.c.bf16 %v1404_v20, %v1404_v20 }
 0x6c3   : > { %v1606_v58 = vpop.xlane.xlu0 %1605 }
 0x6c4   : > { %5376 = vrcp.f32 %v1606_v58 }
 0x6c5   : > { %v1609_v42 = vpop.xlane.xlu1 %1608  ;;  %4783 = vmatmul.mubr.msk.bf16.gmra.mrb[44].mxu1 %vm1349_vm4, %v1407_v41 }
 0x6c6   : > { %v5373_v44 = vpop.eup %5372  ;;  %5378 = vrcp.f32 %v1609_v42  ;;  %4810 = vmatprep.mubr.msk.bf16.mxu1 %vm5643_vm2, %v5642_v21 }
 0x6c7   : > { %v1614_v56 = vmul.f32 %v5373_v44, %v6316_v52 }
 0x6c8   : > { %v5375_v28 = vpop.eup %5374 }
 0x6c9   : > { %v1616_v15 = vmul.f32 %v5375_v28, %v6320_v46 }
 0x6cb   : > { %v1623_v36 = vpack.c.bf16 %v1616_v15, %v1614_v56  ;;  %v1612_v32 = vpop.xlane.xlu0 %1611 }
 0x6cc   : > { %5380 = vrcp.f32 %v1612_v32 }
 0x6cd   : > { %4811 = vmatmul.mubr.msk.bf16.vlgmr.msra.gmra.mrb[48].mxu1 %vm1349_vm4, %v1623_v36 }
 0x6ce   : > { %v5377_v16 = vpop.eup %5376  ;;  %4841 = vmatpush3.bf16.msra.mxu1 %v6095_v45  ;;  %4814 = vmatprep.mubr.msk.bf16.mxu1 %vm5643_vm2, %v5642_v21 }
 0x6cf   : > { %4842 = vmatprep.subr.bf16.mxu1 %v5642_v21  ;;  %v1618_v17 = vmul.f32 %v5377_v16, %v6325_v61 }
 0x6d0   : > { %v5379_v12 = vpop.eup %5378 }
 0x6d1   : > { %v1620_v52 = vmul.f32 %v5379_v12, %v6329_v55 }
 0x6d2   : > { %4843 = vmatpush3.bf16.msra.mxu1 %v6110_v11 }
 0x6d3   : > { %v1814_v46 = vpop.xlane.xlu1 %1813  ;;  %4844 = vmatprep.subr.bf16.mxu1 %v5642_v21  ;;  %v1624_v8 = vpack.c.bf16 %v1620_v52, %v1618_v17 }
 0x6d4   : > { %5382 = vrcp.f32 %v1814_v46 }
 0x6d5   : > { %v1817_v9 = vpop.xlane.xlu0 %1816  ;;  %4815 = vmatmul.mubr.msk.bf16.gmra.mrb[52].mxu1 %vm1349_vm4, %v1624_v8 }
 0x6d6   : > { %v5381_v40 = vpop.eup %5380  ;;  %5384 = vrcp.f32 %v1817_v9  ;;  %4845 = vmatpush3.bf16.msra.mxu1 %v6122_v59  ;;  %4818 = vmatprep.mubr.msk.bf16.mxu1 %vm5643_vm2, %v5642_v21 }
 0x6d7   : > { %v1622_v61 = vmul.f32 %v5381_v40, %v6335_v10  ;;  %5214 = vmatprep.subr.bf16.mxu1 %v5642_v21 }
 0x6d9   : > { %v1625_v14 = vpack.c.bf16 %v1622_v61, %v1622_v61 }
 0x6db   : > { %v1820_v55 = vpop.xlane.xlu1 %1819 }
 0x6dc   : > { %5386 = vrcp.f32 %v1820_v55 }
 0x6dd   : > { %v1823_v27 = vpop.xlane.xlu0 %1822  ;;  %4819 = vmatmul.mubr.msk.bf16.gmra.mrb[56].mxu1 %vm1349_vm4, %v1625_v14 }
 0x6de   : > { %v5383_v13 = vpop.eup %5382  ;;  %5388 = vrcp.f32 %v1823_v27  ;;  %4846 = vmatprep.mubr.msk.bf16.mxu1 %vm5643_vm2, %v5642_v21 }
 0x6df   : > { %v1828_v62 = vmul.f32 %v5383_v13, %v6341_v22 }
 0x6e0   : > { %v5385_v31 = vpop.eup %5384 }
 0x6e1   : > { %v1830_v37 = vmul.f32 %v5385_v31, %v6345_v30 }
 0x6e3   : > { %v1837_v6 = vpack.c.bf16 %v1830_v37, %v1828_v62  ;;  %v1826_v10 = vpop.xlane.xlu1 %1825 }
 0x6e4   : > { %5390 = vrcp.f32 %v1826_v10 }
 0x6e5   : > { %4847 = vmatmul.mubr.msk.bf16.vlgmr.msra.gmra.mrb[60].mxu1 %vm1349_vm4, %v1837_v6 }
 0x6e6   : > { %v5387_v49 = vpop.eup %5386  ;;  %5217 = vmatpush3.bf16.xpose.msra.mxu1 %v6078_v54  ;;  %4850 = vmatprep.mubr.msk.bf16.mxu1 %vm5643_vm2, %v5642_v21 }
 0x6e7   : > { %5215 = vmatprep.subr.bf16.mxu1 %v5642_v21  ;;  %v1832_v18 = vmul.f32 %v5387_v49, %v6350_v47 }
 0x6e8   : > { %v5389_v50 = vpop.eup %5388 }
 0x6e9   : > { %v1834_v22 = vmul.f32 %v5389_v50, %v6354_v35 }
 0x6eb   : > { %v1838_v19 = vpack.c.bf16 %v1834_v22, %v1832_v18 }
 0x6ed   : > { %4851 = vmatmul.mubr.msk.bf16.gmra.mrb[64].mxu1 %vm1349_vm4, %v1838_v19 }
 0x6ee   : > { %v5391_v30 = vpop.eup %5390  ;;  %5218 = vmatpush3.bf16.xpose.msra.mxu1 %v6083_v4  ;;  %4854 = vmatprep.mubr.msk.bf16.mxu1 %vm5643_vm2, %v5642_v21  ;;  %v1927_v4 = vmul.f32 %v6005_v3, %v6108_v7 }
 0x6ef   : > { %5216 = vmatprep.subr.bf16.mxu1 %v5642_v21  ;;  %v1836_v54 = vmul.f32 %v5391_v30, %v6364_v5 }
 0x6f1   : > { %v1839_v23 = vpack.c.bf16 %v1836_v54, %v1836_v54 }
 0x6f5   : > { %4855 = vmatmul.mubr.msk.bf16.gmra.mrb[68].mxu1 %vm1349_vm4, %v1839_v23 }
 0x6f6   : > { %5219 = vmatpush3.bf16.xpose.msra.mxu1 %v6088_v24  ;;  %4868 = vmatprep.mubr.msk.bf16.mxu1 %vm5643_vm2, %v5642_v21  ;;  %v1930_v24 = vpack.c.bf16 %v1927_v4, %v1927_v4 }
 0x6f7   : > { %4876 = vmatprep.subr.bf16.mxu1 %v5642_v21 }
 0x6fd   : > { %4869 = vmatmul.mubr.msk.bf16.vlgmr.msra.gmra.mrb[72].mxu1 %vm846_vm1, %v1929_v34 }
 0x6fe   : > { %4877 = vmatpush3.bf16.msra.mxu1 %v6095_v45  ;;  %4872 = vmatprep.mubr.msk.bf16.mxu1 %vm5643_vm2, %v5642_v21 }
 0x6ff   : > { %4878 = vmatprep.subr.bf16.mxu1 %v5642_v21 }
 0x702   : > { %4879 = vmatpush3.bf16.msra.mxu1 %v6110_v11 }
 0x703   : > { %4880 = vmatprep.subr.bf16.mxu1 %v5642_v21 }
 0x705   : > { %4873 = vmatmul.mubr.msk.bf16.gmra.mrb[76].mxu1 %vm846_vm1, %v1930_v24 }
 0x706   : > { %4881 = vmatpush3.bf16.msra.mxu1 %v6122_v59  ;;  %4882 = vmatprep.mubr.msk.bf16.mxu1 %vm5643_vm2, %v5642_v21 }
 0x707   : > { %4910 = vmatprep.subr.bf16.mxu1 %v5642_v21 }
 0x788   : > { %v1455_v29 = vpop.f32.mrb[36].mxu1 }
 0x789   : > { %v4776_v33 = vpop.f32.mrb[37].mxu1  ;;  %v1477_v59 = vmul.f32 %v5990_v63, %v1455_v29 }
 0x78a   : > { %v1458_v34 = vpop.f32.mrb[38].mxu1  ;;  %v6473_v33 = vld [vmem:[%s7410_s19 + $0x2] ss:$0 sm:$0xff] }
 0x78b   : > { %v4777_v45 = vpop.f32.mrb[39].mxu1  ;;  %v1478_v28 = vmul.f32 %v5990_v63, %v1458_v34 }
 0x790   : > { %v1463_v47 = vpop.f32.mrb[40].mxu1 }
 0x791   : > { %v4780_v3 = vpop.f32.mrb[41].mxu1  ;;  %v1479_v12 = vmul.f32 %v5990_v63, %v1463_v47 }
 0x792   : > { %v1466_v7 = vpop.f32.mrb[42].mxu1 }
 0x793   : > { %v4781_v11 = vpop.f32.mrb[43].mxu1  ;;  %v1480_v8 = vmul.f32 %v5990_v63, %v1466_v7  ;;  %v2001_v7 = vpop.xlane.xlu1 %2000 }
 0x798   : > { %v1471_v35 = vpop.f32.mrb[44].mxu1 }
 0x799   : > { %v4784_v5 = vpop.f32.mrb[45].mxu1  ;;  %v1481_v27 = vmul.f32 %v5990_v63, %v1471_v35  ;;  %v1998_v63 = vpop.xlane.xlu0 %1997 }
 0x79a   : > { %v1474_v25 = vpop.f32.mrb[46].mxu1  ;;  %v2011_v47 = vsub.f32 %v6358_v51, %v1998_v63 }
 0x79b   : > { %v4785_v20 = vpop.f32.mrb[47].mxu1  ;;  %v2012_v25 = vsub.f32 %v6368_v60, %v2001_v7 }
 0x79c   : > { %v2016_v11 = vmul.f32 1.442695, %v2011_v47 }
 0x79e   : > { %5392 = vpow2.f32 %v2016_v11 }
 0x7a0   : > { %v1669_v58 = vpop.f32.mrb[48].mxu1 }
 0x7a1   : > { %v1691_v41 = vmul.f32 %v5995_v0, %v1669_v58  ;;  %v4812_v42 = vpop.f32.mrb[49].mxu1 }
 0x7a2   : > { %v1672_v44 = vpop.f32.mrb[50].mxu1 }
 0x7a3   : > { %v1696_v56 = vadd.f32 %v1691_v41, %v1477_v59  ;;  %v1692_v15 = vmul.f32 %v5995_v0, %v1672_v44  ;;  %v4813_v36 = vpop.f32.mrb[51].mxu1  ;;  %v2018_v41 = vmul.f32 1.442695, %v2012_v25 }
 0x7a5   : > { %v1697_v32 = vadd.f32 %v1692_v15, %v1478_v28  ;;  %5394 = vpow2.f32 %v2018_v41 }
 0x7a8   : > { %v1677_v16 = vpop.f32.mrb[52].mxu1 }
 0x7a9   : > { %v1693_v17 = vmul.f32 %v5995_v0, %v1677_v16  ;;  %v4816_v52 = vpop.f32.mrb[53].mxu1 }
 0x7aa   : > { %v1680_v46 = vpop.f32.mrb[54].mxu1 }
 0x7ab   : > { %v1698_v9 = vadd.f32 %v1693_v17, %v1479_v12  ;;  %v1694_v40 = vmul.f32 %v5995_v0, %v1680_v46  ;;  %v4817_v61 = vpop.f32.mrb[55].mxu1 }
 0x7ad   : > { %v1699_v55 = vadd.f32 %v1694_v40, %v1480_v8 }
 0x7b0   : > { %v1685_v14 = vpop.f32.mrb[56].mxu1 }
 0x7b1   : > { %v1695_v13 = vmul.f32 %v5995_v0, %v1685_v14  ;;  %v4820_v31 = vpop.f32.mrb[57].mxu1 }
 0x7b2   : > { %v1688_v62 = vpop.f32.mrb[58].mxu1 }
 0x7b3   : > { %v1700_v37 = vadd.f32 %v1695_v13, %v1481_v27  ;;  %v4821_v6 = vpop.f32.mrb[59].mxu1 }
 0x7b8   : > { %v1883_v10 = vpop.f32.mrb[60].mxu1 }
 0x7b9   : > { %v1905_v49 = vmul.f32 %v6000_v2, %v1883_v10  ;;  %v4848_v50 = vpop.f32.mrb[61].mxu1 }
 0x7ba   : > { %v1886_v18 = vpop.f32.mrb[62].mxu1 }
 0x7bb   : > { %v6462_v22 = vadd.f32 %v1905_v49, %v1696_v56  ;;  %v1906_v19 = vmul.f32 %v6000_v2, %v1886_v18  ;;  %v4849_v30 = vpop.f32.mrb[63].mxu1 }
 0x7bd   : > { %v6465_v54 = vadd.f32 %v1906_v19, %v1697_v32  ;;  %v5393_v32 = vpop.eup %5392 }
 0x7be   : > { %v2026_v52 = vsel %vm1349_vm4, %v5393_v32, 0.0 }
 0x7c0   : > { %v1891_v23 = vpop.f32.mrb[64].mxu1 }
 0x7c1   : > { %v1907_v0 = vmul.f32 %v6000_v2, %v1891_v23  ;;  %v4852_v4 = vpop.f32.mrb[65].mxu1 }
 0x7c2   : > { %v1894_v24 = vpop.f32.mrb[66].mxu1 }
 0x7c3   : > { %v6468_v29 = vadd.f32 %v1907_v0, %v1698_v9  ;;  %v1908_v34 = vmul.f32 %v6473_v33, %v1894_v24  ;;  %v4853_v45 = vpop.f32.mrb[67].mxu1 }
 0x7c4   : > { %v5281_v45 = vld [vmem:[%s7402_s11 + $0x8] sm:$0xff]  }
 0x7c5   : > { %v6477_v3 = vadd.f32 %v1908_v34, %v1699_v55  ;;  %v5280_v34 = vld [vmem:[%s7402_s11] sm:$0xff]  }
 0x7c6   : > { %4895 = vmatpush3.bf16.msra.mxu0 %v5280_v34 }
 0x7c7   : > { %4896 = vmatprep.subr.bf16.mxu0 %v5642_v21 }
 0x7c8   : > { %v1899_v35 = vpop.f32.mrb[68].mxu1 }
 0x7c9   : > { %v1909_v2 = vmul.f32 %v6473_v33, %v1899_v35  ;;  %v4856_v5 = vpop.f32.mrb[69].mxu1 }
 0x7ca   : > { %v1902_v20 = vpop.f32.mrb[70].mxu1  ;;  %4897 = vmatpush3.bf16.msra.mxu0 %v5281_v45 }
 0x7cb   : > { %v6481_v58 = vadd.f32 %v1909_v2, %v1700_v37  ;;  %v4857_v59 = vpop.f32.mrb[71].mxu1  ;;  %4926 = vmatprep.subr.bf16.mxu0 %v5642_v21 }
 0x7d0   : > { %v1982_v42 = vpop.f32.mrb[72].mxu1 }
 0x7d1   : > { %v1983_v44 = vadd.f32 %v1982_v42, %v6206_v39  ;;  %v4870_v51 = vpop.f32.mrb[73].mxu1 }
 0x7d2   : > { %v1985_v28 = vpop.f32.mrb[74].mxu1  ;;  %v6514_v51 = vld [vmem:[%s7410_s19 + $0x3] ss:$0 sm:$0xff] }
 0x7d3   : > { %v1986_v56 = vadd.f32 %v1985_v28, %v6211_v1  ;;  %v4871_v15 = vpop.f32.mrb[75].mxu1  ;;  %v2002_v36 = vsel %vm1349_vm4, %v1983_v44, -inf  ;;  %v5395_v1 = vpop.eup %5394 }
 0x7d4   : > { %2003 = vmax.xlane.f32.xlu0 %v2002_v36  ;;  %v2029_v9 = vsel %vm1349_vm4, %v5395_v1, 0.0 }
 0x7d5   : > { %v2005_v60 = vsel %vm1349_vm4, %v1986_v56, -inf }
 0x7d6   : > { %2006 = vmax.xlane.f32.xlu1 %v2005_v60 }
 0x7d8   : > { %v1990_v16 = vpop.f32.mrb[76].mxu1 }
 0x7d9   : > { %v1991_v12 = vadd.f32 %v1990_v16, %v6226_v26  ;;  %v4874_v17 = vpop.f32.mrb[77].mxu1 }
 0x7da   : > { %2027 = vadd.xlane.f32.xlu1 %v2026_v52  ;;  %v1993_v39 = vpop.f32.mrb[78].mxu1 }
 0x7db   : > { %v4875_v46 = vpop.f32.mrb[79].mxu1  ;;  %v2008_v8 = vsel %vm1349_vm4, %v1991_v12, -inf }
 0x7dc   : > { %2009 = vmax.xlane.f32.xlu0 %v2008_v8 }
 0x7e0   : > { %2030 = vadd.xlane.f32.xlu0 %v2029_v9 }
 0x861   : > { %v2004_v40 = vpop.xlane.xlu0 %2003 }
 0x862   : > { %v2013_v61 = vsub.f32 %v1983_v44, %v2004_v40 }
 0x863   : > { %v2007_v55 = vpop.xlane.xlu1 %2006 }
 0x864   : > { %v2020_v14 = vmul.f32 1.442695, %v2013_v61  ;;  %v2014_v27 = vsub.f32 %v1986_v56, %v2007_v55 }
 0x866   : > { %5396 = vpow2.f32 %v2020_v14  ;;  %v2022_v26 = vmul.f32 1.442695, %v2014_v27 }
 0x867   : > { %v2028_v31 = vpop.xlane.xlu1 %2027 }
 0x868   : > { %5398 = vpow2.f32 %v2022_v26 }
 0x869   : > { %v2010_v13 = vpop.xlane.xlu0 %2009  ;;  %5400 = vrcp.f32 %v2028_v31 }
 0x86a   : > { %v2015_v62 = vsub.f32 %v1991_v12, %v2010_v13  ;;  %v4391_v13 = vld [vmem:[%s7403_s12] ss:$0 sm:$0xff] }
 0x86c   : > { %v2024_v37 = vmul.f32 1.442695, %v2015_v62 }
 0x86d   : > { %v2031_v6 = vpop.xlane.xlu0 %2030 }
 0x86e   : > { %5402 = vpow2.f32 %v2024_v37 }
 0x86f   : > { %5404 = vrcp.f32 %v2031_v6 }
 0x870   : > { %v5397_v10 = vpop.eup %5396 }
 0x871   : > { %v2032_v49 = vsel %vm1349_vm4, %v5397_v10, 0.0 }
 0x872   : > { %v5399_v50 = vpop.eup %5398  ;;  %2033 = vadd.xlane.f32.xlu1 %v2032_v49 }
 0x873   : > { %v2035_v18 = vsel %vm1349_vm4, %v5399_v50, 0.0  ;;  %v5401_v19 = vpop.eup %5400 }
 0x874   : > { %2036 = vadd.xlane.f32.xlu0 %v2035_v18  ;;  %v2042_v0 = vmul.f32 %v5401_v19, %v5393_v32 }
 0x878   : > { %v5403_v30 = vpop.eup %5402 }
 0x879   : > { %v5405_v23 = vpop.eup %5404  ;;  %v2038_v63 = vsel %vm1349_vm4, %v5403_v30, 0.0 }
 0x87a   : > { %v2044_v4 = vmul.f32 %v5405_v23, %v5395_v1  ;;  %2039 = vadd.xlane.f32.xlu1 %v2038_v63 }
 0x87c   : > { %v2051_v24 = vpack.c.bf16 %v2044_v4, %v2042_v0 }
 0x87e   : > { %4883 = vmatmul.mubr.msk.bf16.vlgmr.msra.gmra.mrb[80].mxu1 %vm1349_vm4, %v2051_v24 }
 0x87f   : > { %4886 = vmatprep.mubr.msk.bf16.mxu1 %vm5643_vm2, %v5642_v21 }
 0x8ff   : > { %v2034_v47 = vpop.xlane.xlu1 %2033 }
 0x900   : > { %5406 = vrcp.f32 %v2034_v47 }
 0x901   : > { %v2037_v7 = vpop.xlane.xlu0 %2036 }
 0x902   : > { %5408 = vrcp.f32 %v2037_v7 }
 0x907   : > { %v2040_v11 = vpop.xlane.xlu1 %2039 }
 0x908   : > { %5410 = vrcp.f32 %v2040_v11 }
 0x90a   : > { %v5407_v35 = vpop.eup %5406 }
 0x90b   : > { %v2046_v5 = vmul.f32 %v5407_v35, %v5397_v10 }
 0x90c   : > { %v5409_v2 = vpop.eup %5408 }
 0x90d   : > { %v2048_v25 = vmul.f32 %v5409_v2, %v5399_v50 }
 0x90f   : > { %v2052_v20 = vpack.c.bf16 %v2048_v25, %v2046_v5 }
 0x911   : > { %4887 = vmatmul.mubr.msk.bf16.gmra.mrb[84].mxu1 %vm1349_vm4, %v2052_v20 }
 0x912   : > { %v5411_v59 = vpop.eup %5410  ;;  %4890 = vmatprep.mubr.msk.bf16.mxu1 %vm5643_vm2, %v5642_v21 }
 0x913   : > { %v2050_v41 = vmul.f32 %v5411_v59, %v5403_v30 }
 0x915   : > { %v2053_v42 = vpack.c.bf16 %v2050_v41, %v2050_v41 }
 0x919   : > { %4891 = vmatmul.mubr.msk.bf16.gmra.mrb[88].mxu1 %vm1349_vm4, %v2053_v42 }
 0x91a   : > { %4914 = vmatprep.mubr.msk.bf16.mxu1 %vm5643_vm2, %v5642_v21 }
 0x951   : > { %v2097_v44 = vpop.f32.mrb[80].mxu1 }
 0x952   : > { %v2119_v28 = vmul.f32 %v6514_v51, %v2097_v44  ;;  %v4884_v56 = vpop.f32.mrb[81].mxu1 }
 0x953   : > { %v2100_v15 = vpop.f32.mrb[82].mxu1 }
 0x954   : > { %v2124_v36 = vadd.f32 %v2119_v28, %v6462_v22  ;;  %v2120_v60 = vmul.f32 %v6514_v51, %v2100_v15  ;;  %v4885_v32 = vpop.f32.mrb[83].mxu1  ;;  %v5283_v15 = vld [vmem:[%s7404_s13 + $0x8] sm:$0xff]  }
 0x956   : > { %v2125_v16 = vadd.f32 %v2120_v60, %v6465_v54 }
 0x958   : > { %v2133_v12 = vpack.c.bf16 %v2125_v16, %v2124_v36 }
 0x95a   : > { %4899 = vmatmul.mubr.msk.bf16.vlgmr.msra.gmra.mrb[52].mxu0 %vm846_vm1, %v2133_v12 }
 0x95b   : > { %4902 = vmatprep.mubr.msk.bf16.mxu0 %vm5643_vm2, %v5642_v21 }
 0x9e4   : > { %v2105_v17 = vpop.f32.mrb[84].mxu1 }
 0x9e5   : > { %v2121_v52 = vmul.f32 %v6514_v51, %v2105_v17  ;;  %v4888_v39 = vpop.f32.mrb[85].mxu1 }
 0x9e6   : > { %v2108_v46 = vpop.f32.mrb[86].mxu1 }
 0x9e7   : > { %v2126_v8 = vadd.f32 %v2121_v52, %v6468_v29  ;;  %v2122_v22 = vmul.f32 %v6514_v51, %v2108_v46  ;;  %v4889_v1 = vpop.f32.mrb[87].mxu1 }
 0x9e9   : > { %v2127_v9 = vadd.f32 %v2122_v22, %v6477_v3 }
 0x9eb   : > { %v2134_v40 = vpack.c.bf16 %v2127_v9, %v2126_v8 }
 0x9ec   : > { %v2113_v54 = vpop.f32.mrb[88].mxu1 }
 0x9ed   : > { %v2123_v61 = vmul.f32 %v6514_v51, %v2113_v54  ;;  %v4892_v55 = vpop.f32.mrb[89].mxu1  ;;  %4903 = vmatmul.mubr.msk.bf16.gmra.mrb[56].mxu0 %vm846_vm1, %v2134_v40 }
 0x9ee   : > { %v2116_v14 = vpop.f32.mrb[90].mxu1  ;;  %4906 = vmatprep.mubr.msk.bf16.mxu0 %vm5643_vm2, %v5642_v21 }
 0x9ef   : > { %v2128_v27 = vadd.f32 %v2123_v61, %v6481_v58  ;;  %v4893_v26 = vpop.f32.mrb[91].mxu1 }
 0x9f1   : > { %v2135_v29 = vpack.c.bf16 %v2128_v27, %v2128_v27 }
 0x9f5   : > { %4907 = vmatmul.mubr.msk.bf16.gmra.mrb[60].mxu0 %vm846_vm1, %v2135_v29 }
 0x9f6   : > { %4942 = vmatprep.mubr.msk.bf16.mxu0 %vm5643_vm2, %v5642_v21 }
 0xa2d   : > { %v2191_v3 = vpop.f32.mrb[52].mxu0 }
 0xa2e   : > { %v2213_v31 = vadd.f32 %v2191_v3, %v5889_v38  ;;  %v4900_v62 = vpop.f32.mrb[53].mxu0 }
 0xa2f   : > { %v2194_v37 = vpop.f32.mrb[54].mxu0 }
 0xa30   : > { %v6539_v6 = vadd.f32 %v4391_v13, %v2213_v31  ;;  %v2214_v58 = vadd.f32 %v2194_v37, %v5893_v43  ;;  %v4901_v10 = vpop.f32.mrb[55].mxu0 }
 0xa31   : > { %v5285_v10 = vld [vmem:[%s7406_s15 + $0x8] sm:$0xff]  }
 0xa32   : > { %v6542_v49 = vadd.f32 %v4391_v13, %v2214_v58  ;;  %v2230_v50 = vsel %vm846_vm1, %v6539_v6, 0.0  ;;  %v5284_v58 = vld [vmem:[%s7406_s15] sm:$0xff]  }
 0xa33   : > { %2231 = vadd.xlane.f32.xlu0 %v2230_v50  ;;  %4927 = vmatpush3.bf16.msra.mxu0 %v5284_v58  ;;  %v5286_v50 = vld [vmem:[%s7406_s15 + $0x10] sm:$0xff]  }
 0xa34   : > { %v2233_v18 = vsel %vm846_vm1, %v6542_v49, 0.0  ;;  %4928 = vmatprep.subr.bf16.mxu0 %v5642_v21 }
 0xa35   : > { %2234 = vadd.xlane.f32.xlu1 %v2233_v18  ;;  %v5287_v18 = vld [vmem:[%s7406_s15 + $0x18] sm:$0xff]  }
 0xa37   : > { %4929 = vmatpush3.bf16.msra.mxu0 %v5285_v10 }
 0xa38   : > { %4930 = vmatprep.subr.bf16.mxu0 %v5642_v21 }
 0xa3b   : > { %4931 = vmatpush3.bf16.msra.mxu0 %v5286_v50 }
 0xa3c   : > { %4932 = vmatprep.subr.bf16.mxu0 %v5642_v21 }
 0xa3f   : > { %4933 = vmatpush3.bf16.msra.mxu0 %v5287_v18 }
 0xa40   : > { %4934 = vmatprep.subr.bf16.mxu0 %v5642_v21 }
 0xac0   : > { %v2232_v19 = vpop.xlane.xlu0 %2231  ;;  %v2199_v30 = vpop.f32.mrb[56].mxu0 }
 0xac1   : > { %v2245_v38 = vmul.f32 0.03125, %v2232_v19  ;;  %v2215_v23 = vadd.f32 %v2199_v30, %v5897_v48  ;;  %v4904_v63 = vpop.f32.mrb[57].mxu0  ;;  %v5288_v19 = vld [vmem:[%s7406_s15 + $0x20] sm:$0xff]   ;;  %v5289_v30 = vld [vmem:[%s7406_s15 + $0x28] sm:$0xff]  }
 0xac2   : > { %v2235_v0 = vpop.xlane.xlu1 %2234  ;;  %v2202_v4 = vpop.f32.mrb[58].mxu0  ;;  %4935 = vmatpush3.bf16.msra.mxu0 %v5288_v19 }
 0xac3   : > { %v2250_v43 = vsub.f32 %v6539_v6, %v2245_v38  ;;  %v6550_v24 = vadd.f32 %v4391_v13, %v2215_v23  ;;  %v2216_v34 = vadd.f32 %v2202_v4, %v5901_v53  ;;  %v4905_v45 = vpop.f32.mrb[59].mxu0  ;;  %v2246_v47 = vmul.f32 0.03125, %v2235_v0  ;;  %4936 = vmatprep.subr.bf16.mxu0 %v5642_v21  ;;  %v5290_v38 = vld [vmem:[%s7406_s15 + $0x30] sm:$0xff]   ;;  %v5291_v23 = vld [vmem:[%s7406_s15 + $0x38] sm:$0xff]  }
 0xac5   : > { %v6553_v7 = vadd.f32 %v4391_v13, %v2216_v34  ;;  %v2236_v11 = vsel %vm846_vm1, %v6550_v24, 0.0  ;;  %v2255_v35 = vmul.f32 %v2250_v43, %v2250_v43  ;;  %v2251_v5 = vsub.f32 %v6542_v49, %v2246_v47 }
 0xac6   : > { %2237 = vadd.xlane.f32.xlu0 %v2236_v11  ;;  %4937 = vmatpush3.bf16.msra.mxu0 %v5289_v30 }
 0xac7   : > { %v2239_v48 = vsel %vm846_vm1, %v6553_v7, 0.0  ;;  %v2260_v42 = vsel %vm846_vm1, %v2255_v35, 0.0  ;;  %v2256_v28 = vmul.f32 %v2251_v5, %v2251_v5  ;;  %4938 = vmatprep.subr.bf16.mxu0 %v5642_v21 }
 0xac8   : > { %2240 = vadd.xlane.f32.xlu1 %v2239_v48  ;;  %v2207_v2 = vpop.f32.mrb[60].mxu0 }
 0xac9   : > { %v2217_v25 = vadd.f32 %v2207_v2, %v5905_v57  ;;  %v4908_v20 = vpop.f32.mrb[61].mxu0  ;;  %v2263_v56 = vsel %vm846_vm1, %v2256_v28, 0.0  ;;  %v5282_v57 = vld [vmem:[%s7404_s13] sm:$0xff]  }
 0xaca   : > { %v2210_v53 = vpop.f32.mrb[62].mxu0  ;;  %4911 = vmatpush3.bf16.msra.mxu1 %v5282_v57  ;;  %4939 = vmatpush3.bf16.msra.mxu0 %v5290_v38 }
 0xacb   : > { %v6561_v59 = vadd.f32 %v4391_v13, %v2217_v25  ;;  %v4909_v41 = vpop.f32.mrb[63].mxu0  ;;  %4912 = vmatprep.subr.bf16.mxu1 %v5642_v21  ;;  %4940 = vmatprep.subr.bf16.mxu0 %v5642_v21 }
 0xacc   : > { %2261 = vadd.xlane.f32.xlu1 %v2260_v42 }
 0xacd   : > { %v2242_v44 = vsel %vm846_vm1, %v6561_v59, 0.0 }
 0xace   : > { %2243 = vadd.xlane.f32.xlu0 %v2242_v44  ;;  %4913 = vmatpush3.bf16.msra.mxu1 %v5283_v15  ;;  %v4392_v44 = vld [vmem:[%s7405_s14] ss:$0 sm:$0xff] }
 0xacf   : > { %4954 = vmatprep.subr.bf16.mxu1 %v5642_v21  ;;  %4941 = vmatpush3.bf16.msra.mxu0 %v5291_v23 }
 0xad0   : > { %4970 = vmatprep.subr.bf16.mxu0 %v5642_v21 }
 0xad2   : > { %2264 = vadd.xlane.f32.xlu0 %v2263_v56 }
 0xb53   : > { %v2238_v36 = vpop.xlane.xlu0 %2237 }
 0xb54   : > { %v2247_v60 = vmul.f32 0.03125, %v2238_v36 }
 0xb55   : > { %v2241_v32 = vpop.xlane.xlu1 %2240 }
 0xb56   : > { %v6576_v16 = vsub.f32 %v6550_v24, %v2247_v60  ;;  %v2248_v12 = vmul.f32 0.03125, %v2241_v32 }
 0xb58   : > { %v6579_v17 = vsub.f32 %v6553_v7, %v2248_v12  ;;  %v2257_v52 = vmul.f32 %v6576_v16, %v6576_v16 }
 0xb59   : > { %v2262_v39 = vpop.xlane.xlu1 %2261 }
 0xb5a   : > { %v2275_v46 = vmul.f32 0.03125, %v2262_v39  ;;  %v2266_v8 = vsel %vm846_vm1, %v2257_v52, 0.0  ;;  %v2258_v22 = vmul.f32 %v6579_v17, %v6579_v17 }
 0xb5b   : > { %2267 = vadd.xlane.f32.xlu1 %v2266_v8  ;;  %v2244_v1 = vpop.xlane.xlu0 %2243 }
 0xb5c   : > { %v2249_v9 = vmul.f32 0.03125, %v2244_v1  ;;  %v2269_v40 = vsel %vm846_vm1, %v2258_v22, 0.0  ;;  %v2280_v54 = vadd.f32 1e-05, %v2275_v46 }
 0xb5d   : > { %2270 = vadd.xlane.f32.xlu0 %v2269_v40 }
 0xb5e   : > { %v2254_v61 = vsub.f32 %v6561_v59, %v2249_v9  ;;  %5412 = vrsqrt.f32 %v2280_v54 }
 0xb5f   : > { %v2265_v55 = vpop.xlane.xlu0 %2264 }
 0xb60   : > { %v2276_v14 = vmul.f32 0.03125, %v2265_v55  ;;  %v2259_v27 = vmul.f32 %v2254_v61, %v2254_v61 }
 0xb62   : > { %v2281_v26 = vadd.f32 1e-05, %v2276_v14  ;;  %v2272_v29 = vsel %vm846_vm1, %v2259_v27, 0.0 }
 0xb63   : > { %2273 = vadd.xlane.f32.xlu1 %v2272_v29 }
 0xb64   : > { %5414 = vrsqrt.f32 %v2281_v26 }
 0xb68   : > { %v5413_v3 = vpop.eup %5412 }
 0xb69   : > { %v2290_v31 = vmul.f32 %v5413_v3, %v2250_v43 }
 0xb6e   : > { %v5415_v13 = vpop.eup %5414 }
 0xb6f   : > { %v2291_v62 = vmul.f32 %v5415_v13, %v2251_v5 }
 0xb71   : > { %v2299_v37 = vpack.c.bf16 %v2291_v62, %v2290_v31 }
 0xb73   : > { %4915 = vmatmul.mubr.msk.bf16.vlgmr.msra.gmra.mrb[92].mxu1 %vm846_vm1, %v2299_v37 }
 0xb74   : > { %4918 = vmatprep.mubr.msk.bf16.mxu1 %vm5643_vm2, %v5642_v21 }
 0xbe8   : > { %v2268_v63 = vpop.xlane.xlu1 %2267 }
 0xbe9   : > { %v2277_v0 = vmul.f32 0.03125, %v2268_v63 }
 0xbea   : > { %v2271_v4 = vpop.xlane.xlu0 %2270 }
 0xbeb   : > { %v2282_v43 = vadd.f32 1e-05, %v2277_v0  ;;  %v2278_v34 = vmul.f32 0.03125, %v2271_v4 }
 0xbed   : > { %5416 = vrsqrt.f32 %v2282_v43  ;;  %v2283_v45 = vadd.f32 1e-05, %v2278_v34 }
 0xbef   : > { %5418 = vrsqrt.f32 %v2283_v45 }
 0xbf0   : > { %v2274_v47 = vpop.xlane.xlu1 %2273 }
 0xbf1   : > { %v2279_v11 = vmul.f32 0.03125, %v2274_v47 }
 0xbf3   : > { %v2284_v48 = vadd.f32 1e-05, %v2279_v11 }
 0xbf5   : > { %5420 = vrsqrt.f32 %v2284_v48 }
 0xbf7   : > { %v5417_v35 = vpop.eup %5416 }
 0xbf8   : > { %v2292_v5 = vmul.f32 %v5417_v35, %v6576_v16 }
 0xbf9   : > { %v5419_v2 = vpop.eup %5418 }
 0xbfa   : > { %v2293_v25 = vmul.f32 %v5419_v2, %v6579_v17 }
 0xbfc   : > { %v2300_v20 = vpack.c.bf16 %v2293_v25, %v2292_v5 }
 0xbfe   : > { %4919 = vmatmul.mubr.msk.bf16.gmra.mrb[96].mxu1 %vm846_vm1, %v2300_v20  ;;  %v4411_v20 = vld [vmem:[%s7407_s16] ss:$0 sm:$0xff] }
 0xbff   : > { %v5421_v53 = vpop.eup %5420  ;;  %4922 = vmatprep.mubr.msk.bf16.mxu1 %vm5643_vm2, %v5642_v21 }
 0xc00   : > { %v2294_v41 = vmul.f32 %v5421_v53, %v2254_v61 }
 0xc02   : > { %v2301_v42 = vpack.c.bf16 %v2294_v41, %v2294_v41 }
 0xc06   : > { %4923 = vmatmul.mubr.msk.bf16.gmra.mrb[100].mxu1 %vm846_vm1, %v2301_v42 }
 0xc07   : > { %4958 = vmatprep.mubr.msk.bf16.mxu1 %vm5643_vm2, %v5642_v21 }
 0xc46   : > { %v2364_v28 = vpop.f32.mrb[92].mxu1 }
 0xc47   : > { %v2365_v56 = vadd.f32 %v4392_v44, %v2364_v28  ;;  %v4916_v57 = vpop.f32.mrb[93].mxu1 }
 0xc48   : > { %v2367_v15 = vpop.f32.mrb[94].mxu1 }
 0xc49   : > { %v4398_v36 = vmul.f32 -1.702, %v2365_v56  ;;  %v2368_v60 = vadd.f32 %v4392_v44, %v2367_v15  ;;  %v4917_v32 = vpop.f32.mrb[95].mxu1 }
 0xc4b   : > { %v2396_v16 = vmul.f32 1.442695, %v4398_v36  ;;  %v4399_v12 = vmul.f32 -1.702, %v2368_v60 }
 0xc4d   : > { %5422 = vpow2.f32 %v2396_v16  ;;  %v2398_v17 = vmul.f32 1.442695, %v4399_v12 }
 0xc4f   : > { %5424 = vpow2.f32 %v2398_v17 }
 0xc57   : > { %v5423_v52 = vpop.eup %5422 }
 0xc58   : > { %v2406_v39 = vadd.f32 1.0, %v5423_v52 }
 0xc59   : > { %v5425_v46 = vpop.eup %5424 }
 0xc5a   : > { %5426 = vrcp.f32 %v2406_v39  ;;  %v2407_v8 = vadd.f32 1.0, %v5425_v46 }
 0xc5c   : > { %5428 = vrcp.f32 %v2407_v8 }
 0xc64   : > { %v5427_v22 = vpop.eup %5426 }
 0xc65   : > { %v2421_v9 = vmul.f32 %v5427_v22, %v2365_v56 }
 0xc66   : > { %v5429_v1 = vpop.eup %5428 }
 0xc67   : > { %v2422_v40 = vmul.f32 %v5429_v1, %v2368_v60 }
 0xc69   : > { %v2442_v54 = vpack.c.bf16 %v2422_v40, %v2421_v9 }
 0xc6b   : > { %4943 = vmatmul.mubr.bf16.vlgmr.msra.gmra.mrb[64].mxu0 %v2442_v54 }
 0xc6c   : > { %4946 = vmatprep.mubr.msk.bf16.mxu0 %vm5643_vm2, %v5642_v21 }
 0xcd1   : > { %v2372_v61 = vpop.f32.mrb[96].mxu1 }
 0xcd2   : > { %v2373_v55 = vadd.f32 %v4392_v44, %v2372_v61  ;;  %v4920_v14 = vpop.f32.mrb[97].mxu1 }
 0xcd3   : > { %v2375_v27 = vpop.f32.mrb[98].mxu1 }
 0xcd4   : > { %v4400_v26 = vmul.f32 -1.702, %v2373_v55  ;;  %v2376_v29 = vadd.f32 %v4392_v44, %v2375_v27  ;;  %v4921_v3 = vpop.f32.mrb[99].mxu1 }
 0xcd6   : > { %v2400_v13 = vmul.f32 1.442695, %v4400_v26  ;;  %v4401_v31 = vmul.f32 -1.702, %v2376_v29 }
 0xcd8   : > { %5430 = vpow2.f32 %v2400_v13  ;;  %v2402_v62 = vmul.f32 1.442695, %v4401_v31  ;;  %v5292_v31 = vld [vmem:[%s7442_s4 + $0x10] sm:$0xff]  }
 0xcd9   : > { %v2380_v37 = vpop.f32.mrb[100].mxu1  ;;  %4955 = vmatpush3.bf16.msra.mxu1 %v5292_v31 }
 0xcda   : > { %5432 = vpow2.f32 %v2402_v62  ;;  %v2381_v58 = vadd.f32 %v4392_v44, %v2380_v37  ;;  %v4924_v10 = vpop.f32.mrb[101].mxu1  ;;  %v5293_v62 = vld [vmem:[%s7398_s7 + $0x10] sm:$0xff]   ;;  %4956 = vmatprep.subr.bf16.mxu1 %v5642_v21  ;;  %v5294_v37 = vld [vmem:[%s7442_s4 + $0x18] sm:$0xff]   ;;  %s5583_s4 = scalar_lea.vmem %s5582_s29, 256 }
 0xcdb   : > { %v2383_v50 = vpop.f32.mrb[102].mxu1  ;;  %4971 = vmatpush3.bf16.msra.mxu0 %v5293_v62  ;;  %p5585_p1 = scmp.lt.s32.totalorder %s5583_s4, %s5577_s3 }
 0xcdc   : > { %v4402_v18 = vmul.f32 -1.702, %v2381_v58  ;;  %v4925_v19 = vpop.f32.mrb[103].mxu1  ;;  %4972 = vmatprep.subr.bf16.mxu0 %v5642_v21 }
 0xcdd   : > { %4957 = vmatpush3.bf16.msra.mxu1 %v5294_v37  ;;  %p5586_p2 = por %p5585_p1, %p5584_p0 }
 0xcde   : > { %v2404_v30 = vmul.f32 1.442695, %v4402_v18  ;;  %4986 = vmatprep.subr.bf16.mxu1 %v5642_v21 }
 0xcdf   : > { %p5587_p3 = pnand %p5586_p2, %p5580_p13 }
 0xce0   : > { %5434 = vpow2.f32 %v2404_v30 }
 0xce2   : > { %v5431_v38 = vpop.eup %5430 }
 0xce3   : > { %v2408_v23 = vadd.f32 1.0, %v5431_v38 }
 0xce4   : > { %v5433_v63 = vpop.eup %5432 }
 0xce5   : > { %5436 = vrcp.f32 %v2408_v23  ;;  %v2409_v0 = vadd.f32 1.0, %v5433_v63 }
 0xce7   : > { %5438 = vrcp.f32 %v2409_v0 }
 0xcea   : > { %v5435_v4 = vpop.eup %5434 }
 0xceb   : > { %v2410_v43 = vadd.f32 1.0, %v5435_v4 }
 0xced   : > { %5440 = vrcp.f32 %v2410_v43 }
 0xcef   : > { %v5437_v34 = vpop.eup %5436 }
 0xcf0   : > { %v2423_v47 = vmul.f32 %v5437_v34, %v2373_v55 }
 0xcf1   : > { %v5439_v45 = vpop.eup %5438 }
 0xcf2   : > { %v2424_v11 = vmul.f32 %v5439_v45, %v2376_v29 }
 0xcf4   : > { %v2443_v48 = vpack.c.bf16 %v2424_v11, %v2423_v47 }
 0xcf6   : > { %4947 = vmatmul.mubr.bf16.gmra.mrb[68].mxu0 %v2443_v48 }
 0xcf7   : > { %v5441_v35 = vpop.eup %5440  ;;  %4950 = vmatprep.mubr.msk.bf16.mxu0 %vm5643_vm2, %v5642_v21 }
 0xcf8   : > { %v2425_v2 = vmul.f32 %v5441_v35, %v2381_v58  ;;  %v5295_v58 = vld [vmem:[%s7398_s7 + $0x18] sm:$0xff]  }
 0xcf9   : > { %4973 = vmatpush3.bf16.msra.mxu0 %v5295_v58 }
 0xcfa   : > { %v2444_v5 = vpack.c.bf16 %v2425_v2, %v2425_v2  ;;  %5002 = vmatprep.subr.bf16.mxu0 %v5642_v21 }
 0xcfe   : > { %4951 = vmatmul.mubr.bf16.gmra.mrb[72].mxu0 %v2444_v5 }
 0xcff   : > { %4974 = vmatprep.mubr.msk.bf16.mxu0 %vm5643_vm2, %v5642_v21 }
 0xd3e   : > { %v2527_v25 = vpop.f32.mrb[64].mxu0 }
 0xd3f   : > { %v2549_v53 = vadd.f32 %v2527_v25, %v6539_v6  ;;  %v4944_v41 = vpop.f32.mrb[65].mxu0 }
 0xd40   : > { %v2530_v42 = vpop.f32.mrb[66].mxu0 }
 0xd41   : > { %v6645_v44 = vadd.f32 %v4411_v20, %v2549_v53  ;;  %v2550_v28 = vadd.f32 %v2530_v42, %v6542_v49  ;;  %v4945_v56 = vpop.f32.mrb[67].mxu0 }
 0xd43   : > { %v6648_v57 = vadd.f32 %v4411_v20, %v2550_v28  ;;  %v2566_v15 = vsel %vm846_vm1, %v6645_v44, 0.0 }
 0xd44   : > { %2567 = vadd.xlane.f32.xlu0 %v2566_v15  ;;  %v5296_v15 = vld [vmem:[%s7400_s9 + $0x10] sm:$0xff]  }
 0xd45   : > { %v2569_v36 = vsel %vm846_vm1, %v6648_v57, 0.0 }
 0xd46   : > { %2570 = vadd.xlane.f32.xlu1 %v2569_v36  ;;  %v5297_v36 = vld [vmem:[%s7400_s9 + $0x18] sm:$0xff]  }
 0xdc9   : > { %v2535_v60 = vpop.f32.mrb[68].mxu0 }
 0xdca   : > { %v2551_v6 = vadd.f32 %v2535_v60, %v6550_v24  ;;  %v4948_v32 = vpop.f32.mrb[69].mxu0 }
 0xdcb   : > { %v2538_v16 = vpop.f32.mrb[70].mxu0 }
 0xdcc   : > { %v6655_v12 = vadd.f32 %v4411_v20, %v2551_v6  ;;  %v2552_v49 = vadd.f32 %v2538_v16, %v6553_v7  ;;  %v4949_v17 = vpop.f32.mrb[71].mxu0 }
 0xdce   : > { %v6658_v52 = vadd.f32 %v4411_v20, %v2552_v49  ;;  %v2572_v39 = vsel %vm846_vm1, %v6655_v12, 0.0 }
 0xdcf   : > { %2573 = vadd.xlane.f32.xlu0 %v2572_v39 }
 0xdd0   : > { %v2575_v46 = vsel %vm846_vm1, %v6658_v52, 0.0 }
 0xdd1   : > { %v2568_v8 = vpop.xlane.xlu0 %2567  ;;  %2576 = vadd.xlane.f32.xlu1 %v2575_v46  ;;  %v2543_v22 = vpop.f32.mrb[72].mxu0 }
 0xdd2   : > { %v2581_v24 = vmul.f32 0.03125, %v2568_v8  ;;  %v2553_v1 = vadd.f32 %v2543_v22, %v6561_v59  ;;  %v4952_v9 = vpop.f32.mrb[73].mxu0 }
 0xdd3   : > { %v2571_v40 = vpop.xlane.xlu1 %2570  ;;  %v2546_v54 = vpop.f32.mrb[74].mxu0 }
 0xdd4   : > { %v2586_v7 = vsub.f32 %v6645_v44, %v2581_v24  ;;  %v6666_v61 = vadd.f32 %v4411_v20, %v2553_v1  ;;  %v2582_v55 = vmul.f32 0.03125, %v2571_v40  ;;  %v4953_v14 = vpop.f32.mrb[75].mxu0 }
 0xdd5   : > { %v6733_v14 = vld [vmem:[%s7443_s6 + $0x1] ss:$0 sm:$0xff]  ;;  %s7349_s6 = scalar_lea.hbm %s7412_s21, %s4527_s22 }
 0xdd6   : > { %v2587_v27 = vsub.f32 %v6648_v57, %v2582_v55  ;;  %v2578_v26 = vsel %vm846_vm1, %v6666_v61, 0.0  ;;  %v2591_v29 = vmul.f32 %v2586_v7, %v2586_v7 }
 0xdd7   : > { %2579 = vadd.xlane.f32.xlu0 %v2578_v26 }
 0xdd8   : > { %v2596_v3 = vsel %vm846_vm1, %v2591_v29, 0.0  ;;  %v2592_v13 = vmul.f32 %v2587_v27, %v2587_v27 }
 0xdd9   : > { %2597 = vadd.xlane.f32.xlu1 %v2596_v3  ;;  %v4428_v3 = vld [vmem:[%s7399_s8 + $0x1] ss:$0 sm:$0xff] }
 0xdda   : > { %v2599_v59 = vsel %vm846_vm1, %v2592_v13, 0.0 }
 0xddb   : > { %2600 = vadd.xlane.f32.xlu0 %v2599_v59 }
 0xe5c   : > { %v2574_v10 = vpop.xlane.xlu0 %2573 }
 0xe5d   : > { %v2583_v50 = vmul.f32 0.03125, %v2574_v10 }
 0xe5e   : > { %v2577_v18 = vpop.xlane.xlu1 %2576 }
 0xe5f   : > { %v2588_v19 = vsub.f32 %v6655_v12, %v2583_v50  ;;  %v2584_v30 = vmul.f32 0.03125, %v2577_v18 }
 0xe61   : > { %v2589_v38 = vsub.f32 %v6658_v52, %v2584_v30  ;;  %v2593_v23 = vmul.f32 %v2588_v19, %v2588_v19 }
 0xe63   : > { %v2602_v63 = vsel %vm846_vm1, %v2593_v23, 0.0  ;;  %v2594_v0 = vmul.f32 %v2589_v38, %v2589_v38 }
 0xe64   : > { %2603 = vadd.xlane.f32.xlu1 %v2602_v63  ;;  %v2580_v4 = vpop.xlane.xlu0 %2579 }
 0xe65   : > { %v2585_v43 = vmul.f32 0.03125, %v2580_v4  ;;  %v2605_v34 = vsel %vm846_vm1, %v2594_v0, 0.0 }
 0xe66   : > { %v2598_v45 = vpop.xlane.xlu1 %2597  ;;  %2606 = vadd.xlane.f32.xlu0 %v2605_v34 }
 0xe67   : > { %v2590_v47 = vsub.f32 %v6666_v61, %v2585_v43  ;;  %v2611_v11 = vmul.f32 0.03125, %v2598_v45 }
 0xe68   : > { %v2601_v48 = vpop.xlane.xlu0 %2600 }
 0xe69   : > { %v2616_v35 = vadd.f32 1e-05, %v2611_v11  ;;  %v2612_v2 = vmul.f32 0.03125, %v2601_v48  ;;  %v2595_v5 = vmul.f32 %v2590_v47, %v2590_v47 }
 0xe6b   : > { %5442 = vrsqrt.f32 %v2616_v35  ;;  %v2617_v25 = vadd.f32 1e-05, %v2612_v2  ;;  %v2608_v20 = vsel %vm846_vm1, %v2595_v5, 0.0 }
 0xe6c   : > { %2609 = vadd.xlane.f32.xlu1 %v2608_v20 }
 0xe6d   : > { %5444 = vrsqrt.f32 %v2617_v25 }
 0xe75   : > { %v5443_v53 = vpop.eup %5442 }
 0xe76   : > { %v2626_v42 = vmul.f32 %v5443_v53, %v2586_v7 }
 0xe77   : > { %v5445_v41 = vpop.eup %5444 }
 0xe78   : > { %v2627_v28 = vmul.f32 %v5445_v41, %v2587_v27 }
 0xe7a   : > { %v2636_v56 = vpack.c.bf16 %v2627_v28, %v2626_v42 }
 0xe7c   : > { %4959 = vmatmul.mubr.msk.bf16.vlgmr.msra.gmra.mrb[104].mxu1 %vm846_vm1, %v2636_v56  ;;  %4975 = vmatmul.mubr.msk.bf16.vlgmr.msra.gmra.mrb[76].mxu0 %vm846_vm1, %v2636_v56 }
 0xe7d   : > { %4962 = vmatprep.mubr.msk.bf16.mxu1 %vm5643_vm2, %v5642_v21  ;;  %4978 = vmatprep.mubr.msk.bf16.mxu0 %vm5643_vm2, %v5642_v21 }
 0xe7e   : > { %4987 = vmatpush3.bf16.msra.mxu1 %v5296_v15 }
 0xe7f   : > { %4988 = vmatprep.subr.bf16.mxu1 %v5642_v21 }
 0xe82   : > { %4989 = vmatpush3.bf16.msra.mxu1 %v5297_v36 }
 0xe83   : > { %5020 = vmatprep.subr.bf16.mxu1 %v5642_v21 }
 0xef1   : > { %v2604_v60 = vpop.xlane.xlu1 %2603 }
 0xef2   : > { %v2613_v6 = vmul.f32 0.03125, %v2604_v60 }
 0xef3   : > { %v2607_v32 = vpop.xlane.xlu0 %2606 }
 0xef4   : > { %v2618_v16 = vadd.f32 1e-05, %v2613_v6  ;;  %v2614_v49 = vmul.f32 0.03125, %v2607_v32 }
 0xef6   : > { %5446 = vrsqrt.f32 %v2618_v16  ;;  %v2619_v17 = vadd.f32 1e-05, %v2614_v49 }
 0xef8   : > { %5448 = vrsqrt.f32 %v2619_v17 }
 0xef9   : > { %v2610_v39 = vpop.xlane.xlu1 %2609 }
 0xefa   : > { %v2615_v46 = vmul.f32 0.03125, %v2610_v39 }
 0xefc   : > { %v2620_v8 = vadd.f32 1e-05, %v2615_v46 }
 0xefe   : > { %5450 = vrsqrt.f32 %v2620_v8 }
 0xf00   : > { %v5447_v22 = vpop.eup %5446 }
 0xf01   : > { %v2628_v1 = vmul.f32 %v5447_v22, %v2588_v19  ;;  %v6743_v19 = vld [vmem:[%s7410_s19] ss:$0 sm:$0xff] }
 0xf02   : > { %v5449_v24 = vpop.eup %5448 }
 0xf03   : > { %v2629_v9 = vmul.f32 %v5449_v24, %v2589_v38  ;;  %v6751_v38 = vld [vmem:[%s7410_s19 + $0x1] ss:$0 sm:$0xff] }
 0xf05   : > { %v2637_v40 = vpack.c.bf16 %v2629_v9, %v2628_v1 }
 0xf07   : > { %4963 = vmatmul.mubr.msk.bf16.gmra.mrb[108].mxu1 %vm846_vm1, %v2637_v40  ;;  %4979 = vmatmul.mubr.msk.bf16.gmra.mrb[80].mxu0 %vm846_vm1, %v2637_v40 }
 0xf08   : > { %v5451_v54 = vpop.eup %5450  ;;  %4966 = vmatprep.mubr.msk.bf16.mxu1 %vm5643_vm2, %v5642_v21  ;;  %4982 = vmatprep.mubr.msk.bf16.mxu0 %vm5643_vm2, %v5642_v21 }
 0xf09   : > { %v2630_v7 = vmul.f32 %v5451_v54, %v2590_v47 }
 0xf0b   : > { %v2638_v55 = vpack.c.bf16 %v2630_v7, %v2630_v7 }
 0xf0f   : > { %4967 = vmatmul.mubr.msk.bf16.gmra.mrb[112].mxu1 %vm846_vm1, %v2638_v55  ;;  %4983 = vmatmul.mubr.msk.bf16.gmra.mrb[84].mxu0 %vm846_vm1, %v2638_v55 }
 0xf10   : > { %4990 = vmatprep.mubr.msk.bf16.mxu1 %vm5643_vm2, %v5642_v21  ;;  %5008 = vmatprep.mubr.msk.bf16.mxu0 %vm5643_vm2, %v5642_v21 }
 0xf17   : > { %4991 = vmatmul.mubr.msk.bf16.vlgmr.msra.gmra.mrb[116].mxu1 %vm846_vm1, %v2636_v56 }
 0xf18   : > { %4994 = vmatprep.mubr.msk.bf16.mxu1 %vm5643_vm2, %v5642_v21 }
 0xf1f   : > { %4995 = vmatmul.mubr.msk.bf16.gmra.mrb[120].mxu1 %vm846_vm1, %v2637_v40 }
 0xf20   : > { %4998 = vmatprep.mubr.msk.bf16.mxu1 %vm5643_vm2, %v5642_v21 }
 0xf27   : > { %4999 = vmatmul.mubr.msk.bf16.gmra.mrb[124].mxu1 %vm846_vm1, %v2638_v55 }
 0xf28   : > { %5026 = vmatprep.mubr.msk.bf16.mxu1 %vm5643_vm2, %v5642_v21 }
 0xf4f   : > { %v2702_v27 = vpop.f32.mrb[104].mxu1  ;;  %v2783_v26 = vpop.f32.mrb[76].mxu0 }
 0xf50   : > { %v2703_v29 = vadd.f32 %v6733_v14, %v2702_v27  ;;  %v4960_v13 = vpop.f32.mrb[105].mxu1  ;;  %v4976_v59 = vpop.f32.mrb[77].mxu0  ;;  %v2784_v10 = vadd.f32 %v4428_v3, %v2783_v26 }
 0xf51   : > { %v2705_v31 = vpop.f32.mrb[106].mxu1  ;;  %v2786_v62 = vpop.f32.mrb[78].mxu0 }
 0xf52   : > { %v4961_v37 = vpop.f32.mrb[107].mxu1  ;;  %v4977_v58 = vpop.f32.mrb[79].mxu0  ;;  %v2706_v50 = vadd.f32 %v6733_v14, %v2705_v31  ;;  %v2787_v18 = vadd.f32 %v4428_v3, %v2786_v62  ;;  %v6746_v30 = vmul.f32 %v6743_v19, %v2703_v29  ;;  %v6754_v23 = vmul.f32 %v6751_v38, %v2703_v29 }
 0xf53   : > { %v6757_v63 = vmul.f32 %v6473_v33, %v2703_v29  ;;  %v6760_v0 = vmul.f32 %v6514_v51, %v2703_v29 }
 0xf54   : > { %v6763_v4 = vmul.f32 %v6743_v19, %v2706_v50  ;;  %v6766_v43 = vmul.f32 %v6751_v38, %v2706_v50  ;;  %v6769_v34 = vmul.f32 %v6473_v33, %v2706_v50  ;;  %v6772_v45 = vmul.f32 %v6514_v51, %v2706_v50 }
 0xf55   : > { %v2886_v47 = vpack.c.bf16 %v2787_v18, %v2784_v10  ;;  %v4439_v10 = vld [vmem:[%s7401_s10 + $0x1] ss:$0 sm:$0xff] }
 0xf56   : > { %v2897_v11 = vpack.c.bf16 %v6763_v4, %v6746_v30  ;;  %v3115_v48 = vpack.c.bf16 %v6766_v43, %v6754_v23  ;;  %v3321_v35 = vpack.c.bf16 %v6769_v34, %v6757_v63  ;;  %v3527_v2 = vpack.c.bf16 %v6772_v45, %v6760_v0  ;;  %v6926_v45 = vld [vmem:[%s7411_s20] sm:$0xff] }
 0xf57   : > { %v6783_v5 = vsel %vm846_vm1, %v2886_v47, 0 }
 0xf58   : > { %5003 = vmatpush3.bf16.xpose.msra.mxu0 %v6783_v5 }
 0xf59   : > { %5004 = vmatprep.subr.bf16.mxu0 %v5642_v21 }
 0xfda   : > { %v2710_v25 = vpop.f32.mrb[108].mxu1  ;;  %v2791_v20 = vpop.f32.mrb[80].mxu0 }
 0xfdb   : > { %v2711_v53 = vadd.f32 %v6733_v14, %v2710_v25  ;;  %v4964_v41 = vpop.f32.mrb[109].mxu1  ;;  %v4980_v42 = vpop.f32.mrb[81].mxu0  ;;  %v2792_v60 = vadd.f32 %v4428_v3, %v2791_v20 }
 0xfdc   : > { %v2713_v28 = vpop.f32.mrb[110].mxu1  ;;  %v2794_v56 = vpop.f32.mrb[82].mxu0 }
 0xfdd   : > { %v4965_v15 = vpop.f32.mrb[111].mxu1  ;;  %v4981_v36 = vpop.f32.mrb[83].mxu0  ;;  %v2714_v6 = vadd.f32 %v6733_v14, %v2713_v28  ;;  %v2795_v32 = vadd.f32 %v4428_v3, %v2794_v56  ;;  %v2894_v16 = vmul.f32 %v6743_v19, %v2711_v53  ;;  %v6791_v49 = vmul.f32 %v6751_v38, %v2711_v53 }
 0xfde   : > { %v6794_v17 = vmul.f32 %v6473_v33, %v2711_v53  ;;  %v6797_v39 = vmul.f32 %v6514_v51, %v2711_v53 }
 0xfdf   : > { %v2895_v46 = vmul.f32 %v6743_v19, %v2714_v6  ;;  %v6801_v8 = vmul.f32 %v6751_v38, %v2714_v6  ;;  %v6804_v22 = vmul.f32 %v6473_v33, %v2714_v6  ;;  %v6807_v24 = vmul.f32 %v6514_v51, %v2714_v6 }
 0xfe0   : > { %v2887_v1 = vpack.c.bf16 %v2795_v32, %v2792_v60 }
 0xfe1   : > { %v2898_v54 = vpack.c.bf16 %v2895_v46, %v2894_v16  ;;  %v3116_v7 = vpack.c.bf16 %v6801_v8, %v6791_v49  ;;  %v3322_v55 = vpack.c.bf16 %v6804_v22, %v6794_v17  ;;  %v3528_v27 = vpack.c.bf16 %v6807_v24, %v6797_v39  ;;  %v6946_v24 = vld [vmem:[%s7411_s20 + $0x10] sm:$0xff] }
 0xfe2   : > { %v2718_v9 = vpop.f32.mrb[112].mxu1  ;;  %v2799_v40 = vpop.f32.mrb[84].mxu0  ;;  %v6816_v33 = vsel %vm846_vm1, %v2887_v1, 0 }
 0xfe3   : > { %v2800_v26 = vadd.f32 %v4428_v3, %v2799_v40  ;;  %v4968_v29 = vpop.f32.mrb[113].mxu1  ;;  %v4984_v13 = vpop.f32.mrb[85].mxu0  ;;  %5005 = vmatpush3.bf16.xpose.msra.mxu0 %v6816_v33  ;;  %v2719_v60 = vadd.f32 %v6733_v14, %v2718_v9 }
 0xfe4   : > { %v2721_v59 = vpop.f32.mrb[114].mxu1  ;;  %v2802_v31 = vpop.f32.mrb[86].mxu0  ;;  %5006 = vmatprep.subr.bf16.mxu0 %v5642_v21 }
 0xfe5   : > { %v4969_v62 = vpop.f32.mrb[115].mxu1  ;;  %v4985_v37 = vpop.f32.mrb[87].mxu0  ;;  %v2888_v58 = vpack.c.bf16 %v2800_v26, %v2800_v26  ;;  %v2896_v40 = vmul.f32 %v6743_v19, %v2719_v60  ;;  %v3114_v19 = vmul.f32 %v6751_v38, %v2719_v60  ;;  %v6898_v38 = vld [vmem:[%s7410_s19 + $0x2] ss:$0 sm:$0xff]  ;;  %v3526_v34 = vmul.f32 %v6514_v51, %v2719_v60  ;;  %v6934_v51 = vld [vmem:[%s7411_s20 + $0x8] sm:$0xff] }
 0xfe6   : > { %v3320_v63 = vmul.f32 %v6898_v38, %v2719_v60  ;;  %v6966_v31 = vld [vmem:[%s7411_s20 + $0x20] sm:$0xff] }
 0xfe7   : > { %v6824_v3 = vsel %vm846_vm1, %v2888_v58, 0  ;;  %v2899_v9 = vpack.c.bf16 %v2896_v40, %v2896_v40  ;;  %v3117_v23 = vpack.c.bf16 %v3114_v19, %v3114_v19 }
 0xfe8   : > { %v3323_v43 = vpack.c.bf16 %v3320_v63, %v3320_v63 }
 0xfea   : > { %v2864_v50 = vpop.f32.mrb[116].mxu1 }
 0xfeb   : > { %v4992_v18 = vpop.f32.mrb[117].mxu1  ;;  %5007 = vmatpush3.bf16.xpose.msra.mxu0 %v6824_v3  ;;  %v2865_v4 = vadd.f32 %v4439_v10, %v2864_v50 }
 0xfec   : > { %v2867_v30 = vpop.f32.mrb[118].mxu1  ;;  %5038 = vmatprep.subr.bf16.mxu0 %v5642_v21 }
 0xfed   : > { %v2868_v47 = vadd.f32 %v4439_v10, %v2867_v30  ;;  %v4993_v25 = vpop.f32.mrb[119].mxu1 }
 0xfef   : > { %v6828_v20 = vpack.c.bf16 %v2868_v47, %v2865_v4 }
 0xff1   : > { %5021 = vmatpush3.bf16.msra.mxu1 %v6828_v20 }
 0xff2   : > { %v2872_v53 = vpop.f32.mrb[120].mxu1  ;;  %5022 = vmatprep.subr.bf16.mxu1 %v5642_v21  ;;  %5009 = vmatmul.mubr.msk.bf16.vlgmr.msra.gmra.mrb[88].mxu0 %vm846_vm1, %v2897_v11 }
 0xff3   : > { %v4996_v41 = vpop.f32.mrb[121].mxu1  ;;  %5039 = vmatpush3.bf16.xpose.msra.mxu0 %v6783_v5  ;;  %5012 = vmatprep.mubr.msk.bf16.mxu0 %vm5643_vm2, %v5642_v21  ;;  %v2873_v28 = vadd.f32 %v4439_v10, %v2872_v53 }
 0xff4   : > { %v2875_v42 = vpop.f32.mrb[122].mxu1  ;;  %5040 = vmatprep.subr.bf16.mxu0 %v5642_v21 }
 0xff5   : > { %v2876_v56 = vadd.f32 %v4439_v10, %v2875_v42  ;;  %v4997_v15 = vpop.f32.mrb[123].mxu1 }
 0xff7   : > { %v6837_v36 = vpack.c.bf16 %v2876_v56, %v2873_v28 }
 0xff9   : > { %5023 = vmatpush3.bf16.msra.mxu1 %v6837_v36 }
 0xffa   : > { %v2880_v6 = vpop.f32.mrb[124].mxu1  ;;  %5024 = vmatprep.subr.bf16.mxu1 %v5642_v21  ;;  %5013 = vmatmul.mubr.msk.bf16.gmra.mrb[92].mxu0 %vm846_vm1, %v2898_v54 }
 0xffb   : > { %v2881_v11 = vadd.f32 %v4439_v10, %v2880_v6  ;;  %v5000_v32 = vpop.f32.mrb[125].mxu1  ;;  %5041 = vmatpush3.bf16.xpose.msra.mxu0 %v6816_v33  ;;  %5016 = vmatprep.mubr.msk.bf16.mxu0 %vm5643_vm2, %v5642_v21 }
 0xffc   : > { %v2883_v16 = vpop.f32.mrb[126].mxu1  ;;  %5042 = vmatprep.subr.bf16.mxu0 %v5642_v21 }
 0xffd   : > { %v2891_v46 = vpack.c.bf16 %v2881_v11, %v2881_v11  ;;  %v5001_v1 = vpop.f32.mrb[127].mxu1 }
 0xfff   : > { %v6849_v14 = vsel %vm1417_vm3, %v2891_v46, 0 }
0x1000   : > { %5025 = vmatpush3.bf16.msra.mxu1 %v6849_v14 }
0x1001   : > { %5056 = vmatprep.subr.bf16.mxu1 %v5642_v21 }
0x1002   : > { %5017 = vmatmul.mubr.msk.bf16.gmra.mrb[96].mxu0 %vm846_vm1, %v2899_v9 }
0x1003   : > { %5043 = vmatpush3.bf16.xpose.msra.mxu0 %v6824_v3  ;;  %5044 = vmatprep.mubr.msk.bf16.mxu0 %vm5643_vm2, %v5642_v21 }
0x1004   : > { %5074 = vmatprep.subr.bf16.mxu0 %v5642_v21 }
0x100a   : > { %5045 = vmatmul.mubr.msk.bf16.vlgmr.msra.gmra.mrb[100].mxu0 %vm846_vm1, %v3115_v48  ;;  %v3529_v48 = vpack.c.bf16 %v3526_v34, %v3526_v34 }
0x100b   : > { %5075 = vmatpush3.bf16.xpose.msra.mxu0 %v6783_v5  ;;  %5048 = vmatprep.mubr.msk.bf16.mxu0 %vm5643_vm2, %v5642_v21 }
0x100c   : > { %5076 = vmatprep.subr.bf16.mxu0 %v5642_v21 }
0x1012   : > { %5049 = vmatmul.mubr.msk.bf16.gmra.mrb[104].mxu0 %vm846_vm1, %v3116_v7 }
0x1013   : > { %5077 = vmatpush3.bf16.xpose.msra.mxu0 %v6816_v33  ;;  %5052 = vmatprep.mubr.msk.bf16.mxu0 %vm5643_vm2, %v5642_v21 }
0x1014   : > { %5078 = vmatprep.subr.bf16.mxu0 %v5642_v21 }
0x101a   : > { %5053 = vmatmul.mubr.msk.bf16.gmra.mrb[108].mxu0 %vm846_vm1, %v3117_v23 }
0x101b   : > { %5079 = vmatpush3.bf16.xpose.msra.mxu0 %v6824_v3  ;;  %5080 = vmatprep.mubr.msk.bf16.mxu0 %vm5643_vm2, %v5642_v21 }
0x101c   : > { %5110 = vmatprep.subr.bf16.mxu0 %v5642_v21 }
0x1022   : > { %5081 = vmatmul.mubr.msk.bf16.vlgmr.msra.gmra.mrb[112].mxu0 %vm846_vm1, %v3321_v35 }
0x1023   : > { %5111 = vmatpush3.bf16.xpose.msra.mxu0 %v6783_v5  ;;  %5084 = vmatprep.mubr.msk.bf16.mxu0 %vm5643_vm2, %v5642_v21 }
0x1024   : > { %5112 = vmatprep.subr.bf16.mxu0 %v5642_v21 }
0x102a   : > { %5085 = vmatmul.mubr.msk.bf16.gmra.mrb[116].mxu0 %vm846_vm1, %v3322_v55 }
0x102b   : > { %5113 = vmatpush3.bf16.xpose.msra.mxu0 %v6816_v33  ;;  %5088 = vmatprep.mubr.msk.bf16.mxu0 %vm5643_vm2, %v5642_v21 }
0x102c   : > { %5114 = vmatprep.subr.bf16.mxu0 %v5642_v21 }
0x1032   : > { %5089 = vmatmul.mubr.msk.bf16.gmra.mrb[120].mxu0 %vm846_vm1, %v3323_v43 }
0x1033   : > { %5115 = vmatpush3.bf16.xpose.msra.mxu0 %v6824_v3  ;;  %5116 = vmatprep.mubr.msk.bf16.mxu0 %vm5643_vm2, %v5642_v21 }
0x1034   : > { %5146 = vmatprep.subr.bf16.mxu0 %v5642_v21 }
0x103a   : > { %5117 = vmatmul.mubr.msk.bf16.vlgmr.msra.gmra.mrb[124].mxu0 %vm846_vm1, %v3527_v2 }
0x103b   : > { %5120 = vmatprep.mubr.msk.bf16.mxu0 %vm5643_vm2, %v5642_v21 }
0x1042   : > { %5121 = vmatmul.mubr.msk.bf16.gmra.mrb[128].mxu0 %vm846_vm1, %v3528_v27  ;;  %v6954_v27 = vld [vmem:[%s7411_s20 + $0x18] sm:$0xff] }
0x1043   : > { %5124 = vmatprep.mubr.msk.bf16.mxu0 %vm5643_vm2, %v5642_v21 }
0x104a   : > { %5125 = vmatmul.mubr.msk.bf16.gmra.mrb[132].mxu0 %vm846_vm1, %v3529_v48 }
0x104b   : > { %5150 = vmatprep.mubr.msk.bf16.mxu0 %vm5643_vm2, %v5642_v21 }
0x10c5   : > { %v2952_v0 = vpop.f32.mrb[88].mxu0 }
0x10c6   : > { %v6929_v35 = vadd.f32 %v6926_v45, %v2952_v0  ;;  %v5010_v2 = vpop.f32.mrb[89].mxu0 }
0x10c7   : > { %v2955_v5 = vpop.f32.mrb[90].mxu0 }
0x10c8   : > { %v6937_v49 = vadd.f32 %v6934_v51, %v2955_v5  ;;  %v5011_v17 = vpop.f32.mrb[91].mxu0  ;;  %v2974_v39 = vsel %vm1349_vm4, %v6929_v35, -inf }
0x10c9   : > { %2975 = vmax.xlane.f32.xlu0 %v2974_v39 }
0x10ca   : > { %v2977_v8 = vsel %vm1349_vm4, %v6937_v49, -inf }
0x10cb   : > { %2978 = vmax.xlane.f32.xlu1 %v2977_v8 }
0x10cd   : > { %v2960_v22 = vpop.f32.mrb[92].mxu0 }
0x10ce   : > { %v6949_v54 = vadd.f32 %v6946_v24, %v2960_v22  ;;  %v5014_v7 = vpop.f32.mrb[93].mxu0 }
0x10cf   : > { %v2963_v55 = vpop.f32.mrb[94].mxu0 }
0x10d0   : > { %v6957_v26 = vadd.f32 %v6954_v27, %v2963_v55  ;;  %v5015_v33 = vpop.f32.mrb[95].mxu0  ;;  %v2980_v29 = vsel %vm1349_vm4, %v6949_v54, -inf }
0x10d1   : > { %2981 = vmax.xlane.f32.xlu0 %v2980_v29 }
0x10d2   : > { %v2983_v13 = vsel %vm1349_vm4, %v6957_v26, -inf }
0x10d3   : > { %2984 = vmax.xlane.f32.xlu1 %v2983_v13 }
0x10d5   : > { %v2968_v59 = vpop.f32.mrb[96].mxu0 }
0x10d6   : > { %v6969_v62 = vadd.f32 %v6966_v31, %v2968_v59  ;;  %v5018_v37 = vpop.f32.mrb[97].mxu0 }
0x10d7   : > { %v2971_v58 = vpop.f32.mrb[98].mxu0 }
0x10d8   : > { %v5019_v10 = vpop.f32.mrb[99].mxu0  ;;  %v2986_v50 = vsel %vm1349_vm4, %v6969_v62, -inf }
0x10d9   : > { %2987 = vmax.xlane.f32.xlu0 %v2986_v50 }
0x10dd   : > { %v3161_v3 = vpop.f32.mrb[100].mxu0 }
0x10de   : > { %v6974_v18 = vadd.f32 %v6926_v45, %v3161_v3  ;;  %v5046_v30 = vpop.f32.mrb[101].mxu0 }
0x10df   : > { %v3164_v4 = vpop.f32.mrb[102].mxu0 }
0x10e0   : > { %v6977_v47 = vadd.f32 %v6934_v51, %v3164_v4  ;;  %v5047_v25 = vpop.f32.mrb[103].mxu0  ;;  %v3183_v53 = vsel %vm1349_vm4, %v6974_v18, -inf }
0x10e1   : > { %3184 = vmax.xlane.f32.xlu1 %v3183_v53 }
0x10e2   : > { %v3186_v41 = vsel %vm1349_vm4, %v6977_v47, -inf }
0x10e3   : > { %3187 = vmax.xlane.f32.xlu0 %v3186_v41 }
0x10e5   : > { %v3169_v42 = vpop.f32.mrb[104].mxu0 }
0x10e6   : > { %v6984_v28 = vadd.f32 %v6946_v24, %v3169_v42  ;;  %v5050_v56 = vpop.f32.mrb[105].mxu0 }
0x10e7   : > { %v3172_v15 = vpop.f32.mrb[106].mxu0 }
0x10e8   : > { %v6987_v60 = vadd.f32 %v6954_v27, %v3172_v15  ;;  %v5051_v6 = vpop.f32.mrb[107].mxu0  ;;  %v3189_v11 = vsel %vm1349_vm4, %v6984_v28, -inf }
0x10e9   : > { %3190 = vmax.xlane.f32.xlu1 %v3189_v11 }
0x10ea   : > { %v3192_v32 = vsel %vm1349_vm4, %v6987_v60, -inf }
0x10eb   : > { %3193 = vmax.xlane.f32.xlu0 %v3192_v32 }
0x10ed   : > { %v3177_v16 = vpop.f32.mrb[108].mxu0 }
0x10ee   : > { %v6994_v46 = vadd.f32 %v6966_v31, %v3177_v16  ;;  %v5054_v1 = vpop.f32.mrb[109].mxu0 }
0x10ef   : > { %v3180_v40 = vpop.f32.mrb[110].mxu0 }
0x10f0   : > { %v5055_v9 = vpop.f32.mrb[111].mxu0  ;;  %v3195_v19 = vsel %vm1349_vm4, %v6994_v46, -inf }
0x10f1   : > { %3196 = vmax.xlane.f32.xlu1 %v3195_v19 }
0x10f5   : > { %v3367_v23 = vpop.f32.mrb[112].mxu0 }
0x10f6   : > { %v6999_v63 = vadd.f32 %v6926_v45, %v3367_v23  ;;  %v5082_v43 = vpop.f32.mrb[113].mxu0 }
0x10f7   : > { %v3370_v34 = vpop.f32.mrb[114].mxu0 }
0x10f8   : > { %v7002_v48 = vadd.f32 %v6934_v51, %v3370_v34  ;;  %v5083_v0 = vpop.f32.mrb[115].mxu0  ;;  %v3389_v2 = vsel %vm1349_vm4, %v6999_v63, -inf }
0x10f9   : > { %3390 = vmax.xlane.f32.xlu0 %v3389_v2 }
0x10fa   : > { %v3392_v5 = vsel %vm1349_vm4, %v7002_v48, -inf }
0x10fb   : > { %3393 = vmax.xlane.f32.xlu1 %v3392_v5 }
0x10fd   : > { %v3375_v17 = vpop.f32.mrb[116].mxu0 }
0x10fe   : > { %v7009_v39 = vadd.f32 %v6946_v24, %v3375_v17  ;;  %v5086_v8 = vpop.f32.mrb[117].mxu0 }
0x10ff   : > { %v3378_v22 = vpop.f32.mrb[118].mxu0 }
0x1100   : > { %v7012_v7 = vadd.f32 %v6954_v27, %v3378_v22  ;;  %v5087_v55 = vpop.f32.mrb[119].mxu0  ;;  %v3395_v33 = vsel %vm1349_vm4, %v7009_v39, -inf }
0x1101   : > { %3396 = vmax.xlane.f32.xlu0 %v3395_v33 }
0x1102   : > { %v3398_v29 = vsel %vm1349_vm4, %v7012_v7, -inf }
0x1103   : > { %3399 = vmax.xlane.f32.xlu1 %v3398_v29 }
0x1105   : > { %v3383_v13 = vpop.f32.mrb[120].mxu0 }
0x1106   : > { %v7019_v59 = vadd.f32 %v6966_v31, %v3383_v13  ;;  %v5090_v37 = vpop.f32.mrb[121].mxu0 }
0x1107   : > { %v3386_v58 = vpop.f32.mrb[122].mxu0 }
0x1108   : > { %v5091_v10 = vpop.f32.mrb[123].mxu0  ;;  %v3401_v50 = vsel %vm1349_vm4, %v7019_v59, -inf }
0x1109   : > { %3402 = vmax.xlane.f32.xlu0 %v3401_v50 }
0x110d   : > { %v3573_v3 = vpop.f32.mrb[124].mxu0 }
0x110e   : > { %v7024_v30 = vadd.f32 %v6926_v45, %v3573_v3  ;;  %v5118_v4 = vpop.f32.mrb[125].mxu0 }
0x110f   : > { %v3576_v25 = vpop.f32.mrb[126].mxu0 }
0x1110   : > { %v7027_v53 = vadd.f32 %v6934_v51, %v3576_v25  ;;  %v5119_v41 = vpop.f32.mrb[127].mxu0  ;;  %v3595_v42 = vsel %vm1349_vm4, %v7024_v30, -inf }
0x1111   : > { %3596 = vmax.xlane.f32.xlu1 %v3595_v42 }
0x1112   : > { %v3598_v56 = vsel %vm1349_vm4, %v7027_v53, -inf }
0x1113   : > { %3599 = vmax.xlane.f32.xlu0 %v3598_v56 }
0x1115   : > { %v7033_v15 = vpop.f32.mrb[128].mxu0 }
0x1116   : > { %v5122_v6 = vpop.f32.mrb[129].mxu0 }
0x1117   : > { %v7035_v11 = vpop.f32.mrb[130].mxu0 }
0x1118   : > { %v5123_v45 = vpop.f32.mrb[131].mxu0 }
0x111d   : > { %v7037_v32 = vpop.f32.mrb[132].mxu0 }
0x111e   : > { %v5126_v16 = vpop.f32.mrb[133].mxu0 }
0x111f   : > { %v3592_v51 = vpop.f32.mrb[134].mxu0 }
0x1120   : > { %v5127_v1 = vpop.f32.mrb[135].mxu0 }
0x1156   : > { %v2976_v40 = vpop.xlane.xlu0 %2975 }
0x1157   : > { %v2989_v9 = vsub.f32 %v6929_v35, %v2976_v40 }
0x1158   : > { %v2979_v19 = vpop.xlane.xlu1 %2978 }
0x1159   : > { %v2994_v23 = vmul.f32 1.442695, %v2989_v9  ;;  %v2990_v43 = vsub.f32 %v6937_v49, %v2979_v19 }
0x115b   : > { %5452 = vpow2.f32 %v2994_v23  ;;  %v2996_v34 = vmul.f32 1.442695, %v2990_v43 }
0x115d   : > { %5454 = vpow2.f32 %v2996_v34 }
0x115e   : > { %v2982_v0 = vpop.xlane.xlu0 %2981 }
0x115f   : > { %v2991_v2 = vsub.f32 %v6949_v54, %v2982_v0 }
0x1160   : > { %v2985_v5 = vpop.xlane.xlu1 %2984 }
0x1161   : > { %v2998_v17 = vmul.f32 1.442695, %v2991_v2  ;;  %v2992_v8 = vsub.f32 %v6957_v26, %v2985_v5 }
0x1163   : > { %5456 = vpow2.f32 %v2998_v17  ;;  %v3000_v22 = vmul.f32 1.442695, %v2992_v8 }
0x1165   : > { %v7043_v55 = vpop.eup %5452  ;;  %5458 = vpow2.f32 %v3000_v22 }
0x1166   : > { %v2988_v35 = vpop.xlane.xlu0 %2987  ;;  %v3004_v33 = vsel %vm1349_vm4, %v7043_v55, 0.0 }
0x1167   : > { %v7047_v49 = vpop.eup %5454  ;;  %v2993_v29 = vsub.f32 %v6969_v62, %v2988_v35  ;;  %3005 = vadd.xlane.f32.xlu1 %v3004_v33 }
0x1168   : > { %v3007_v54 = vsel %vm1349_vm4, %v7047_v49, 0.0 }
0x1169   : > { %v3002_v13 = vmul.f32 1.442695, %v2993_v29  ;;  %3008 = vadd.xlane.f32.xlu0 %v3007_v54 }
0x116b   : > { %5460 = vpow2.f32 %v3002_v13 }
0x116d   : > { %v7052_v26 = vpop.eup %5456 }
0x116e   : > { %v3185_v37 = vpop.xlane.xlu1 %3184  ;;  %v3010_v58 = vsel %vm1349_vm4, %v7052_v26, 0.0 }
0x116f   : > { %v7056_v10 = vpop.eup %5458  ;;  %v3198_v50 = vsub.f32 %v6974_v18, %v3185_v37  ;;  %3011 = vadd.xlane.f32.xlu1 %v3010_v58 }
0x1170   : > { %v3188_v3 = vpop.xlane.xlu0 %3187  ;;  %v3013_v62 = vsel %vm1349_vm4, %v7056_v10, 0.0 }
0x1171   : > { %v3203_v4 = vmul.f32 1.442695, %v3198_v50  ;;  %v3199_v25 = vsub.f32 %v6977_v47, %v3188_v3  ;;  %3014 = vadd.xlane.f32.xlu0 %v3013_v62 }
0x1173   : > { %5462 = vpow2.f32 %v3203_v4  ;;  %v3205_v41 = vmul.f32 1.442695, %v3199_v25 }
0x1175   : > { %v7062_v42 = vpop.eup %5460  ;;  %5464 = vpow2.f32 %v3205_v41 }
0x1176   : > { %v3191_v56 = vpop.xlane.xlu1 %3190  ;;  %v3016_v6 = vsel %vm1349_vm4, %v7062_v42, 0.0 }
0x1177   : > { %v3200_v18 = vsub.f32 %v6984_v28, %v3191_v56  ;;  %3017 = vadd.xlane.f32.xlu1 %v3016_v6 }
0x1178   : > { %v3194_v45 = vpop.xlane.xlu0 %3193 }
0x1179   : > { %v3207_v16 = vmul.f32 1.442695, %v3200_v18  ;;  %v3201_v51 = vsub.f32 %v6987_v60, %v3194_v45 }
0x117b   : > { %5466 = vpow2.f32 %v3207_v16  ;;  %v3209_v1 = vmul.f32 1.442695, %v3201_v51 }
0x117d   : > { %v7068_v47 = vpop.eup %5462  ;;  %5468 = vpow2.f32 %v3209_v1 }
0x117e   : > { %v3197_v40 = vpop.xlane.xlu1 %3196  ;;  %v3213_v9 = vsel %vm1349_vm4, %v7068_v47, 0.0 }
0x117f   : > { %v7072_v19 = vpop.eup %5464  ;;  %v3202_v23 = vsub.f32 %v6994_v46, %v3197_v40  ;;  %3214 = vadd.xlane.f32.xlu0 %v3213_v9 }
0x1180   : > { %v3216_v28 = vsel %vm1349_vm4, %v7072_v19, 0.0 }
0x1181   : > { %v3211_v43 = vmul.f32 1.442695, %v3202_v23  ;;  %3217 = vadd.xlane.f32.xlu1 %v3216_v28 }
0x1183   : > { %5470 = vpow2.f32 %v3211_v43 }
0x1185   : > { %v7077_v60 = vpop.eup %5466 }
0x1186   : > { %v3391_v34 = vpop.xlane.xlu0 %3390  ;;  %v3219_v0 = vsel %vm1349_vm4, %v7077_v60, 0.0 }
0x1187   : > { %v7081_v2 = vpop.eup %5468  ;;  %v3404_v5 = vsub.f32 %v6999_v63, %v3391_v34  ;;  %3220 = vadd.xlane.f32.xlu0 %v3219_v0  ;;  %v7128_v34 = vadd.f32 %v6954_v27, %v7035_v11 }
0x1188   : > { %v3394_v17 = vpop.xlane.xlu1 %3393  ;;  %v3222_v46 = vsel %vm1349_vm4, %v7081_v2, 0.0 }
0x1189   : > { %v3409_v8 = vmul.f32 1.442695, %v3404_v5  ;;  %v3405_v22 = vsub.f32 %v7002_v48, %v3394_v17  ;;  %3223 = vadd.xlane.f32.xlu1 %v3222_v46  ;;  %v7134_v5 = vadd.f32 %v6966_v31, %v7037_v32 }
0x118b   : > { %5472 = vpow2.f32 %v3409_v8  ;;  %v3411_v35 = vmul.f32 1.442695, %v3405_v22  ;;  %v3607_v27 = vsel %vm1349_vm4, %v7134_v5, -inf }
0x118d   : > { %v7087_v33 = vpop.eup %5470  ;;  %5474 = vpow2.f32 %v3411_v35 }
0x118e   : > { %v3397_v29 = vpop.xlane.xlu0 %3396  ;;  %v3225_v54 = vsel %vm1349_vm4, %v7087_v33, 0.0 }
0x118f   : > { %v3406_v63 = vsub.f32 %v7009_v39, %v3397_v29  ;;  %3226 = vadd.xlane.f32.xlu0 %v3225_v54 }
0x1190   : > { %v3400_v13 = vpop.xlane.xlu1 %3399 }
0x1191   : > { %v3413_v37 = vmul.f32 1.442695, %v3406_v63  ;;  %v3407_v58 = vsub.f32 %v7012_v7, %v3400_v13 }
0x1193   : > { %5476 = vpow2.f32 %v3413_v37  ;;  %v3415_v50 = vmul.f32 1.442695, %v3407_v58 }
0x1195   : > { %v7093_v48 = vpop.eup %5472  ;;  %5478 = vpow2.f32 %v3415_v50 }
0x1196   : > { %v3403_v3 = vpop.xlane.xlu0 %3402  ;;  %v3419_v62 = vsel %vm1349_vm4, %v7093_v48, 0.0 }
0x1197   : > { %v7097_v4 = vpop.eup %5474  ;;  %v3408_v25 = vsub.f32 %v7019_v59, %v3403_v3  ;;  %3420 = vadd.xlane.f32.xlu1 %v3419_v62 }
0x1198   : > { %v3422_v39 = vsel %vm1349_vm4, %v7097_v4, 0.0 }
0x1199   : > { %v3417_v41 = vmul.f32 1.442695, %v3408_v25  ;;  %3423 = vadd.xlane.f32.xlu0 %v3422_v39 }
0x119b   : > { %5480 = vpow2.f32 %v3417_v41 }
0x119d   : > { %v7102_v7 = vpop.eup %5476 }
0x119e   : > { %v3597_v56 = vpop.xlane.xlu1 %3596  ;;  %v3425_v6 = vsel %vm1349_vm4, %v7102_v7, 0.0 }
0x119f   : > { %v7106_v18 = vpop.eup %5478  ;;  %v3610_v45 = vsub.f32 %v7024_v30, %v3597_v56  ;;  %3426 = vadd.xlane.f32.xlu1 %v3425_v6  ;;  %v7120_v30 = vadd.f32 %v6946_v24, %v7033_v15  ;;  %v3604_v15 = vsel %vm1349_vm4, %v7128_v34, -inf }
0x11a0   : > { %v3600_v16 = vpop.xlane.xlu0 %3599  ;;  %v3428_v59 = vsel %vm1349_vm4, %v7106_v18, 0.0 }
0x11a1   : > { %v3615_v51 = vmul.f32 1.442695, %v3610_v45  ;;  %v3611_v1 = vsub.f32 %v7027_v53, %v3600_v16  ;;  %3429 = vadd.xlane.f32.xlu0 %v3428_v59  ;;  %v3601_v24 = vsel %vm1349_vm4, %v7120_v30, -inf }
0x11a3   : > { %5482 = vpow2.f32 %v3615_v51  ;;  %v3617_v40 = vmul.f32 1.442695, %v3611_v1 }
0x11a5   : > { %v7112_v9 = vpop.eup %5480  ;;  %5484 = vpow2.f32 %v3617_v40 }
0x11a6   : > { %v3431_v23 = vsel %vm1349_vm4, %v7112_v9, 0.0 }
0x11a7   : > { %3432 = vadd.xlane.f32.xlu1 %v3431_v23 }
0x11ad   : > { %v7116_v28 = vpop.eup %5482 }
0x11ae   : > { %v3625_v43 = vsel %vm1349_vm4, %v7116_v28, 0.0 }
0x11af   : > { %v7124_v53 = vpop.eup %5484  ;;  %3626 = vadd.xlane.f32.xlu0 %v3625_v43 }
0x11b0   : > { %v3628_v0 = vsel %vm1349_vm4, %v7124_v53, 0.0 }
0x11b1   : > { %3629 = vadd.xlane.f32.xlu1 %v3628_v0 }
0x11b3   : > { %3602 = vmax.xlane.f32.xlu0 %v3601_v24 }
0x11b5   : > { %3605 = vmax.xlane.f32.xlu1 %v3604_v15 }
0x11b7   : > { %3608 = vmax.xlane.f32.xlu0 %v3607_v27 }
0x11f4   : > { %v3006_v11 = vpop.xlane.xlu1 %3005 }
0x11f5   : > { %5486 = vrcp.f32 %v3006_v11 }
0x11f6   : > { %v3009_v17 = vpop.xlane.xlu0 %3008 }
0x11f7   : > { %5488 = vrcp.f32 %v3009_v17 }
0x11fc   : > { %v3012_v46 = vpop.xlane.xlu1 %3011 }
0x11fd   : > { %5490 = vrcp.f32 %v3012_v46 }
0x11fe   : > { %v3015_v31 = vpop.xlane.xlu0 %3014 }
0x11ff   : > { %v5487_v32 = vpop.eup %5486  ;;  %5492 = vrcp.f32 %v3015_v31 }
0x1200   : > { %v3020_v22 = vmul.f32 %v5487_v32, %v7043_v55 }
0x1201   : > { %v5489_v8 = vpop.eup %5488 }
0x1202   : > { %v3022_v35 = vmul.f32 %v5489_v8, %v7047_v49 }
0x1204   : > { %v3029_v29 = vpack.c.bf16 %v3022_v35, %v3020_v22  ;;  %v3018_v54 = vpop.xlane.xlu1 %3017 }
0x1205   : > { %5494 = vrcp.f32 %v3018_v54 }
0x1206   : > { %5027 = vmatmul.mubr.msk.bf16.vlgmr.msra.gmra.mrb[128].mxu1 %vm1349_vm4, %v3029_v29 }
0x1207   : > { %v5491_v63 = vpop.eup %5490  ;;  %5057 = vmatpush3.bf16.msra.mxu1 %v6828_v20  ;;  %5030 = vmatprep.mubr.msk.bf16.mxu1 %vm5643_vm2, %v5642_v21 }
0x1208   : > { %5058 = vmatprep.subr.bf16.mxu1 %v5642_v21  ;;  %v3024_v37 = vmul.f32 %v5491_v63, %v7052_v26 }
0x1209   : > { %v5493_v13 = vpop.eup %5492 }
0x120a   : > { %v3026_v55 = vmul.f32 %v5493_v13, %v7056_v10 }
0x120b   : > { %5059 = vmatpush3.bf16.msra.mxu1 %v6837_v36 }
0x120c   : > { %v3215_v49 = vpop.xlane.xlu0 %3214  ;;  %5060 = vmatprep.subr.bf16.mxu1 %v5642_v21  ;;  %v3030_v58 = vpack.c.bf16 %v3026_v55, %v3024_v37 }
0x120d   : > { %5496 = vrcp.f32 %v3215_v49 }
0x120e   : > { %v3218_v50 = vpop.xlane.xlu1 %3217  ;;  %5031 = vmatmul.mubr.msk.bf16.gmra.mrb[132].mxu1 %vm1349_vm4, %v3030_v58 }
0x120f   : > { %v5495_v3 = vpop.eup %5494  ;;  %5498 = vrcp.f32 %v3218_v50  ;;  %5061 = vmatpush3.bf16.msra.mxu1 %v6849_v14  ;;  %5034 = vmatprep.mubr.msk.bf16.mxu1 %vm5643_vm2, %v5642_v21 }
0x1210   : > { %v3028_v26 = vmul.f32 %v5495_v3, %v7062_v42  ;;  %5092 = vmatprep.subr.bf16.mxu1 %v5642_v21 }
0x1212   : > { %v3031_v62 = vpack.c.bf16 %v3028_v26, %v3028_v26 }
0x1214   : > { %v3221_v10 = vpop.xlane.xlu0 %3220 }
0x1215   : > { %5500 = vrcp.f32 %v3221_v10 }
0x1216   : > { %v3224_v25 = vpop.xlane.xlu1 %3223  ;;  %5035 = vmatmul.mubr.msk.bf16.gmra.mrb[136].mxu1 %vm1349_vm4, %v3031_v62 }
0x1217   : > { %v5497_v39 = vpop.eup %5496  ;;  %5502 = vrcp.f32 %v3224_v25  ;;  %5062 = vmatprep.mubr.msk.bf16.mxu1 %vm5643_vm2, %v5642_v21 }
0x1218   : > { %v3229_v56 = vmul.f32 %v5497_v39, %v7068_v47 }
0x1219   : > { %v5499_v41 = vpop.eup %5498 }
0x121a   : > { %v3231_v6 = vmul.f32 %v5499_v41, %v7072_v19 }
0x121c   : > { %v3238_v45 = vpack.c.bf16 %v3231_v6, %v3229_v56  ;;  %v3227_v42 = vpop.xlane.xlu0 %3226 }
0x121d   : > { %5504 = vrcp.f32 %v3227_v42 }
0x121e   : > { %5063 = vmatmul.mubr.msk.bf16.vlgmr.msra.gmra.mrb[140].mxu1 %vm1349_vm4, %v3238_v45 }
0x121f   : > { %v5501_v16 = vpop.eup %5500  ;;  %5093 = vmatpush3.bf16.msra.mxu1 %v6828_v20  ;;  %5066 = vmatprep.mubr.msk.bf16.mxu1 %vm5643_vm2, %v5642_v21 }
0x1220   : > { %5094 = vmatprep.subr.bf16.mxu1 %v5642_v21  ;;  %v3233_v51 = vmul.f32 %v5501_v16, %v7077_v60 }
0x1221   : > { %v5503_v59 = vpop.eup %5502 }
0x1222   : > { %v3235_v47 = vmul.f32 %v5503_v59, %v7081_v2 }
0x1223   : > { %5095 = vmatpush3.bf16.msra.mxu1 %v6837_v36 }
0x1224   : > { %v3421_v19 = vpop.xlane.xlu1 %3420  ;;  %5096 = vmatprep.subr.bf16.mxu1 %v5642_v21  ;;  %v3239_v1 = vpack.c.bf16 %v3235_v47, %v3233_v51 }
0x1225   : > { %5506 = vrcp.f32 %v3421_v19 }
0x1226   : > { %v3424_v40 = vpop.xlane.xlu0 %3423  ;;  %5067 = vmatmul.mubr.msk.bf16.gmra.mrb[144].mxu1 %vm1349_vm4, %v3239_v1 }
0x1227   : > { %v5505_v23 = vpop.eup %5504  ;;  %5508 = vrcp.f32 %v3424_v40  ;;  %5097 = vmatpush3.bf16.msra.mxu1 %v6849_v14  ;;  %5070 = vmatprep.mubr.msk.bf16.mxu1 %vm5643_vm2, %v5642_v21 }
0x1228   : > { %v3237_v60 = vmul.f32 %v5505_v23, %v7087_v33  ;;  %5128 = vmatprep.subr.bf16.mxu1 %v5642_v21 }
0x122a   : > { %v3240_v43 = vpack.c.bf16 %v3237_v60, %v3237_v60 }
0x122c   : > { %v3427_v2 = vpop.xlane.xlu1 %3426 }
0x122d   : > { %5510 = vrcp.f32 %v3427_v2 }
0x122e   : > { %v3430_v0 = vpop.xlane.xlu0 %3429  ;;  %5071 = vmatmul.mubr.msk.bf16.gmra.mrb[148].mxu1 %vm1349_vm4, %v3240_v43 }
0x122f   : > { %v5507_v24 = vpop.eup %5506  ;;  %5512 = vrcp.f32 %v3430_v0  ;;  %5098 = vmatprep.mubr.msk.bf16.mxu1 %vm5643_vm2, %v5642_v21 }
0x1230   : > { %v3435_v27 = vmul.f32 %v5507_v24, %v7093_v48 }
0x1231   : > { %v5509_v15 = vpop.eup %5508 }
0x1232   : > { %v3437_v11 = vmul.f32 %v5509_v15, %v7097_v4 }
0x1234   : > { %v3444_v17 = vpack.c.bf16 %v3437_v11, %v3435_v27  ;;  %v3433_v33 = vpop.xlane.xlu1 %3432  ;;  %v5574_v11 = vld [vmem:[%s7410_s19] ss:$0 sm:$0xff] }
0x1235   : > { %5514 = vrcp.f32 %v3433_v33  ;;  %v5575_v33 = vld [vmem:[%s7410_s19 + $0x1] ss:$0 sm:$0xff] }
0x1236   : > { %5099 = vmatmul.mubr.msk.bf16.vlgmr.msra.gmra.mrb[152].mxu1 %vm1349_vm4, %v3444_v17 }
0x1237   : > { %v5511_v46 = vpop.eup %5510  ;;  %5129 = vmatpush3.bf16.msra.mxu1 %v6828_v20  ;;  %5102 = vmatprep.mubr.msk.bf16.mxu1 %vm5643_vm2, %v5642_v21 }
0x1238   : > { %5130 = vmatprep.subr.bf16.mxu1 %v5642_v21  ;;  %v3439_v32 = vmul.f32 %v5511_v46, %v7102_v7 }
0x1239   : > { %v5513_v31 = vpop.eup %5512 }
0x123a   : > { %v3441_v48 = vmul.f32 %v5513_v31, %v7106_v18 }
0x123b   : > { %5131 = vmatpush3.bf16.msra.mxu1 %v6837_v36 }
0x123c   : > { %v3627_v4 = vpop.xlane.xlu0 %3626  ;;  %5132 = vmatprep.subr.bf16.mxu1 %v5642_v21  ;;  %v3445_v8 = vpack.c.bf16 %v3441_v48, %v3439_v32 }
0x123d   : > { %5516 = vrcp.f32 %v3627_v4 }
0x123e   : > { %v3630_v22 = vpop.xlane.xlu1 %3629  ;;  %5103 = vmatmul.mubr.msk.bf16.gmra.mrb[156].mxu1 %vm1349_vm4, %v3445_v8 }
0x123f   : > { %v5515_v20 = vpop.eup %5514  ;;  %5518 = vrcp.f32 %v3630_v22  ;;  %5133 = vmatpush3.bf16.msra.mxu1 %v6849_v14  ;;  %5106 = vmatprep.mubr.msk.bf16.mxu1 %vm5643_vm2, %v5642_v21 }
0x1240   : > { %v3603_v7 = vpop.xlane.xlu0 %3602  ;;  %v3443_v18 = vmul.f32 %v5515_v20, %v7112_v9  ;;  %5162 = vmatprep.subr.bf16.mxu1 %v5642_v21 }
0x1241   : > { %v3612_v36 = vsub.f32 %v7120_v30, %v3603_v7 }
0x1242   : > { %v3606_v35 = vpop.xlane.xlu1 %3605  ;;  %v3446_v13 = vpack.c.bf16 %v3443_v18, %v3443_v18 }
0x1243   : > { %v3619_v29 = vmul.f32 1.442695, %v3612_v36  ;;  %v3613_v54 = vsub.f32 %v7128_v34, %v3606_v35 }
0x1244   : > { %v3609_v63 = vpop.xlane.xlu0 %3608 }
0x1245   : > { %5520 = vpow2.f32 %v3619_v29  ;;  %v3621_v37 = vmul.f32 1.442695, %v3613_v54  ;;  %v3614_v14 = vsub.f32 %v7134_v5, %v3609_v63 }
0x1246   : > { %5107 = vmatmul.mubr.msk.bf16.gmra.mrb[160].mxu1 %vm1349_vm4, %v3446_v13 }
0x1247   : > { %v5517_v55 = vpop.eup %5516  ;;  %5522 = vpow2.f32 %v3621_v37  ;;  %v3623_v49 = vmul.f32 1.442695, %v3614_v14  ;;  %5134 = vmatprep.mubr.msk.bf16.mxu1 %vm5643_vm2, %v5642_v21 }
0x1248   : > { %v3641_v30 = vmul.f32 %v5517_v55, %v7116_v28  ;;  %v5298_v28 = vld [vmem:[%s7402_s11 + $0x10] sm:$0xff]  }
0x1249   : > { %v5519_v9 = vpop.eup %5518  ;;  %5524 = vpow2.f32 %v3623_v49  ;;  %5147 = vmatpush3.bf16.msra.mxu0 %v5298_v28 }
0x124a   : > { %v3643_v34 = vmul.f32 %v5519_v9, %v7124_v53  ;;  %5148 = vmatprep.subr.bf16.mxu0 %v5642_v21  ;;  %v5299_v53 = vld [vmem:[%s7402_s11 + $0x18] sm:$0xff]  }
0x124c   : > { %v3650_v58 = vpack.c.bf16 %v3643_v34, %v3641_v30 }
0x124d   : > { %5149 = vmatpush3.bf16.msra.mxu0 %v5299_v53 }
0x124e   : > { %5135 = vmatmul.mubr.msk.bf16.vlgmr.msra.gmra.mrb[164].mxu1 %vm1349_vm4, %v3650_v58  ;;  %5178 = vmatprep.subr.bf16.mxu0 %v5642_v21 }
0x124f   : > { %v5521_v50 = vpop.eup %5520  ;;  %5138 = vmatprep.mubr.msk.bf16.mxu1 %vm5643_vm2, %v5642_v21 }
0x1250   : > { %v3631_v5 = vsel %vm1349_vm4, %v5521_v50, 0.0 }
0x1251   : > { %v5523_v3 = vpop.eup %5522  ;;  %3632 = vadd.xlane.f32.xlu1 %v3631_v5 }
0x1252   : > { %v3634_v26 = vsel %vm1349_vm4, %v5523_v3, 0.0 }
0x1253   : > { %v5525_v10 = vpop.eup %5524  ;;  %3635 = vadd.xlane.f32.xlu0 %v3634_v26 }
0x1254   : > { %v3637_v62 = vsel %vm1349_vm4, %v5525_v10, 0.0 }
0x1255   : > { %3638 = vadd.xlane.f32.xlu1 %v3637_v62 }
0x12d9   : > { %v3078_v25 = vpop.f32.mrb[128].mxu1 }
0x12da   : > { %v5028_v39 = vpop.f32.mrb[129].mxu1  ;;  %v3100_v17 = vmul.f32 %v5574_v11, %v3078_v25 }
0x12db   : > { %v3081_v41 = vpop.f32.mrb[130].mxu1 }
0x12dc   : > { %v5029_v56 = vpop.f32.mrb[131].mxu1  ;;  %v3101_v4 = vmul.f32 %v5574_v11, %v3081_v41 }
0x12de   : > { %v3633_v6 = vpop.xlane.xlu1 %3632 }
0x12df   : > { %5526 = vrcp.f32 %v3633_v6 }
0x12e0   : > { %v3636_v45 = vpop.xlane.xlu0 %3635 }
0x12e1   : > { %5528 = vrcp.f32 %v3636_v45  ;;  %v3086_v42 = vpop.f32.mrb[132].mxu1 }
0x12e2   : > { %v3639_v16 = vpop.xlane.xlu1 %3638  ;;  %v5032_v59 = vpop.f32.mrb[133].mxu1  ;;  %v3102_v35 = vmul.f32 %v5574_v11, %v3086_v42 }
0x12e3   : > { %v3089_v51 = vpop.f32.mrb[134].mxu1  ;;  %5530 = vrcp.f32 %v3639_v16 }
0x12e4   : > { %v5033_v47 = vpop.f32.mrb[135].mxu1  ;;  %v3103_v13 = vmul.f32 %v5574_v11, %v3089_v51 }
0x12e9   : > { %v5527_v19 = vpop.eup %5526  ;;  %v3094_v1 = vpop.f32.mrb[136].mxu1 }
0x12ea   : > { %v5036_v40 = vpop.f32.mrb[137].mxu1  ;;  %v3645_v43 = vmul.f32 %v5527_v19, %v5521_v50  ;;  %v3104_v30 = vmul.f32 %v5574_v11, %v3094_v1 }
0x12eb   : > { %v5529_v23 = vpop.eup %5528  ;;  %v3097_v60 = vpop.f32.mrb[138].mxu1 }
0x12ec   : > { %v5037_v2 = vpop.f32.mrb[139].mxu1  ;;  %v3647_v0 = vmul.f32 %v5529_v23, %v5523_v3 }
0x12ed   : > { %v5531_v15 = vpop.eup %5530 }
0x12ee   : > { %v3651_v24 = vpack.c.bf16 %v3647_v0, %v3645_v43  ;;  %v3649_v32 = vmul.f32 %v5531_v15, %v5525_v10  ;;  %v5576_v0 = vld [vmem:[%s7410_s19 + $0x3] ss:$0 sm:$0xff] }
0x12f0   : > { %5139 = vmatmul.mubr.msk.bf16.gmra.mrb[168].mxu1 %vm1349_vm4, %v3651_v24  ;;  %v3652_v18 = vpack.c.bf16 %v3649_v32, %v3649_v32 }
0x12f1   : > { %v3284_v27 = vpop.f32.mrb[140].mxu1  ;;  %5142 = vmatprep.mubr.msk.bf16.mxu1 %vm5643_vm2, %v5642_v21 }
0x12f2   : > { %v3306_v46 = vmul.f32 %v5575_v33, %v3284_v27  ;;  %v5064_v31 = vpop.f32.mrb[141].mxu1 }
0x12f3   : > { %v3287_v48 = vpop.f32.mrb[142].mxu1 }
0x12f4   : > { %v3311_v8 = vadd.f32 %v3306_v46, %v3100_v17  ;;  %v3307_v22 = vmul.f32 %v5575_v33, %v3287_v48  ;;  %v5065_v20 = vpop.f32.mrb[143].mxu1 }
0x12f6   : > { %v3312_v7 = vadd.f32 %v3307_v22, %v3101_v4 }
0x12f8   : > { %5143 = vmatmul.mubr.msk.bf16.gmra.mrb[172].mxu1 %vm1349_vm4, %v3652_v18 }
0x12f9   : > { %v3292_v36 = vpop.f32.mrb[144].mxu1  ;;  %5166 = vmatprep.mubr.msk.bf16.mxu1 %vm5643_vm2, %v5642_v21 }
0x12fa   : > { %v3308_v29 = vmul.f32 %v5575_v33, %v3292_v36  ;;  %v5068_v54 = vpop.f32.mrb[145].mxu1 }
0x12fb   : > { %v3295_v63 = vpop.f32.mrb[146].mxu1 }
0x12fc   : > { %v3313_v37 = vadd.f32 %v3308_v29, %v3102_v35  ;;  %v3309_v14 = vmul.f32 %v5575_v33, %v3295_v63  ;;  %v5069_v55 = vpop.f32.mrb[147].mxu1 }
0x12fd   : > { %v4479_v55 = vld [vmem:[%s7403_s12 + $0x1] ss:$0 sm:$0xff] }
0x12fe   : > { %v3314_v49 = vadd.f32 %v3309_v14, %v3103_v13 }
0x1301   : > { %v3300_v9 = vpop.f32.mrb[148].mxu1 }
0x1302   : > { %v3310_v34 = vmul.f32 %v5575_v33, %v3300_v9  ;;  %v5072_v58 = vpop.f32.mrb[149].mxu1 }
0x1303   : > { %v3303_v50 = vpop.f32.mrb[150].mxu1 }
0x1304   : > { %v3315_v5 = vadd.f32 %v3310_v34, %v3104_v30  ;;  %v5073_v3 = vpop.f32.mrb[151].mxu1 }
0x1309   : > { %v3490_v26 = vpop.f32.mrb[152].mxu1 }
0x130a   : > { %v3512_v10 = vmul.f32 %v6898_v38, %v3490_v26  ;;  %v5100_v62 = vpop.f32.mrb[153].mxu1 }
0x130b   : > { %v3493_v28 = vpop.f32.mrb[154].mxu1 }
0x130c   : > { %v3517_v53 = vadd.f32 %v3512_v10, %v3311_v8  ;;  %v3513_v25 = vmul.f32 %v6898_v38, %v3493_v28  ;;  %v5101_v39 = vpop.f32.mrb[155].mxu1  ;;  %v5300_v10 = vld [vmem:[%s7404_s13 + $0x10] sm:$0xff]  }
0x130d   : > { %5163 = vmatpush3.bf16.msra.mxu1 %v5300_v10  ;;  %v5309_v10 = vld [vmem:[%s7406_s15 + $0x78] sm:$0xff]  }
0x130e   : > { %v3518_v41 = vadd.f32 %v3513_v25, %v3312_v7  ;;  %5164 = vmatprep.subr.bf16.mxu1 %v5642_v21 }
0x1311   : > { %v3498_v56 = vpop.f32.mrb[156].mxu1 }
0x1312   : > { %v3514_v6 = vmul.f32 %v6898_v38, %v3498_v56  ;;  %v5104_v45 = vpop.f32.mrb[157].mxu1 }
0x1313   : > { %v3501_v42 = vpop.f32.mrb[158].mxu1 }
0x1314   : > { %v3519_v16 = vadd.f32 %v3514_v6, %v3313_v37  ;;  %v3515_v59 = vmul.f32 %v6898_v38, %v3501_v42  ;;  %v5105_v51 = vpop.f32.mrb[159].mxu1 }
0x1316   : > { %v3520_v47 = vadd.f32 %v3515_v59, %v3314_v49 }
0x1319   : > { %v3506_v19 = vpop.f32.mrb[160].mxu1 }
0x131a   : > { %v3516_v1 = vmul.f32 %v6898_v38, %v3506_v19  ;;  %v5108_v40 = vpop.f32.mrb[161].mxu1 }
0x131b   : > { %v3509_v23 = vpop.f32.mrb[162].mxu1 }
0x131c   : > { %v3521_v60 = vadd.f32 %v3516_v1, %v3315_v5  ;;  %v5109_v2 = vpop.f32.mrb[163].mxu1 }
0x1321   : > { %v3696_v43 = vpop.f32.mrb[164].mxu1 }
0x1322   : > { %v3718_v24 = vmul.f32 %v5576_v0, %v3696_v43  ;;  %v5136_v15 = vpop.f32.mrb[165].mxu1 }
0x1323   : > { %v3699_v27 = vpop.f32.mrb[166].mxu1 }
0x1324   : > { %v3723_v11 = vadd.f32 %v3718_v24, %v3517_v53  ;;  %v3719_v17 = vmul.f32 %v5576_v0, %v3699_v27  ;;  %v5137_v33 = vpop.f32.mrb[167].mxu1 }
0x1326   : > { %v3724_v46 = vadd.f32 %v3719_v17, %v3518_v41 }
0x1328   : > { %v3733_v31 = vpack.c.bf16 %v3724_v46, %v3723_v11 }
0x132a   : > { %5151 = vmatmul.mubr.msk.bf16.vlgmr.msra.gmra.mrb[136].mxu0 %vm846_vm1, %v3733_v31 }
0x132b   : > { %5154 = vmatprep.mubr.msk.bf16.mxu0 %vm5643_vm2, %v5642_v21 }
0x13c3   : > { %v3704_v38 = vpop.f32.mrb[168].mxu1 }
0x13c4   : > { %v3720_v32 = vmul.f32 %v5576_v0, %v3704_v38  ;;  %v5140_v48 = vpop.f32.mrb[169].mxu1 }
0x13c5   : > { %v3707_v4 = vpop.f32.mrb[170].mxu1 }
0x13c6   : > { %v3725_v8 = vadd.f32 %v3720_v32, %v3519_v16  ;;  %v3721_v22 = vmul.f32 %v5576_v0, %v3707_v4  ;;  %v5141_v20 = vpop.f32.mrb[171].mxu1 }
0x13c8   : > { %v3726_v7 = vadd.f32 %v3721_v22, %v3520_v47 }
0x13ca   : > { %v3734_v18 = vpack.c.bf16 %v3726_v7, %v3725_v8 }
0x13cb   : > { %v3712_v36 = vpop.f32.mrb[172].mxu1 }
0x13cc   : > { %v3722_v35 = vmul.f32 %v5576_v0, %v3712_v36  ;;  %v5144_v29 = vpop.f32.mrb[173].mxu1  ;;  %5155 = vmatmul.mubr.msk.bf16.gmra.mrb[140].mxu0 %vm846_vm1, %v3734_v18 }
0x13cd   : > { %v3715_v54 = vpop.f32.mrb[174].mxu1  ;;  %5158 = vmatprep.mubr.msk.bf16.mxu0 %vm5643_vm2, %v5642_v21 }
0x13ce   : > { %v3727_v63 = vadd.f32 %v3722_v35, %v3521_v60  ;;  %v5145_v13 = vpop.f32.mrb[175].mxu1 }
0x13d0   : > { %v3735_v37 = vpack.c.bf16 %v3727_v63, %v3727_v63 }
0x13d4   : > { %5159 = vmatmul.mubr.msk.bf16.gmra.mrb[144].mxu0 %vm846_vm1, %v3735_v37 }
0x13d5   : > { %5194 = vmatprep.mubr.msk.bf16.mxu0 %vm5643_vm2, %v5642_v21 }
0x13fd   : > { %v3791_v14 = vpop.f32.mrb[136].mxu0 }
0x13fe   : > { %v3813_v49 = vadd.f32 %v3791_v14, %v6645_v44  ;;  %v5152_v9 = vpop.f32.mrb[137].mxu0 }
0x13ff   : > { %v3794_v30 = vpop.f32.mrb[138].mxu0  ;;  %v5302_v9 = vld [vmem:[%s7406_s15 + $0x40] sm:$0xff]  }
0x1400   : > { %v7254_v34 = vadd.f32 %v4479_v55, %v3813_v49  ;;  %v3814_v58 = vadd.f32 %v3794_v30, %v6648_v57  ;;  %v5153_v50 = vpop.f32.mrb[139].mxu0  ;;  %5179 = vmatpush3.bf16.msra.mxu0 %v5302_v9  ;;  %v5303_v30 = vld [vmem:[%s7406_s15 + $0x48] sm:$0xff]  }
0x1401   : > { %5180 = vmatprep.subr.bf16.mxu0 %v5642_v21  ;;  %v5305_v50 = vld [vmem:[%s7406_s15 + $0x58] sm:$0xff]  }
0x1402   : > { %v3827_v5 = vadd.f32 %v4479_v55, %v3814_v58  ;;  %v3831_v3 = vsel %vm846_vm1, %v7254_v34, 0.0  ;;  %v5304_v58 = vld [vmem:[%s7406_s15 + $0x50] sm:$0xff]  }
0x1403   : > { %3832 = vadd.xlane.f32.xlu0 %v3831_v3  ;;  %v5307_v3 = vld [vmem:[%s7406_s15 + $0x68] sm:$0xff]  }
0x1404   : > { %v3834_v26 = vsel %vm846_vm1, %v3827_v5, 0.0  ;;  %5181 = vmatpush3.bf16.msra.mxu0 %v5303_v30 }
0x1405   : > { %3835 = vadd.xlane.f32.xlu1 %v3834_v26  ;;  %5182 = vmatprep.subr.bf16.mxu0 %v5642_v21  ;;  %v5308_v26 = vld [vmem:[%s7406_s15 + $0x70] sm:$0xff]  }
0x1408   : > { %5183 = vmatpush3.bf16.msra.mxu0 %v5304_v58 }
0x1409   : > { %5184 = vmatprep.subr.bf16.mxu0 %v5642_v21 }
0x140c   : > { %5185 = vmatpush3.bf16.msra.mxu0 %v5305_v50 }
0x140d   : > { %5186 = vmatprep.subr.bf16.mxu0 %v5642_v21 }
0x1490   : > { %v3833_v44 = vpop.xlane.xlu0 %3832 }
0x1491   : > { %v3846_v62 = vmul.f32 0.03125, %v3833_v44 }
0x1492   : > { %v3836_v28 = vpop.xlane.xlu1 %3835 }
0x1493   : > { %v3851_v57 = vsub.f32 %v7254_v34, %v3846_v62  ;;  %v3847_v53 = vmul.f32 0.03125, %v3836_v28 }
0x1495   : > { %v3852_v25 = vsub.f32 %v3827_v5, %v3847_v53  ;;  %v3856_v39 = vmul.f32 %v3851_v57, %v3851_v57  ;;  %v5306_v5 = vld [vmem:[%s7406_s15 + $0x60] sm:$0xff]  }
0x1496   : > { %5187 = vmatpush3.bf16.msra.mxu0 %v5306_v5 }
0x1497   : > { %v3861_v41 = vsel %vm846_vm1, %v3856_v39, 0.0  ;;  %v3857_v56 = vmul.f32 %v3852_v25, %v3852_v25  ;;  %5188 = vmatprep.subr.bf16.mxu0 %v5642_v21 }
0x1498   : > { %3862 = vadd.xlane.f32.xlu0 %v3861_v41 }
0x1499   : > { %v3864_v6 = vsel %vm846_vm1, %v3857_v56, 0.0 }
0x149a   : > { %3865 = vadd.xlane.f32.xlu1 %v3864_v6  ;;  %5189 = vmatpush3.bf16.msra.mxu0 %v5307_v3 }
0x149b   : > { %5190 = vmatprep.subr.bf16.mxu0 %v5642_v21 }
0x149e   : > { %5191 = vmatpush3.bf16.msra.mxu0 %v5308_v26 }
0x149f   : > { %v3799_v45 = vpop.f32.mrb[140].mxu0  ;;  %5192 = vmatprep.subr.bf16.mxu0 %v5642_v21 }
0x14a0   : > { %v3815_v42 = vadd.f32 %v3799_v45, %v6655_v12  ;;  %v5156_v16 = vpop.f32.mrb[141].mxu0 }
0x14a1   : > { %v3802_v59 = vpop.f32.mrb[142].mxu0 }
0x14a2   : > { %v3828_v51 = vadd.f32 %v4479_v55, %v3815_v42  ;;  %v3816_v47 = vadd.f32 %v3802_v59, %v6658_v52  ;;  %v5157_v19 = vpop.f32.mrb[143].mxu0  ;;  %v5301_v52 = vld [vmem:[%s7404_s13 + $0x18] sm:$0xff]   ;;  %5193 = vmatpush3.bf16.msra.mxu0 %v5309_v10 }
0x14a3   : > { %5165 = vmatpush3.bf16.msra.mxu1 %v5301_v52 }
0x14a4   : > { %v3829_v1 = vadd.f32 %v4479_v55, %v3816_v47  ;;  %v3837_v40 = vsel %vm846_vm1, %v3828_v51, 0.0  ;;  %5206 = vmatprep.subr.bf16.mxu1 %v5642_v21 }
0x14a5   : > { %3838 = vadd.xlane.f32.xlu0 %v3837_v40 }
0x14a6   : > { %v3840_v23 = vsel %vm846_vm1, %v3829_v1, 0.0 }
0x14a7   : > { %3841 = vadd.xlane.f32.xlu1 %v3840_v23  ;;  %v3807_v60 = vpop.f32.mrb[144].mxu0 }
0x14a8   : > { %v3817_v2 = vadd.f32 %v3807_v60, %v6666_v61  ;;  %v5160_v43 = vpop.f32.mrb[145].mxu0 }
0x14a9   : > { %v3810_v0 = vpop.f32.mrb[146].mxu0 }
0x14aa   : > { %v3830_v24 = vadd.f32 %v4479_v55, %v3817_v2  ;;  %v5161_v12 = vpop.f32.mrb[147].mxu0 }
0x14ac   : > { %v3843_v15 = vsel %vm846_vm1, %v3830_v24, 0.0 }
0x14ad   : > { %3844 = vadd.xlane.f32.xlu0 %v3843_v15 }
0x1525   : > { %v3863_v27 = vpop.xlane.xlu0 %3862 }
0x1526   : > { %v3876_v11 = vmul.f32 0.03125, %v3863_v27 }
0x1527   : > { %v3866_v17 = vpop.xlane.xlu1 %3865 }
0x1528   : > { %v3881_v33 = vadd.f32 1e-05, %v3876_v11  ;;  %v3877_v46 = vmul.f32 0.03125, %v3866_v17 }
0x152a   : > { %5532 = vrsqrt.f32 %v3881_v33  ;;  %v3882_v61 = vadd.f32 1e-05, %v3877_v46 }
0x152c   : > { %5534 = vrsqrt.f32 %v3882_v61 }
0x1532   : > { %v3839_v31 = vpop.xlane.xlu0 %3838 }
0x1533   : > { %v3848_v38 = vmul.f32 0.03125, %v3839_v31 }
0x1534   : > { %v5533_v32 = vpop.eup %5532  ;;  %v3842_v48 = vpop.xlane.xlu1 %3841 }
0x1535   : > { %v3853_v4 = vsub.f32 %v3828_v51, %v3848_v38  ;;  %v3849_v8 = vmul.f32 0.03125, %v3842_v48  ;;  %v3891_v20 = vmul.f32 %v5533_v32, %v3851_v57 }
0x1536   : > { %v5535_v22 = vpop.eup %5534 }
0x1537   : > { %v3892_v7 = vmul.f32 %v5535_v22, %v3852_v25  ;;  %v3854_v18 = vsub.f32 %v3829_v1, %v3849_v8  ;;  %v3858_v36 = vmul.f32 %v3853_v4, %v3853_v4  ;;  %v4485_v1 = vld [vmem:[%s7405_s14 + $0x1] ss:$0 sm:$0xff] }
0x1539   : > { %v3901_v35 = vpack.c.bf16 %v3892_v7, %v3891_v20  ;;  %v3867_v29 = vsel %vm846_vm1, %v3858_v36, 0.0  ;;  %v3859_v54 = vmul.f32 %v3854_v18, %v3854_v18 }
0x153a   : > { %3868 = vadd.xlane.f32.xlu1 %v3867_v29  ;;  %v3845_v63 = vpop.xlane.xlu0 %3844 }
0x153b   : > { %v3850_v13 = vmul.f32 0.03125, %v3845_v63  ;;  %5167 = vmatmul.mubr.msk.bf16.vlgmr.msra.gmra.mrb[176].mxu1 %vm846_vm1, %v3901_v35  ;;  %v3870_v37 = vsel %vm846_vm1, %v3859_v54, 0.0 }
0x153c   : > { %3871 = vadd.xlane.f32.xlu0 %v3870_v37  ;;  %5170 = vmatprep.mubr.msk.bf16.mxu1 %vm5643_vm2, %v5642_v21 }
0x153d   : > { %v3855_v14 = vsub.f32 %v3830_v24, %v3850_v13 }
0x153f   : > { %v3860_v55 = vmul.f32 %v3855_v14, %v3855_v14 }
0x1541   : > { %v3873_v49 = vsel %vm846_vm1, %v3860_v55, 0.0 }
0x1542   : > { %3874 = vadd.xlane.f32.xlu1 %v3873_v49 }
0x15c7   : > { %v3869_v44 = vpop.xlane.xlu1 %3868 }
0x15c8   : > { %v3878_v62 = vmul.f32 0.03125, %v3869_v44 }
0x15c9   : > { %v3872_v28 = vpop.xlane.xlu0 %3871 }
0x15ca   : > { %v3883_v57 = vadd.f32 1e-05, %v3878_v62  ;;  %v3879_v53 = vmul.f32 0.03125, %v3872_v28 }
0x15cc   : > { %5536 = vrsqrt.f32 %v3883_v57  ;;  %v3884_v25 = vadd.f32 1e-05, %v3879_v53 }
0x15ce   : > { %5538 = vrsqrt.f32 %v3884_v25 }
0x15cf   : > { %v3875_v39 = vpop.xlane.xlu1 %3874 }
0x15d0   : > { %v3880_v41 = vmul.f32 0.03125, %v3875_v39 }
0x15d2   : > { %v3885_v56 = vadd.f32 1e-05, %v3880_v41  ;;  %v4521_v41 = vld [vmem:[%s7407_s16 + $0x1] ss:$0 sm:$0xff] }
0x15d4   : > { %5540 = vrsqrt.f32 %v3885_v56 }
0x15d6   : > { %v5537_v6 = vpop.eup %5536 }
0x15d7   : > { %v3893_v42 = vmul.f32 %v5537_v6, %v3853_v4 }
0x15d8   : > { %v5539_v45 = vpop.eup %5538 }
0x15d9   : > { %v3894_v16 = vmul.f32 %v5539_v45, %v3854_v18 }
0x15db   : > { %v3902_v59 = vpack.c.bf16 %v3894_v16, %v3893_v42 }
0x15dd   : > { %5171 = vmatmul.mubr.msk.bf16.gmra.mrb[180].mxu1 %vm846_vm1, %v3902_v59 }
0x15de   : > { %v5541_v51 = vpop.eup %5540  ;;  %5174 = vmatprep.mubr.msk.bf16.mxu1 %vm5643_vm2, %v5642_v21 }
0x15df   : > { %v3895_v47 = vmul.f32 %v5541_v51, %v3855_v14  ;;  %v5310_v51 = vld [vmem:[%s7408_s17] sm:$0xff]  }
0x15e0   : > { %5207 = vmatpush3.bf16.msra.mxu1 %v5310_v51 }
0x15e1   : > { %v3903_v19 = vpack.c.bf16 %v3895_v47, %v3895_v47  ;;  %5208 = vmatprep.subr.bf16.mxu1 %v5642_v21 }
0x15e5   : > { %5175 = vmatmul.mubr.msk.bf16.gmra.mrb[184].mxu1 %vm846_vm1, %v3903_v19 }
0x15e6   : > { %5210 = vmatprep.mubr.msk.bf16.mxu1 %vm5643_vm2, %v5642_v21 }
0x160e   : > { %v3967_v40 = vpop.f32.mrb[176].mxu1 }
0x160f   : > { %v3968_v23 = vadd.f32 %v4485_v1, %v3967_v40  ;;  %v5168_v60 = vpop.f32.mrb[177].mxu1 }
0x1610   : > { %v3970_v2 = vpop.f32.mrb[178].mxu1 }
0x1611   : > { %v4491_v43 = vmul.f32 -1.702, %v3968_v23  ;;  %v3971_v0 = vadd.f32 %v4485_v1, %v3970_v2  ;;  %v5169_v24 = vpop.f32.mrb[179].mxu1 }
0x1613   : > { %v3999_v12 = vmul.f32 1.442695, %v4491_v43  ;;  %v4492_v15 = vmul.f32 -1.702, %v3971_v0 }
0x1615   : > { %5542 = vpow2.f32 %v3999_v12  ;;  %v4001_v52 = vmul.f32 1.442695, %v4492_v15 }
0x1617   : > { %5544 = vpow2.f32 %v4001_v52 }
0x161f   : > { %v5543_v27 = vpop.eup %5542 }
0x1620   : > { %v4009_v11 = vadd.f32 1.0, %v5543_v27 }
0x1621   : > { %v5545_v17 = vpop.eup %5544 }
0x1622   : > { %5546 = vrcp.f32 %v4009_v11  ;;  %v4010_v33 = vadd.f32 1.0, %v5545_v17 }
0x1624   : > { %5548 = vrcp.f32 %v4010_v33 }
0x162c   : > { %v5547_v46 = vpop.eup %5546 }
0x162d   : > { %v4024_v31 = vmul.f32 %v5547_v46, %v3968_v23 }
0x162e   : > { %v5549_v61 = vpop.eup %5548 }
0x162f   : > { %v4025_v38 = vmul.f32 %v5549_v61, %v3971_v0  ;;  %v4522_v61 = vld [vmem:[%s7409_s18] ss:$0 sm:$0xff] }
0x1631   : > { %v4046_v32 = vpack.c.bf16 %v4025_v38, %v4024_v31 }
0x1633   : > { %5195 = vmatmul.mubr.bf16.vlgmr.msra.gmra.mrb[148].mxu0 %v4046_v32 }
0x1634   : > { %5198 = vmatprep.mubr.msk.bf16.mxu0 %vm5643_vm2, %v5642_v21 }
0x16b0   : > { %v3975_v48 = vpop.f32.mrb[180].mxu1 }
0x16b1   : > { %v3976_v4 = vadd.f32 %v4485_v1, %v3975_v48  ;;  %v5172_v8 = vpop.f32.mrb[181].mxu1 }
0x16b2   : > { %v3978_v22 = vpop.f32.mrb[182].mxu1 }
0x16b3   : > { %v4493_v20 = vmul.f32 -1.702, %v3976_v4  ;;  %v3979_v7 = vadd.f32 %v4485_v1, %v3978_v22  ;;  %v5173_v18 = vpop.f32.mrb[183].mxu1 }
0x16b5   : > { %v4003_v36 = vmul.f32 1.442695, %v4493_v20  ;;  %v4494_v35 = vmul.f32 -1.702, %v3979_v7 }
0x16b7   : > { %5550 = vpow2.f32 %v4003_v36  ;;  %v4005_v29 = vmul.f32 1.442695, %v4494_v35 }
0x16b8   : > { %v3983_v54 = vpop.f32.mrb[184].mxu1 }
0x16b9   : > { %5552 = vpow2.f32 %v4005_v29  ;;  %v3984_v63 = vadd.f32 %v4485_v1, %v3983_v54  ;;  %v5176_v13 = vpop.f32.mrb[185].mxu1 }
0x16ba   : > { %v3986_v37 = vpop.f32.mrb[186].mxu1 }
0x16bb   : > { %v4495_v14 = vmul.f32 -1.702, %v3984_v63  ;;  %v5177_v55 = vpop.f32.mrb[187].mxu1 }
0x16bd   : > { %v4007_v49 = vmul.f32 1.442695, %v4495_v14 }
0x16bf   : > { %5554 = vpow2.f32 %v4007_v49 }
0x16c1   : > { %v5551_v9 = vpop.eup %5550 }
0x16c2   : > { %v4011_v30 = vadd.f32 1.0, %v5551_v9 }
0x16c3   : > { %v5553_v58 = vpop.eup %5552 }
0x16c4   : > { %5556 = vrcp.f32 %v4011_v30  ;;  %v4012_v50 = vadd.f32 1.0, %v5553_v58 }
0x16c6   : > { %5558 = vrcp.f32 %v4012_v50 }
0x16c9   : > { %v5555_v5 = vpop.eup %5554 }
0x16ca   : > { %v4013_v3 = vadd.f32 1.0, %v5555_v5 }
0x16cc   : > { %5560 = vrcp.f32 %v4013_v3 }
0x16ce   : > { %v5557_v26 = vpop.eup %5556 }
0x16cf   : > { %v4026_v44 = vmul.f32 %v5557_v26, %v3976_v4 }
0x16d0   : > { %v5559_v10 = vpop.eup %5558 }
0x16d1   : > { %v4027_v62 = vmul.f32 %v5559_v10, %v3979_v7 }
0x16d3   : > { %v4047_v28 = vpack.c.bf16 %v4027_v62, %v4026_v44 }
0x16d5   : > { %5199 = vmatmul.mubr.bf16.gmra.mrb[152].mxu0 %v4047_v28 }
0x16d6   : > { %v5561_v57 = vpop.eup %5560  ;;  %5202 = vmatprep.mubr.msk.bf16.mxu0 %vm5643_vm2, %v5642_v21  ;;  %v5311_v21 = vld [vmem:[%s7408_s17 + $0x8] sm:$0xff]  }
0x16d7   : > { %v4028_v53 = vmul.f32 %v5561_v57, %v3984_v63  ;;  %5209 = vmatpush3.bf16.msra.mxu1 %v5311_v21 }
0x16d9   : > { %v4048_v25 = vpack.c.bf16 %v4028_v53, %v4028_v53 }
0x16dd   : > { %5203 = vmatmul.mubr.bf16.gmra.mrb[156].mxu0 %v4048_v25 }
0x1706   : > { %v4131_v39 = vpop.f32.mrb[148].mxu0 }
0x1707   : > { %v4149_v56 = vadd.f32 %v4131_v39, %v7254_v34  ;;  %v5196_v6 = vpop.f32.mrb[149].mxu0 }
0x1708   : > { %v4134_v45 = vpop.f32.mrb[150].mxu0 }
0x1709   : > { %v4158_v42 = vadd.f32 %v4521_v41, %v4149_v56  ;;  %v5197_v16 = vpop.f32.mrb[151].mxu0 }
0x170b   : > { %v4159_v59 = vsel %vm846_vm1, %v4158_v42, 0.0 }
0x170c   : > { %4160 = vadd.xlane.f32.xlu0 %v4159_v59 }
0x1799   : > { %v4161_v47 = vpop.xlane.xlu0 %4160 }
0x179a   : > { %v4162_v19 = vmul.f32 0.03125, %v4161_v47 }
0x179c   : > { %v4163_v1 = vsub.f32 %v4158_v42, %v4162_v19 }
0x179e   : > { %v4164_v40 = vmul.f32 %v4163_v1, %v4163_v1 }
0x17a0   : > { %v4165_v34 = vsel %vm846_vm1, %v4164_v40, 0.0 }
0x17a1   : > { %4166 = vadd.xlane.f32.xlu1 %v4165_v34 }
0x17a8   : > { %v4138_v23 = vpop.f32.mrb[152].mxu0 }
0x17a9   : > { %v5200_v60 = vpop.f32.mrb[153].mxu0 }
0x17aa   : > { %v4140_v2 = vpop.f32.mrb[154].mxu0 }
0x17ab   : > { %v5201_v43 = vpop.f32.mrb[155].mxu0 }
0x17b0   : > { %v4144_v0 = vpop.f32.mrb[156].mxu0 }
0x17b1   : > { %v5204_v24 = vpop.f32.mrb[157].mxu0 }
0x17b2   : > { %v4146_v12 = vpop.f32.mrb[158].mxu0 }
0x17b3   : > { %v5205_v15 = vpop.f32.mrb[159].mxu0 }
0x182e   : > { %v4167_v52 = vpop.xlane.xlu1 %4166 }
0x182f   : > { %v4168_v27 = vmul.f32 0.03125, %v4167_v52 }
0x1831   : > { %v4169_v11 = vadd.f32 1e-05, %v4168_v27 }
0x1833   : > { %5562 = vrsqrt.f32 %v4169_v11 }
0x183d   : > { %v5563_v17 = vpop.eup %5562 }
0x183e   : > { %v4171_v33 = vmul.f32 %v5563_v17, %v4163_v1 }
0x1840   : > { %v4176_v46 = vpack.c.bf16 %v4171_v33, %v4171_v33 }
0x1842   : > { %5211 = vmatmul.mubr.msk.bf16.vlgmr.msra.gmra.mrb[188].mxu1 %vm846_vm1, %v4176_v46 }
0x1915   : > { %v4233_v31 = vpop.f32.mrb[188].mxu1 }
0x1916   : > { %v4234_v38 = vadd.f32 %v4522_v61, %v4233_v31  ;;  %v5212_v32 = vpop.f32.mrb[189].mxu1 }
0x1917   : > { %v4236_v48 = vpop.f32.mrb[190].mxu1 }
0x1918   : > { %4239 = vst [vmem:[%s652_s2] sm:$0xff] %v4234_v38  ;;  %v5213_v4 = vpop.f32.mrb[191].mxu1 }
0x1919   : > { %5590 = shalt.err (!%p5587_p3)
}
0x191a   : > { %s5591_s1 = scalar_lea.hbm %s7349_s6, 128  ;;  %s5595_s23 = scalar_lea.hbm %s7412_s21, 256 }
0x191b   : > { %p5592_p4 = scmp.ne.s32.totalorder %s7349_s6, %s5591_s1  ;;  %p5596_p9 = scmp.lt.u32.totalorder %s7349_s6, %s7412_s21 }
0x191c   : > { %p5597_p10 = scmp.lt.u32.totalorder %s5595_s23, %s5591_s1  ;;  %p5599_p12 = scmp.lt.u32.totalorder %s5591_s1, %s7349_s6 }
0x191d   : > { %p5593_p7 = pnand %p5592_p4, %p5793_p5 }
0x191e   : > { %p5598_p11 = por %p5597_p10, %p5596_p9 }
0x191f   : > { %p5594_p8 = pneg %p5593_p7 }
0x1920   : > { %p5600_p13 = por %p5599_p12, %p5598_p11 }
0x1922   : > { %p5601_p0 = pnand %p5600_p13, %p5594_p8 }
0x1924   : > { %5604 = shalt.err (!%p5601_p0)
}
0x1925   : > { %5220 = dma.vmem_to_hbm [thread:$0]  (%p5793_p5), %s7351_s28, 128, %s7349_s6, %s4241_s26  }
0x1926 PF: > { %s7444_s3 = sld [smem:[#allocation5_spill]]  ;;  %p5226_p1 = scmp.ge.s32.totalorder %s5639_s27, 2 }
0x1928   : > { %p5223_p2 = pnand %p5226_p1, %p5797_p6 }
0x192c   : > { %s4266_s22 = sand.u32 1, %s7444_s3  }
0x192d   : > { %s4267_s2 = scalar_lea.sflag [#allocation3], %s4266_s22 }
0x192e   : > { %5622 = dma.done.wait (!%p5223_p2), %s4267_s2, 128  }
0x192f   : > { %5624 = vsyncadd (!%p5223_p2), %s4267_s2, 4294967168  ;;  %s7446_s27 = sld [smem:[#allocation7_spill]]  ;;  %s7447_s1 = sld [smem:[#allocation6_spill]] }
0x1930   : > { %s7448_s26 = sld [smem:[#allocation8_spill]]  ;;  %s7449_s2 = smov %s5631_s25 }
0x1935   : > { %p31_p3 = scmp.ge.s32.totalorder %s7446_s27, 4   ;;  %s7450_s25 = smov %s7447_s1 }
0x1937   :  { %33 = sbr.rel (!%p31_p3) target bundleno = 11 (0xb), region = 154 }
0x193e   :  { %4272 = vsyncpa [#allocation3], 1 }
0x193f   :  { %4274 = vsyncpa [#allocation3 + $0x1], 1 }

</bundles_post_ra>
